<compile_context>
chip_gen: v7x
topology: tpu7x:2x2x1
jax: 0.10.0
libtpu: 0.0.40
codegen_flags: <defaults>
</compile_context>

<pallas_src>
import numpy as np
import jax
import jax.numpy as jnp
from jax.experimental import pallas as pl
from jax.experimental.pallas import tpu as pltpu

F32 = jnp.float32
WGT = jnp.bfloat16            # matmul-weight storage dtype (f32 accumulation)

# ---- scaled-down but structurally identical config (see Config / BertConfig) ----
BATCH = 2
SEQ_LENGTH = 12               # Config.SEQ_LENGTH
INPUT_DIM = 16                # input_dim
HIDDEN = 128                  # Config.BERT_EMBEDDING_SIZE (768 -> 128 for a small run)
NUM_LAYERS = 4                # num_hidden_layers
NUM_HEADS = 8                 # num_attention_heads
HEAD_DIM = HIDDEN // NUM_HEADS
INTERMEDIATE = 256            # intermediate_size (1024 -> 256 for a small run)
MAX_POS = SEQ_LENGTH + 2      # max_position_embeddings
FC_HIDDEN = 256               # fc: Linear(hidden, 256) -> ReLU -> Dropout -> Linear(256, input_dim)
LN_EPS = 1e-12                # BERT default layer_norm_eps
NEG_INF = -1e30

M_TOKENS = BATCH * SEQ_LENGTH            # 24 rows in the residual stream
STACK_ROWS = NUM_HEADS * M_TOKENS        # 192 rows in the stacked-head score matrix


# --------------------------------------------------------------------------- #
# Trace-time numpy constants (captured once, DMA'd once, zero in-kernel issue cost)
# --------------------------------------------------------------------------- #
def _build_constants():
    # HEAD_STACK: rows [h*M, (h+1)*M) have 1.0 on head h's 16 lanes of the 128-wide dim
    head_stack = np.zeros((STACK_ROWS, HIDDEN), np.float32)
    for h in range(NUM_HEADS):
        head_stack[h * M_TOKENS:(h + 1) * M_TOKENS,
                   h * HEAD_DIM:(h + 1) * HEAD_DIM] = 1.0
    # additive batch-isolation mask for the (M, M) score block, tiled over heads
    row_b = np.arange(M_TOKENS) // SEQ_LENGTH
    neg = np.where(row_b[:, None] == row_b[None, :], 0.0, NEG_INF).astype(np.float32)
    neg_stack = np.tile(neg, (NUM_HEADS, 1))                     # (192, 24)
    # CLS-row selector: picks row b*S for each batch element b
    sel_cls = np.zeros((BATCH, M_TOKENS), np.float32)
    sel_cls[np.arange(BATCH), np.arange(BATCH) * SEQ_LENGTH] = 1.0
    return head_stack, neg_stack, sel_cls


HEAD_STACK, NEG_STACK, SEL_CLS = _build_constants()


# --------------------------------------------------------------------------- #
# Kernel: one grid step == one BERT encoder layer (plus gated embed / head stages)
# --------------------------------------------------------------------------- #
def _encoder_step_kernel(
    x_ref, proj_w_ref, proj_b_ref, pos_tok_ref, emb_g_ref, emb_b_ref,
    wqkv_ref, bqkv_ref, wo_ref, bo_ref, ln1_g_ref, ln1_b_ref,
    wi_ref, bi_ref, wout_ref, bout_ref, ln2_g_ref, ln2_b_ref,
    fc1_w_ref, fc1_b_ref, fc2_w_ref, fc2_b_ref,
    head_stack_ref, neg_stack_ref, sel_cls_ref,
    out_ref, h_ref,
):
    layer = pl.program_id(0)
    scale = 1.0 / (HEAD_DIM ** 0.5)

    def mm(a, w, bias):
        """y = a @ w + bias; a cast to the weight dtype (bf16), f32 accumulation."""
        return jnp.dot(a.astype(w.dtype), w, preferred_element_type=jnp.float32) + bias

    def layernorm(h, g, b):
        mean = jnp.mean(h, axis=-1, keepdims=True)
        c = h - mean
        var = jnp.mean(c * c, axis=-1, keepdims=True)
        return c * jax.lax.rsqrt(var + LN_EPS) * g + b

    # ---- input projection + BertEmbeddings (pos + token-type 0) + LayerNorm ----
    @pl.when(layer == 0)
    def _():
        h0 = mm(x_ref[...], proj_w_ref[...], proj_b_ref[...]) + pos_tok_ref[...]
        h_ref[...] = layernorm(h0, emb_g_ref[...], emb_b_ref[...])
        # attention_mask = ones -> extended mask adds 0 everywhere; dropout = identity.

    # ---- one post-LN BERT encoder layer (weights streamed for this grid step) ----
    h = h_ref[...]                                            # (M, H) f32
    qkv = mm(h, wqkv_ref[...], bqkv_ref[...])                 # (M, 3H) f32
    q = qkv[:, :HIDDEN]
    k = qkv[:, HIDDEN:2 * HIDDEN]
    v = qkv[:, 2 * HIDDEN:]

    head_stack = head_stack_ref[...]                          # (8M, H) 0/1 mask
    # stacked-head queries: rows [h*M,(h+1)*M) = q restricted to head h's lanes
    qm = jnp.concatenate([q] * NUM_HEADS, axis=0) * head_stack      # (8M, H)
    # ONE (192,128)x(128,24) MXU matmul for all heads' scores
    s = jax.lax.dot_general(qm, k, (((1,), (1,)), ((), ())),
                            preferred_element_type=jnp.float32)
    s = s * scale + neg_stack_ref[...]                        # batch isolation
    # ONE softmax for all 192 rows
    p = jnp.exp(s - jnp.max(s, axis=-1, keepdims=True))
    p = p * pl.reciprocal(jnp.sum(p, axis=-1, keepdims=True), approx=True)
    # ONE (192,24)x(24,128) MXU matmul; mask then fold heads back with 8 VPU adds
    ctx_heads = jnp.dot(p, v, preferred_element_type=jnp.float32) * head_stack
    ctx = ctx_heads[0:M_TOKENS]
    for hh in range(1, NUM_HEADS):
        ctx = ctx + ctx_heads[hh * M_TOKENS:(hh + 1) * M_TOKENS]

    attn_out = mm(ctx, wo_ref[...], bo_ref[...])
    h = layernorm(h + attn_out, ln1_g_ref[...], ln1_b_ref[...])

    # tanh-GELU (EUP path); HF BERT default is exact erf -> tiny (~1e-3) deviation.
    inter = jax.nn.gelu(mm(h, wi_ref[...], bi_ref[...]), approximate=True)
    ffn = mm(inter, wout_ref[...], bout_ref[...])
    h = layernorm(h + ffn, ln2_g_ref[...], ln2_b_ref[...])
    h_ref[...] = h

    # ---- CLS token + fc head (last grid step only) ------------------------------
    @pl.when(layer == NUM_LAYERS - 1)
    def _():
        cls = jnp.dot(sel_cls_ref[...], h, preferred_element_type=jnp.float32)  # (B, H)
        z = jnp.maximum(mm(cls, fc1_w_ref[...], fc1_b_ref[...]), 0.0)
        # TODO(synk): Dropout(0.1) omitted (identity at inference).
        out_ref[...] = mm(z, fc2_w_ref[...], fc2_b_ref[...]).astype(out_ref.dtype)


# --------------------------------------------------------------------------- #
# Wrapper: one pallas_call, grid over encoder layers (weights double-buffered)
# --------------------------------------------------------------------------- #
def time_bert_regressor_forward(params, x):
    """x: (B, SEQ_LENGTH, INPUT_DIM) -> (B, INPUT_DIM)."""
    B, S, D = x.shape
    assert B == BATCH and S == SEQ_LENGTH and D == INPUT_DIM
    M = B * S
    xf = x.reshape(M, D).astype(F32)
    # position embeddings (ids 0..S-1) + token-type-0 embedding, tiled over the batch
    pos_tok = jnp.tile(params["pos_emb"][:S] + params["tok_emb"][0:1], (B, 1))  # (M, H)

    inputs = [
        xf, params["proj_w"], params["proj_b"], pos_tok,
        params["emb_ln_g"], params["emb_ln_b"],
        params["wqkv"], params["bqkv"], params["wo"], params["bo"],
        params["ln1_g"], params["ln1_b"],
        params["wi"], params["bi"], params["wout"], params["bout"],
        params["ln2_g"], params["ln2_b"],
        params["fc1_w"], params["fc1_b"], params["fc2_w"], params["fc2_b"],
        jnp.asarray(HEAD_STACK), jnp.asarray(NEG_STACK), jnp.asarray(SEL_CLS),
    ]
    PER_LAYER = set(range(6, 18))   # wqkv .. ln2_b : stacked (L, ...) arrays

    in_specs = []
    for i, a in enumerate(inputs):
        if i in PER_LAYER:
            # stream layer l's slice; leading dim squeezed out of the kernel ref
            in_specs.append(pl.BlockSpec((None,) + a.shape[1:], lambda l: (l, 0, 0)))
        else:
            # resident across all grid steps (constant block index -> DMA'd once)
            in_specs.append(pl.BlockSpec(a.shape, lambda l: (0, 0)))

    grid_spec = pltpu.PrefetchScalarGridSpec(
        num_scalar_prefetch=0,
        grid=(NUM_LAYERS,),
        in_specs=in_specs,
        out_specs=pl.BlockSpec((B, INPUT_DIM), lambda l: (0, 0)),
        scratch_shapes=[pltpu.VMEM((M, HIDDEN), jnp.float32)],   # residual stream
    )
    return pl.pallas_call(
        _encoder_step_kernel,
        out_shape=jax.ShapeDtypeStruct((B, INPUT_DIM), F32),
        grid_spec=grid_spec,
        compiler_params=pltpu.CompilerParams(
            dimension_semantics=("arbitrary",)),   # layer axis is a sequential carry
    )(*inputs)


# --------------------------------------------------------------------------- #
# Deterministic parameter init (BERT-style: N(0, 0.02), zero bias, unit LN gamma)
# Matmul weights stored bf16 (f32 accumulation in-kernel); biases / LN / embeddings f32.
# --------------------------------------------------------------------------- #
def init_params(key, std=0.02):
    keys = iter(jax.random.split(key, 32))

    def nrm(shape, dtype=WGT):
        return (jax.random.normal(next(keys), shape, dtype=F32) * std).astype(dtype)

    def zeros(shape):
        return jnp.zeros(shape, F32)

    L, H, I = NUM_LAYERS, HIDDEN, INTERMEDIATE
    return dict(
        proj_w=nrm((INPUT_DIM, H)), proj_b=zeros((1, H)),
        pos_emb=nrm((MAX_POS, H), F32),
        tok_emb=nrm((2, H), F32),
        emb_ln_g=jnp.ones((1, H), F32), emb_ln_b=zeros((1, H)),
        # stacked per-layer weights: grid axis l selects [l] via BlockSpec
        wqkv=nrm((L, H, 3 * H)), bqkv=zeros((L, 1, 3 * H)),
        wo=nrm((L, H, H)), bo=zeros((L, 1, H)),
        ln1_g=jnp.ones((L, 1, H), F32), ln1_b=zeros((L, 1, H)),
        wi=nrm((L, H, I)), bi=zeros((L, 1, I)),
        wout=nrm((L, I, H)), bout=zeros((L, 1, H)),
        ln2_g=jnp.ones((L, 1, H), F32), ln2_b=zeros((L, 1, H)),
        fc1_w=nrm((H, FC_HIDDEN)), fc1_b=zeros((1, FC_HIDDEN)),
        fc2_w=nrm((FC_HIDDEN, INPUT_DIM)), fc2_b=zeros((1, INPUT_DIM)),
    )


if __name__ == "__main__":
    root = jax.random.PRNGKey(0)
    pkey, xkey = jax.random.split(root)
    params = init_params(pkey)
    x = jax.random.normal(xkey, (BATCH, SEQ_LENGTH, INPUT_DIM), dtype=F32)

    fwd = jax.jit(time_bert_regressor_forward)
    y = fwd(params, x)
    jax.block_until_ready(y)

    assert y.shape == (BATCH, INPUT_DIM) and y.dtype == F32
    assert bool(jnp.all(jnp.isfinite(y)))
    print("KERNEL_OK")
</pallas_src>

<mosaic_0001>
module attributes {stable_mosaic.version = 11 : i64} {
  func.func @_encoder_step_kernel(%arg0: i32, %arg1: memref<24x16xf32, #tpu.memory_space<vmem>>, %arg2: memref<16x128xbf16, #tpu.memory_space<vmem>>, %arg3: memref<1x128xf32, #tpu.memory_space<vmem>>, %arg4: memref<24x128xf32, #tpu.memory_space<vmem>>, %arg5: memref<1x128xf32, #tpu.memory_space<vmem>>, %arg6: memref<1x128xf32, #tpu.memory_space<vmem>>, %arg7: memref<1x128x384xbf16, #tpu.memory_space<vmem>>, %arg8: memref<1x1x384xf32, #tpu.memory_space<vmem>>, %arg9: memref<1x128x128xbf16, #tpu.memory_space<vmem>>, %arg10: memref<1x1x128xf32, #tpu.memory_space<vmem>>, %arg11: memref<1x1x128xf32, #tpu.memory_space<vmem>>, %arg12: memref<1x1x128xf32, #tpu.memory_space<vmem>>, %arg13: memref<1x128x256xbf16, #tpu.memory_space<vmem>>, %arg14: memref<1x1x256xf32, #tpu.memory_space<vmem>>, %arg15: memref<1x256x128xbf16, #tpu.memory_space<vmem>>, %arg16: memref<1x1x128xf32, #tpu.memory_space<vmem>>, %arg17: memref<1x1x128xf32, #tpu.memory_space<vmem>>, %arg18: memref<1x1x128xf32, #tpu.memory_space<vmem>>, %arg19: memref<128x256xbf16, #tpu.memory_space<vmem>>, %arg20: memref<1x256xf32, #tpu.memory_space<vmem>>, %arg21: memref<256x16xbf16, #tpu.memory_space<vmem>>, %arg22: memref<1x16xf32, #tpu.memory_space<vmem>>, %arg23: memref<192x128xf32, #tpu.memory_space<vmem>>, %arg24: memref<192x24xf32, #tpu.memory_space<vmem>>, %arg25: memref<2x24xf32, #tpu.memory_space<vmem>>, %arg26: memref<2x16xf32, #tpu.memory_space<vmem>>, %arg27: memref<24x128xf32, #tpu.memory_space<vmem>>) attributes {dimension_semantics = [#tpu.dimension_semantics<arbitrary>], iteration_bounds = array<i64: 4>, scalar_prefetch = 0 : i64, scratch_operands = 1 : i64, tpu.core_type = #tpu.core_type<tc>, window_params = [{pipeline_mode = #tpu.pipeline_mode<synchronous>, transform_indices = @transform_0, window_bounds = array<i64: 24, 16>}, {pipeline_mode = #tpu.pipeline_mode<synchronous>, transform_indices = @transform_1, window_bounds = array<i64: 16, 128>}, {pipeline_mode = #tpu.pipeline_mode<synchronous>, transform_indices = @transform_2, window_bounds = array<i64: 1, 128>}, {pipeline_mode = #tpu.pipeline_mode<synchronous>, transform_indices = @transform_3, window_bounds = array<i64: 24, 128>}, {pipeline_mode = #tpu.pipeline_mode<synchronous>, transform_indices = @transform_4, window_bounds = array<i64: 1, 128>}, {pipeline_mode = #tpu.pipeline_mode<synchronous>, transform_indices = @transform_5, window_bounds = array<i64: 1, 128>}, {transform_indices = @transform_6, window_bounds = array<i64: 1, 128, 384>}, {transform_indices = @transform_7, window_bounds = array<i64: 1, 1, 384>}, {transform_indices = @transform_8, window_bounds = array<i64: 1, 128, 128>}, {transform_indices = @transform_9, window_bounds = array<i64: 1, 1, 128>}, {transform_indices = @transform_10, window_bounds = array<i64: 1, 1, 128>}, {transform_indices = @transform_11, window_bounds = array<i64: 1, 1, 128>}, {transform_indices = @transform_12, window_bounds = array<i64: 1, 128, 256>}, {transform_indices = @transform_13, window_bounds = array<i64: 1, 1, 256>}, {transform_indices = @transform_14, window_bounds = array<i64: 1, 256, 128>}, {transform_indices = @transform_15, window_bounds = array<i64: 1, 1, 128>}, {transform_indices = @transform_16, window_bounds = array<i64: 1, 1, 128>}, {transform_indices = @transform_17, window_bounds = array<i64: 1, 1, 128>}, {pipeline_mode = #tpu.pipeline_mode<synchronous>, transform_indices = @transform_18, window_bounds = array<i64: 128, 256>}, {pipeline_mode = #tpu.pipeline_mode<synchronous>, transform_indices = @transform_19, window_bounds = array<i64: 1, 256>}, {pipeline_mode = #tpu.pipeline_mode<synchronous>, transform_indices = @transform_20, window_bounds = array<i64: 256, 16>}, {pipeline_mode = #tpu.pipeline_mode<synchronous>, transform_indices = @transform_21, window_bounds = array<i64: 1, 16>}, {pipeline_mode = #tpu.pipeline_mode<synchronous>, transform_indices = @transform_22, window_bounds = array<i64: 192, 128>}, {pipeline_mode = #tpu.pipeline_mode<synchronous>, transform_indices = @transform_23, window_bounds = array<i64: 192, 24>}, {pipeline_mode = #tpu.pipeline_mode<synchronous>, transform_indices = @transform_24, window_bounds = array<i64: 2, 24>}, {pipeline_mode = #tpu.pipeline_mode<synchronous>, transform_indices = @transform_25, window_bounds = array<i64: 2, 16>}]} {
    %c0_i32 = arith.constant 0 : i32
    %0 = arith.cmpi eq, %arg0, %c0_i32 : i32
    %1 = arith.extui %0 : i1 to i32
    %c0_i32_0 = arith.constant 0 : i32
    %2 = arith.cmpi ne, %1, %c0_i32_0 : i32
    scf.if %2 {
      %c0_67 = arith.constant 0 : index
      %c0_68 = arith.constant 0 : index
      %141 = vector.load %arg1[%c0_67, %c0_68] : memref<24x16xf32, #tpu.memory_space<vmem>>, vector<24x16xf32>
      %c0_69 = arith.constant 0 : index
      %c0_70 = arith.constant 0 : index
      %142 = vector.load %arg2[%c0_69, %c0_70] : memref<16x128xbf16, #tpu.memory_space<vmem>>, vector<16x128xbf16>
      %c0_71 = arith.constant 0 : index
      %c0_72 = arith.constant 0 : index
      %143 = vector.load %arg3[%c0_71, %c0_72] : memref<1x128xf32, #tpu.memory_space<vmem>>, vector<1x128xf32>
      %144 = arith.truncf %141 : vector<24x16xf32> to vector<24x16xbf16>
      %cst_73 = arith.constant dense<0.000000e+00> : vector<24x128xf32>
      %145 = tpu.matmul %144, %142, %cst_73 {dimension_numbers = #tpu.dot_dimension_numbers<[1], [0], [0], [1], [0, 0, 1, 1], [], []>} : vector<24x16xbf16>, vector<16x128xbf16>, vector<24x128xf32> -> vector<24x128xf32>
      %146 = vector.broadcast %143 : vector<1x128xf32> to vector<24x128xf32>
      %147 = arith.addf %145, %146 : vector<24x128xf32>
      %c0_74 = arith.constant 0 : index
      %c0_75 = arith.constant 0 : index
      %148 = vector.load %arg4[%c0_74, %c0_75] : memref<24x128xf32, #tpu.memory_space<vmem>>, vector<24x128xf32>
      %149 = arith.addf %147, %148 : vector<24x128xf32>
      %c0_76 = arith.constant 0 : index
      %c0_77 = arith.constant 0 : index
      %150 = vector.load %arg5[%c0_76, %c0_77] : memref<1x128xf32, #tpu.memory_space<vmem>>, vector<1x128xf32>
      %c0_78 = arith.constant 0 : index
      %c0_79 = arith.constant 0 : index
      %151 = vector.load %arg6[%c0_78, %c0_79] : memref<1x128xf32, #tpu.memory_space<vmem>>, vector<1x128xf32>
      %cst_80 = arith.constant dense<0.000000e+00> : vector<24xf32>
      %152 = vector.multi_reduction <add>, %149, %cst_80 [1] : vector<24x128xf32> to vector<24xf32>
      %153 = vector.shape_cast %152 : vector<24xf32> to vector<24x1xf32>
      %cst_81 = arith.constant 1.280000e+02 : f32
      %154 = vector.broadcast %cst_81 : f32 to vector<24x1xf32>
      %155 = arith.divf %153, %154 : vector<24x1xf32>
      %156 = vector.broadcast %155 : vector<24x1xf32> to vector<24x128xf32>
      %157 = arith.subf %149, %156 : vector<24x128xf32>
      %158 = arith.mulf %157, %157 : vector<24x128xf32>
      %cst_82 = arith.constant dense<0.000000e+00> : vector<24xf32>
      %159 = vector.multi_reduction <add>, %158, %cst_82 [1] : vector<24x128xf32> to vector<24xf32>
      %160 = vector.shape_cast %159 : vector<24xf32> to vector<24x1xf32>
      %cst_83 = arith.constant 1.280000e+02 : f32
      %161 = vector.broadcast %cst_83 : f32 to vector<24x1xf32>
      %162 = arith.divf %160, %161 : vector<24x1xf32>
      %cst_84 = arith.constant 9.99999996E-13 : f32
      %163 = vector.broadcast %cst_84 : f32 to vector<24x1xf32>
      %164 = arith.addf %162, %163 : vector<24x1xf32>
      %165 = math.rsqrt %164 : vector<24x1xf32>
      %166 = vector.broadcast %165 : vector<24x1xf32> to vector<24x128xf32>
      %167 = arith.mulf %157, %166 : vector<24x128xf32>
      %168 = vector.broadcast %150 : vector<1x128xf32> to vector<24x128xf32>
      %169 = arith.mulf %167, %168 : vector<24x128xf32>
      %170 = vector.broadcast %151 : vector<1x128xf32> to vector<24x128xf32>
      %171 = arith.addf %169, %170 : vector<24x128xf32>
      %c0_85 = arith.constant 0 : index
      %c0_86 = arith.constant 0 : index
      %172 = vector.load %arg27[%c0_85, %c0_86] : memref<24x128xf32, #tpu.memory_space<vmem>>, vector<24x128xf32>
      tpu.vector_store %arg27[%c0_85, %c0_86], %171 {strides = array<i32>} : memref<24x128xf32, #tpu.memory_space<vmem>>, vector<24x128xf32>,
    } else {
    }
    %c0 = arith.constant 0 : index
    %c0_1 = arith.constant 0 : index
    %3 = vector.load %arg27[%c0, %c0_1] : memref<24x128xf32, #tpu.memory_space<vmem>>, vector<24x128xf32>
    %c0_2 = arith.constant 0 : index
    %c0_3 = arith.constant 0 : index
    %c0_4 = arith.constant 0 : index
    %4 = vector.load %arg7[%c0_2, %c0_3, %c0_4] : memref<1x128x384xbf16, #tpu.memory_space<vmem>>, vector<1x128x384xbf16>
    %5 = vector.shape_cast %4 : vector<1x128x384xbf16> to vector<128x384xbf16>
    %c0_5 = arith.constant 0 : index
    %c0_6 = arith.constant 0 : index
    %c0_7 = arith.constant 0 : index
    %6 = vector.load %arg8[%c0_5, %c0_6, %c0_7] : memref<1x1x384xf32, #tpu.memory_space<vmem>>, vector<1x1x384xf32>
    %7 = vector.shape_cast %6 : vector<1x1x384xf32> to vector<1x384xf32>
    %8 = arith.truncf %3 : vector<24x128xf32> to vector<24x128xbf16>
    %cst = arith.constant dense<0.000000e+00> : vector<24x384xf32>
    %9 = tpu.matmul %8, %5, %cst {dimension_numbers = #tpu.dot_dimension_numbers<[1], [0], [0], [1], [0, 0, 1, 1], [], []>} : vector<24x128xbf16>, vector<128x384xbf16>, vector<24x384xf32> -> vector<24x384xf32>
    %10 = vector.broadcast %7 : vector<1x384xf32> to vector<24x384xf32>
    %11 = arith.addf %9, %10 : vector<24x384xf32>
    %12 = vector.extract_strided_slice %11 {offsets = [0, 0], sizes = [24, 128], strides = [1, 1]} : vector<24x384xf32> to vector<24x128xf32>
    %13 = vector.extract_strided_slice %11 {offsets = [0, 128], sizes = [24, 128], strides = [1, 1]} : vector<24x384xf32> to vector<24x128xf32>
    %14 = vector.extract_strided_slice %11 {offsets = [0, 256], sizes = [24, 128], strides = [1, 1]} : vector<24x384xf32> to vector<24x128xf32>
    %c0_8 = arith.constant 0 : index
    %c0_9 = arith.constant 0 : index
    %15 = vector.load %arg23[%c0_8, %c0_9] : memref<192x128xf32, #tpu.memory_space<vmem>>, vector<192x128xf32>
    %16 = tpu.concatenate %12, %12, %12, %12, %12, %12, %12, %12 in 0 : vector<24x128xf32>, vector<24x128xf32>, vector<24x128xf32>, vector<24x128xf32>, vector<24x128xf32>, vector<24x128xf32>, vector<24x128xf32>, vector<24x128xf32> -> vector<192x128xf32>
    %17 = arith.mulf %16, %15 : vector<192x128xf32>
    %cst_10 = arith.constant dense<0.000000e+00> : vector<192x24xf32>
    %18 = tpu.matmul %17, %13, %cst_10 {dimension_numbers = #tpu.dot_dimension_numbers<[1], [1], [0], [0], [0, 0, 1, 0], [], []>} : vector<192x128xf32>, vector<24x128xf32>, vector<192x24xf32> -> vector<192x24xf32>
    %cst_11 = arith.constant 2.500000e-01 : f32
    %19 = vector.broadcast %cst_11 : f32 to vector<192x24xf32>
    %20 = arith.mulf %18, %19 : vector<192x24xf32>
    %c0_12 = arith.constant 0 : index
    %c0_13 = arith.constant 0 : index
    %21 = vector.load %arg24[%c0_12, %c0_13] : memref<192x24xf32, #tpu.memory_space<vmem>>, vector<192x24xf32>
    %22 = arith.addf %20, %21 : vector<192x24xf32>
    %cst_14 = arith.constant dense<0xFF800000> : vector<192xf32>
    %23 = vector.multi_reduction <maximumf>, %22, %cst_14 [1] : vector<192x24xf32> to vector<192xf32>
    %24 = vector.shape_cast %23 : vector<192xf32> to vector<192x1xf32>
    %25 = vector.broadcast %24 : vector<192x1xf32> to vector<192x24xf32>
    %26 = arith.subf %22, %25 : vector<192x24xf32>
    %27 = math.exp %26 : vector<192x24xf32>
    %cst_15 = arith.constant dense<0.000000e+00> : vector<192xf32>
    %28 = vector.multi_reduction <add>, %27, %cst_15 [1] : vector<192x24xf32> to vector<192xf32>
    %29 = vector.shape_cast %28 : vector<192xf32> to vector<192x1xf32>
    %30 = tpu.reciprocal %29 {approx = true} : vector<192x1xf32> -> vector<192x1xf32>
    %31 = vector.broadcast %30 : vector<192x1xf32> to vector<192x24xf32>
    %32 = arith.mulf %27, %31 : vector<192x24xf32>
    %cst_16 = arith.constant dense<0.000000e+00> : vector<192x128xf32>
    %33 = tpu.matmul %32, %14, %cst_16 {dimension_numbers = #tpu.dot_dimension_numbers<[1], [0], [0], [1], [0, 0, 1, 1], [], []>} : vector<192x24xf32>, vector<24x128xf32>, vector<192x128xf32> -> vector<192x128xf32>
    %34 = arith.mulf %33, %15 : vector<192x128xf32>
    %35 = vector.extract_strided_slice %34 {offsets = [0, 0], sizes = [24, 128], strides = [1, 1]} : vector<192x128xf32> to vector<24x128xf32>
    %36 = vector.extract_strided_slice %34 {offsets = [24, 0], sizes = [24, 128], strides = [1, 1]} : vector<192x128xf32> to vector<24x128xf32>
    %37 = arith.addf %35, %36 : vector<24x128xf32>
    %38 = vector.extract_strided_slice %34 {offsets = [48, 0], sizes = [24, 128], strides = [1, 1]} : vector<192x128xf32> to vector<24x128xf32>
    %39 = arith.addf %37, %38 : vector<24x128xf32>
    %40 = vector.extract_strided_slice %34 {offsets = [72, 0], sizes = [24, 128], strides = [1, 1]} : vector<192x128xf32> to vector<24x128xf32>
    %41 = arith.addf %39, %40 : vector<24x128xf32>
    %42 = vector.extract_strided_slice %34 {offsets = [96, 0], sizes = [24, 128], strides = [1, 1]} : vector<192x128xf32> to vector<24x128xf32>
    %43 = arith.addf %41, %42 : vector<24x128xf32>
    %44 = vector.extract_strided_slice %34 {offsets = [120, 0], sizes = [24, 128], strides = [1, 1]} : vector<192x128xf32> to vector<24x128xf32>
    %45 = arith.addf %43, %44 : vector<24x128xf32>
    %46 = vector.extract_strided_slice %34 {offsets = [144, 0], sizes = [24, 128], strides = [1, 1]} : vector<192x128xf32> to vector<24x128xf32>
    %47 = arith.addf %45, %46 : vector<24x128xf32>
    %48 = vector.extract_strided_slice %34 {offsets = [168, 0], sizes = [24, 128], strides = [1, 1]} : vector<192x128xf32> to vector<24x128xf32>
    %49 = arith.addf %47, %48 : vector<24x128xf32>
    %c0_17 = arith.constant 0 : index
    %c0_18 = arith.constant 0 : index
    %c0_19 = arith.constant 0 : index
    %50 = vector.load %arg9[%c0_17, %c0_18, %c0_19] : memref<1x128x128xbf16, #tpu.memory_space<vmem>>, vector<1x128x128xbf16>
    %51 = vector.shape_cast %50 : vector<1x128x128xbf16> to vector<128x128xbf16>
    %c0_20 = arith.constant 0 : index
    %c0_21 = arith.constant 0 : index
    %c0_22 = arith.constant 0 : index
    %52 = vector.load %arg10[%c0_20, %c0_21, %c0_22] : memref<1x1x128xf32, #tpu.memory_space<vmem>>, vector<1x1x128xf32>
    %53 = vector.shape_cast %52 : vector<1x1x128xf32> to vector<1x128xf32>
    %54 = arith.truncf %49 : vector<24x128xf32> to vector<24x128xbf16>
    %cst_23 = arith.constant dense<0.000000e+00> : vector<24x128xf32>
    %55 = tpu.matmul %54, %51, %cst_23 {dimension_numbers = #tpu.dot_dimension_numbers<[1], [0], [0], [1], [0, 0, 1, 1], [], []>} : vector<24x128xbf16>, vector<128x128xbf16>, vector<24x128xf32> -> vector<24x128xf32>
    %56 = vector.broadcast %53 : vector<1x128xf32> to vector<24x128xf32>
    %57 = arith.addf %55, %56 : vector<24x128xf32>
    %58 = arith.addf %3, %57 : vector<24x128xf32>
    %c0_24 = arith.constant 0 : index
    %c0_25 = arith.constant 0 : index
    %c0_26 = arith.constant 0 : index
    %59 = vector.load %arg11[%c0_24, %c0_25, %c0_26] : memref<1x1x128xf32, #tpu.memory_space<vmem>>, vector<1x1x128xf32>
    %60 = vector.shape_cast %59 : vector<1x1x128xf32> to vector<1x128xf32>
    %c0_27 = arith.constant 0 : index
    %c0_28 = arith.constant 0 : index
    %c0_29 = arith.constant 0 : index
    %61 = vector.load %arg12[%c0_27, %c0_28, %c0_29] : memref<1x1x128xf32, #tpu.memory_space<vmem>>, vector<1x1x128xf32>
    %62 = vector.shape_cast %61 : vector<1x1x128xf32> to vector<1x128xf32>
    %cst_30 = arith.constant dense<0.000000e+00> : vector<24xf32>
    %63 = vector.multi_reduction <add>, %58, %cst_30 [1] : vector<24x128xf32> to vector<24xf32>
    %64 = vector.shape_cast %63 : vector<24xf32> to vector<24x1xf32>
    %cst_31 = arith.constant 1.280000e+02 : f32
    %65 = vector.broadcast %cst_31 : f32 to vector<24x1xf32>
    %66 = arith.divf %64, %65 : vector<24x1xf32>
    %67 = vector.broadcast %66 : vector<24x1xf32> to vector<24x128xf32>
    %68 = arith.subf %58, %67 : vector<24x128xf32>
    %69 = arith.mulf %68, %68 : vector<24x128xf32>
    %cst_32 = arith.constant dense<0.000000e+00> : vector<24xf32>
    %70 = vector.multi_reduction <add>, %69, %cst_32 [1] : vector<24x128xf32> to vector<24xf32>
    %71 = vector.shape_cast %70 : vector<24xf32> to vector<24x1xf32>
    %cst_33 = arith.constant 1.280000e+02 : f32
    %72 = vector.broadcast %cst_33 : f32 to vector<24x1xf32>
    %73 = arith.divf %71, %72 : vector<24x1xf32>
    %cst_34 = arith.constant 9.99999996E-13 : f32
    %74 = vector.broadcast %cst_34 : f32 to vector<24x1xf32>
    %75 = arith.addf %73, %74 : vector<24x1xf32>
    %76 = math.rsqrt %75 : vector<24x1xf32>
    %77 = vector.broadcast %76 : vector<24x1xf32> to vector<24x128xf32>
    %78 = arith.mulf %68, %77 : vector<24x128xf32>
    %79 = vector.broadcast %60 : vector<1x128xf32> to vector<24x128xf32>
    %80 = arith.mulf %78, %79 : vector<24x128xf32>
    %81 = vector.broadcast %62 : vector<1x128xf32> to vector<24x128xf32>
    %82 = arith.addf %80, %81 : vector<24x128xf32>
    %c0_35 = arith.constant 0 : index
    %c0_36 = arith.constant 0 : index
    %c0_37 = arith.constant 0 : index
    %83 = vector.load %arg13[%c0_35, %c0_36, %c0_37] : memref<1x128x256xbf16, #tpu.memory_space<vmem>>, vector<1x128x256xbf16>
    %84 = vector.shape_cast %83 : vector<1x128x256xbf16> to vector<128x256xbf16>
    %c0_38 = arith.constant 0 : index
    %c0_39 = arith.constant 0 : index
    %c0_40 = arith.constant 0 : index
    %85 = vector.load %arg14[%c0_38, %c0_39, %c0_40] : memref<1x1x256xf32, #tpu.memory_space<vmem>>, vector<1x1x256xf32>
    %86 = vector.shape_cast %85 : vector<1x1x256xf32> to vector<1x256xf32>
    %87 = arith.truncf %82 : vector<24x128xf32> to vector<24x128xbf16>
    %cst_41 = arith.constant dense<0.000000e+00> : vector<24x256xf32>
    %88 = tpu.matmul %87, %84, %cst_41 {dimension_numbers = #tpu.dot_dimension_numbers<[1], [0], [0], [1], [0, 0, 1, 1], [], []>} : vector<24x128xbf16>, vector<128x256xbf16>, vector<24x256xf32> -> vector<24x256xf32>
    %89 = vector.broadcast %86 : vector<1x256xf32> to vector<24x256xf32>
    %90 = arith.addf %88, %89 : vector<24x256xf32>
    %91 = arith.mulf %90, %90 : vector<24x256xf32>
    %92 = arith.mulf %90, %91 : vector<24x256xf32>
    %cst_42 = arith.constant 4.471500e-02 : f32
    %93 = vector.broadcast %cst_42 : f32 to vector<24x256xf32>
    %94 = arith.mulf %93, %92 : vector<24x256xf32>
    %95 = arith.addf %90, %94 : vector<24x256xf32>
    %cst_43 = arith.constant 0.797884583 : f32
    %96 = vector.broadcast %cst_43 : f32 to vector<24x256xf32>
    %97 = arith.mulf %96, %95 : vector<24x256xf32>
    %98 = math.tanh %97 : vector<24x256xf32>
    %cst_44 = arith.constant 1.000000e+00 : f32
    %99 = vector.broadcast %cst_44 : f32 to vector<24x256xf32>
    %100 = arith.addf %99, %98 : vector<24x256xf32>
    %cst_45 = arith.constant 5.000000e-01 : f32
    %101 = vector.broadcast %cst_45 : f32 to vector<24x256xf32>
    %102 = arith.mulf %101, %100 : vector<24x256xf32>
    %103 = arith.mulf %90, %102 : vector<24x256xf32>
    %c0_46 = arith.constant 0 : index
    %c0_47 = arith.constant 0 : index
    %c0_48 = arith.constant 0 : index
    %104 = vector.load %arg15[%c0_46, %c0_47, %c0_48] : memref<1x256x128xbf16, #tpu.memory_space<vmem>>, vector<1x256x128xbf16>
    %105 = vector.shape_cast %104 : vector<1x256x128xbf16> to vector<256x128xbf16>
    %c0_49 = arith.constant 0 : index
    %c0_50 = arith.constant 0 : index
    %c0_51 = arith.constant 0 : index
    %106 = vector.load %arg16[%c0_49, %c0_50, %c0_51] : memref<1x1x128xf32, #tpu.memory_space<vmem>>, vector<1x1x128xf32>
    %107 = vector.shape_cast %106 : vector<1x1x128xf32> to vector<1x128xf32>
    %108 = arith.truncf %103 : vector<24x256xf32> to vector<24x256xbf16>
    %cst_52 = arith.constant dense<0.000000e+00> : vector<24x128xf32>
    %109 = tpu.matmul %108, %105, %cst_52 {dimension_numbers = #tpu.dot_dimension_numbers<[1], [0], [0], [1], [0, 0, 1, 1], [], []>} : vector<24x256xbf16>, vector<256x128xbf16>, vector<24x128xf32> -> vector<24x128xf32>
    %110 = vector.broadcast %107 : vector<1x128xf32> to vector<24x128xf32>
    %111 = arith.addf %109, %110 : vector<24x128xf32>
    %112 = arith.addf %82, %111 : vector<24x128xf32>
    %c0_53 = arith.constant 0 : index
    %c0_54 = arith.constant 0 : index
    %c0_55 = arith.constant 0 : index
    %113 = vector.load %arg17[%c0_53, %c0_54, %c0_55] : memref<1x1x128xf32, #tpu.memory_space<vmem>>, vector<1x1x128xf32>
    %114 = vector.shape_cast %113 : vector<1x1x128xf32> to vector<1x128xf32>
    %c0_56 = arith.constant 0 : index
    %c0_57 = arith.constant 0 : index
    %c0_58 = arith.constant 0 : index
    %115 = vector.load %arg18[%c0_56, %c0_57, %c0_58] : memref<1x1x128xf32, #tpu.memory_space<vmem>>, vector<1x1x128xf32>
    %116 = vector.shape_cast %115 : vector<1x1x128xf32> to vector<1x128xf32>
    %cst_59 = arith.constant dense<0.000000e+00> : vector<24xf32>
    %117 = vector.multi_reduction <add>, %112, %cst_59 [1] : vector<24x128xf32> to vector<24xf32>
    %118 = vector.shape_cast %117 : vector<24xf32> to vector<24x1xf32>
    %cst_60 = arith.constant 1.280000e+02 : f32
    %119 = vector.broadcast %cst_60 : f32 to vector<24x1xf32>
    %120 = arith.divf %118, %119 : vector<24x1xf32>
    %121 = vector.broadcast %120 : vector<24x1xf32> to vector<24x128xf32>
    %122 = arith.subf %112, %121 : vector<24x128xf32>
    %123 = arith.mulf %122, %122 : vector<24x128xf32>
    %cst_61 = arith.constant dense<0.000000e+00> : vector<24xf32>
    %124 = vector.multi_reduction <add>, %123, %cst_61 [1] : vector<24x128xf32> to vector<24xf32>
    %125 = vector.shape_cast %124 : vector<24xf32> to vector<24x1xf32>
    %cst_62 = arith.constant 1.280000e+02 : f32
    %126 = vector.broadcast %cst_62 : f32 to vector<24x1xf32>
    %127 = arith.divf %125, %126 : vector<24x1xf32>
    %cst_63 = arith.constant 9.99999996E-13 : f32
    %128 = vector.broadcast %cst_63 : f32 to vector<24x1xf32>
    %129 = arith.addf %127, %128 : vector<24x1xf32>
    %130 = math.rsqrt %129 : vector<24x1xf32>
    %131 = vector.broadcast %130 : vector<24x1xf32> to vector<24x128xf32>
    %132 = arith.mulf %122, %131 : vector<24x128xf32>
    %133 = vector.broadcast %114 : vector<1x128xf32> to vector<24x128xf32>
    %134 = arith.mulf %132, %133 : vector<24x128xf32>
    %135 = vector.broadcast %116 : vector<1x128xf32> to vector<24x128xf32>
    %136 = arith.addf %134, %135 : vector<24x128xf32>
    %c0_64 = arith.constant 0 : index
    %c0_65 = arith.constant 0 : index
    %137 = vector.load %arg27[%c0_64, %c0_65] : memref<24x128xf32, #tpu.memory_space<vmem>>, vector<24x128xf32>
    tpu.vector_store %arg27[%c0_64, %c0_65], %136 {strides = array<i32>} : memref<24x128xf32, #tpu.memory_space<vmem>>, vector<24x128xf32>,
    %c3_i32 = arith.constant 3 : i32
    %138 = arith.cmpi eq, %arg0, %c3_i32 : i32
    %139 = arith.extui %138 : i1 to i32
    %c0_i32_66 = arith.constant 0 : i32
    %140 = arith.cmpi ne, %139, %c0_i32_66 : i32
    scf.if %140 {
      %c0_67 = arith.constant 0 : index
      %c0_68 = arith.constant 0 : index
      %141 = vector.load %arg25[%c0_67, %c0_68] : memref<2x24xf32, #tpu.memory_space<vmem>>, vector<2x24xf32>
      %cst_69 = arith.constant dense<0.000000e+00> : vector<2x128xf32>
      %142 = tpu.matmul %141, %136, %cst_69 {dimension_numbers = #tpu.dot_dimension_numbers<[1], [0], [0], [1], [0, 0, 1, 1], [], []>} : vector<2x24xf32>, vector<24x128xf32>, vector<2x128xf32> -> vector<2x128xf32>
      %c0_70 = arith.constant 0 : index
      %c0_71 = arith.constant 0 : index
      %143 = vector.load %arg19[%c0_70, %c0_71] : memref<128x256xbf16, #tpu.memory_space<vmem>>, vector<128x256xbf16>
      %c0_72 = arith.constant 0 : index
      %c0_73 = arith.constant 0 : index
      %144 = vector.load %arg20[%c0_72, %c0_73] : memref<1x256xf32, #tpu.memory_space<vmem>>, vector<1x256xf32>
      %145 = arith.truncf %142 : vector<2x128xf32> to vector<2x128xbf16>
      %cst_74 = arith.constant dense<0.000000e+00> : vector<2x256xf32>
      %146 = tpu.matmul %145, %143, %cst_74 {dimension_numbers = #tpu.dot_dimension_numbers<[1], [0], [0], [1], [0, 0, 1, 1], [], []>} : vector<2x128xbf16>, vector<128x256xbf16>, vector<2x256xf32> -> vector<2x256xf32>
      %147 = vector.broadcast %144 : vector<1x256xf32> to vector<2x256xf32>
      %148 = arith.addf %146, %147 : vector<2x256xf32>
      %cst_75 = arith.constant 0.000000e+00 : f32
      %149 = vector.broadcast %cst_75 : f32 to vector<2x256xf32>
      %150 = arith.maximumf %148, %149 : vector<2x256xf32>
      %c0_76 = arith.constant 0 : index
      %c0_77 = arith.constant 0 : index
      %151 = vector.load %arg21[%c0_76, %c0_77] : memref<256x16xbf16, #tpu.memory_space<vmem>>, vector<256x16xbf16>
      %c0_78 = arith.constant 0 : index
      %c0_79 = arith.constant 0 : index
      %152 = vector.load %arg22[%c0_78, %c0_79] : memref<1x16xf32, #tpu.memory_space<vmem>>, vector<1x16xf32>
      %153 = arith.truncf %150 : vector<2x256xf32> to vector<2x256xbf16>
      %cst_80 = arith.constant dense<0.000000e+00> : vector<2x16xf32>
      %154 = tpu.matmul %153, %151, %cst_80 {dimension_numbers = #tpu.dot_dimension_numbers<[1], [0], [0], [1], [0, 0, 1, 1], [], []>} : vector<2x256xbf16>, vector<256x16xbf16>, vector<2x16xf32> -> vector<2x16xf32>
      %155 = vector.broadcast %152 : vector<1x16xf32> to vector<2x16xf32>
      %156 = arith.addf %154, %155 : vector<2x16xf32>
      %c0_81 = arith.constant 0 : index
      %c0_82 = arith.constant 0 : index
      %157 = vector.load %arg26[%c0_81, %c0_82] : memref<2x16xf32, #tpu.memory_space<vmem>>, vector<2x16xf32>
      tpu.vector_store %arg26[%c0_81, %c0_82], %156 {strides = array<i32>} : memref<2x16xf32, #tpu.memory_space<vmem>>, vector<2x16xf32>,
    } else {
    }
    return
  }
  func.func @transform_0(%arg0: i32) -> (i32, i32) {
    %c0_i32 = arith.constant 0 : i32
    %c0_i32_0 = arith.constant 0 : i32
    %c0_i32_1 = arith.constant 0 : i32
    return %c0_i32, %c0_i32_0 : i32, i32
  }
  func.func @transform_1(%arg0: i32) -> (i32, i32) {
    %c0_i32 = arith.constant 0 : i32
    %c0_i32_0 = arith.constant 0 : i32
    %c0_i32_1 = arith.constant 0 : i32
    return %c0_i32, %c0_i32_0 : i32, i32
  }
  func.func @transform_2(%arg0: i32) -> (i32, i32) {
    %c0_i32 = arith.constant 0 : i32
    %c0_i32_0 = arith.constant 0 : i32
    %c0_i32_1 = arith.constant 0 : i32
    return %c0_i32, %c0_i32_0 : i32, i32
  }
  func.func @transform_3(%arg0: i32) -> (i32, i32) {
    %c0_i32 = arith.constant 0 : i32
    %c0_i32_0 = arith.constant 0 : i32
    %c0_i32_1 = arith.constant 0 : i32
    return %c0_i32, %c0_i32_0 : i32, i32
  }
  func.func @transform_4(%arg0: i32) -> (i32, i32) {
    %c0_i32 = arith.constant 0 : i32
    %c0_i32_0 = arith.constant 0 : i32
    %c0_i32_1 = arith.constant 0 : i32
    return %c0_i32, %c0_i32_0 : i32, i32
  }
  func.func @transform_5(%arg0: i32) -> (i32, i32) {
    %c0_i32 = arith.constant 0 : i32
    %c0_i32_0 = arith.constant 0 : i32
    %c0_i32_1 = arith.constant 0 : i32
    return %c0_i32, %c0_i32_0 : i32, i32
  }
  func.func @transform_6(%arg0: i32) -> (i32, i32, i32) {
    %c0_i32 = arith.constant 0 : i32
    %c0_i32_0 = arith.constant 0 : i32
    %c0_i32_1 = arith.constant 0 : i32
    return %arg0, %c0_i32, %c0_i32_0 : i32, i32, i32
  }
  func.func @transform_7(%arg0: i32) -> (i32, i32, i32) {
    %c0_i32 = arith.constant 0 : i32
    %c0_i32_0 = arith.constant 0 : i32
    %c0_i32_1 = arith.constant 0 : i32
    return %arg0, %c0_i32, %c0_i32_0 : i32, i32, i32
  }
  func.func @transform_8(%arg0: i32) -> (i32, i32, i32) {
    %c0_i32 = arith.constant 0 : i32
    %c0_i32_0 = arith.constant 0 : i32
    %c0_i32_1 = arith.constant 0 : i32
    return %arg0, %c0_i32, %c0_i32_0 : i32, i32, i32
  }
  func.func @transform_9(%arg0: i32) -> (i32, i32, i32) {
    %c0_i32 = arith.constant 0 : i32
    %c0_i32_0 = arith.constant 0 : i32
    %c0_i32_1 = arith.constant 0 : i32
    return %arg0, %c0_i32, %c0_i32_0 : i32, i32, i32
  }
  func.func @transform_10(%arg0: i32) -> (i32, i32, i32) {
    %c0_i32 = arith.constant 0 : i32
    %c0_i32_0 = arith.constant 0 : i32
    %c0_i32_1 = arith.constant 0 : i32
    return %arg0, %c0_i32, %c0_i32_0 : i32, i32, i32
  }
  func.func @transform_11(%arg0: i32) -> (i32, i32, i32) {
    %c0_i32 = arith.constant 0 : i32
    %c0_i32_0 = arith.constant 0 : i32
    %c0_i32_1 = arith.constant 0 : i32
    return %arg0, %c0_i32, %c0_i32_0 : i32, i32, i32
  }
  func.func @transform_12(%arg0: i32) -> (i32, i32, i32) {
    %c0_i32 = arith.constant 0 : i32
    %c0_i32_0 = arith.constant 0 : i32
    %c0_i32_1 = arith.constant 0 : i32
    return %arg0, %c0_i32, %c0_i32_0 : i32, i32, i32
  }
  func.func @transform_13(%arg0: i32) -> (i32, i32, i32) {
    %c0_i32 = arith.constant 0 : i32
    %c0_i32_0 = arith.constant 0 : i32
    %c0_i32_1 = arith.constant 0 : i32
    return %arg0, %c0_i32, %c0_i32_0 : i32, i32, i32
  }
  func.func @transform_14(%arg0: i32) -> (i32, i32, i32) {
    %c0_i32 = arith.constant 0 : i32
    %c0_i32_0 = arith.constant 0 : i32
    %c0_i32_1 = arith.constant 0 : i32
    return %arg0, %c0_i32, %c0_i32_0 : i32, i32, i32
  }
  func.func @transform_15(%arg0: i32) -> (i32, i32, i32) {
    %c0_i32 = arith.constant 0 : i32
    %c0_i32_0 = arith.constant 0 : i32
    %c0_i32_1 = arith.constant 0 : i32
    return %arg0, %c0_i32, %c0_i32_0 : i32, i32, i32
  }
  func.func @transform_16(%arg0: i32) -> (i32, i32, i32) {
    %c0_i32 = arith.constant 0 : i32
    %c0_i32_0 = arith.constant 0 : i32
    %c0_i32_1 = arith.constant 0 : i32
    return %arg0, %c0_i32, %c0_i32_0 : i32, i32, i32
  }
  func.func @transform_17(%arg0: i32) -> (i32, i32, i32) {
    %c0_i32 = arith.constant 0 : i32
    %c0_i32_0 = arith.constant 0 : i32
    %c0_i32_1 = arith.constant 0 : i32
    return %arg0, %c0_i32, %c0_i32_0 : i32, i32, i32
  }
  func.func @transform_18(%arg0: i32) -> (i32, i32) {
    %c0_i32 = arith.constant 0 : i32
    %c0_i32_0 = arith.constant 0 : i32
    %c0_i32_1 = arith.constant 0 : i32
    return %c0_i32, %c0_i32_0 : i32, i32
  }
  func.func @transform_19(%arg0: i32) -> (i32, i32) {
    %c0_i32 = arith.constant 0 : i32
    %c0_i32_0 = arith.constant 0 : i32
    %c0_i32_1 = arith.constant 0 : i32
    return %c0_i32, %c0_i32_0 : i32, i32
  }
  func.func @transform_20(%arg0: i32) -> (i32, i32) {
    %c0_i32 = arith.constant 0 : i32
    %c0_i32_0 = arith.constant 0 : i32
    %c0_i32_1 = arith.constant 0 : i32
    return %c0_i32, %c0_i32_0 : i32, i32
  }
  func.func @transform_21(%arg0: i32) -> (i32, i32) {
    %c0_i32 = arith.constant 0 : i32
    %c0_i32_0 = arith.constant 0 : i32
    %c0_i32_1 = arith.constant 0 : i32
    return %c0_i32, %c0_i32_0 : i32, i32
  }
  func.func @transform_22(%arg0: i32) -> (i32, i32) {
    %c0_i32 = arith.constant 0 : i32
    %c0_i32_0 = arith.constant 0 : i32
    %c0_i32_1 = arith.constant 0 : i32
    return %c0_i32, %c0_i32_0 : i32, i32
  }
  func.func @transform_23(%arg0: i32) -> (i32, i32) {
    %c0_i32 = arith.constant 0 : i32
    %c0_i32_0 = arith.constant 0 : i32
    %c0_i32_1 = arith.constant 0 : i32
    return %c0_i32, %c0_i32_0 : i32, i32
  }
  func.func @transform_24(%arg0: i32) -> (i32, i32) {
    %c0_i32 = arith.constant 0 : i32
    %c0_i32_0 = arith.constant 0 : i32
    %c0_i32_1 = arith.constant 0 : i32
    return %c0_i32, %c0_i32_0 : i32, i32
  }
  func.func @transform_25(%arg0: i32) -> (i32, i32) {
    %c0_i32 = arith.constant 0 : i32
    %c0_i32_0 = arith.constant 0 : i32
    %c0_i32_1 = arith.constant 0 : i32
    return %c0_i32, %c0_i32_0 : i32, i32
  }
}

</mosaic_0001>

<bundles_post_ra>
// kernel: tile.9
= control target key start
LH: loop header
LB: loop body
LE: loop exit
PB: predicated region body
PF: predicated region fallthrough
CT: control target
= control target key end

     0   :  { %s56_s0 = inlined_call_operand.vmem [shape: f32[2,12,128], index: 0, kind: input, shape index: {}]   ;;  %s57_s1 = inlined_call_operand.vmem [shape: f32[24,128], index: 1, kind: output, shape index: {}]  }
   0x1   :  { %v2_v0 = vld [vmem:[%s56_s0] sm:$0xff]   ;;  %v16_v1 = vld [vmem:[%s56_s0 + $0x8] sm:$0xf]   ;;  %v18_v2 = vld [vmem:[%s56_s0 + $0x10] sm:$0xff]  }
   0x2   :  { %3 = vst [vmem:[%s57_s1] sm:$0xff] %v2_v0   ;;  %17 = vst [vmem:[%s57_s1 + $0x8] sm:$0xf] %v16_v1   ;;  %v20_v3 = vld [vmem:[%s56_s0 + $0x18] sm:$0xf]  }
   0x3   :  { %19 = vst [vmem:[%s57_s1 + $0xc] sm:$0xff] %v18_v2   ;;  %21 = vst [vmem:[%s57_s1 + $0x14] sm:$0xf] %v20_v3  }

// kernel: time_bert_regressor_forward.1
= control target key start
LH: loop header
LB: loop body
LE: loop exit
PB: predicated region body
PF: predicated region fallthrough
CT: control target
= control target key end

     0   :  { %s6836_s0 = inlined_call_operand.vmem [shape: f32[24,16], index: 0, kind: input, shape index: {}]   ;;  %s6837_s1 = inlined_call_operand.hbm [shape: bf16[16,128], index: 1, kind: input, shape index: {}]   ;;  %s6838_s2 = inlined_call_operand.hbm [shape: f32[1,128], index: 2, kind: input, shape index: {}]   ;;  %s6839_s3 = inlined_call_operand.vmem [shape: f32[24,128], index: 3, kind: input, shape index: {}]   ;;  %s6840_s4 = inlined_call_operand.hbm [shape: f32[1,128], index: 4, kind: input, shape index: {}]   ;;  %s6841_s5 = inlined_call_operand.hbm [shape: f32[1,128], index: 5, kind: input, shape index: {}]   ;;  %s6842_s6 = inlined_call_operand.hbm [shape: bf16[4,128,384], index: 6, kind: input, shape index: {}]   ;;  %s6843_s7 = inlined_call_operand.hbm [shape: f32[4,1,384], index: 7, kind: input, shape index: {}]   ;;  %s6844_s8 = inlined_call_operand.vmem [shape: bf16[4,128,128], index: 8, kind: input, shape index: {}]   ;;  %s6845_s9 = inlined_call_operand.hbm [shape: f32[4,1,128], index: 9, kind: input, shape index: {}]   ;;  %s6846_s10 = inlined_call_operand.hbm [shape: f32[4,1,128], index: 10, kind: input, shape index: {}]   ;;  %s6847_s11 = inlined_call_operand.hbm [shape: f32[4,1,128], index: 11, kind: input, shape index: {}]   ;;  %s6848_s12 = inlined_call_operand.hbm [shape: bf16[4,128,256], index: 12, kind: input, shape index: {}]   ;;  %s6849_s13 = inlined_call_operand.hbm [shape: f32[4,1,256], index: 13, kind: input, shape index: {}]   ;;  %s6850_s14 = inlined_call_operand.hbm [shape: bf16[4,256,128], index: 14, kind: input, shape index: {}]   ;;  %s6851_s15 = inlined_call_operand.hbm [shape: f32[4,1,128], index: 15, kind: input, shape index: {}]   ;;  %s6852_s16 = inlined_call_operand.hbm [shape: f32[4,1,128], index: 16, kind: input, shape index: {}]   ;;  %s6853_s17 = inlined_call_operand.hbm [shape: f32[4,1,128], index: 17, kind: input, shape index: {}]   ;;  %s6854_s18 = inlined_call_operand.hbm [shape: bf16[128,256], index: 18, kind: input, shape index: {}]   ;;  %s6855_s19 = inlined_call_operand.hbm [shape: f32[1,256], index: 19, kind: input, shape index: {}]   ;;  %s6856_s20 = inlined_call_operand.vmem [shape: bf16[256,16], index: 20, kind: input, shape index: {}]   ;;  %s6857_s21 = inlined_call_operand.hbm [shape: f32[1,16], index: 21, kind: input, shape index: {}]   ;;  %s6858_s22 = inlined_call_operand.hbm [shape: f32[192,128], index: 22, kind: input, shape index: {}]   ;;  %s6859_s23 = inlined_call_operand.vmem [shape: f32[192,24], index: 23, kind: input, shape index: {}]   ;;  %s6860_s24 = inlined_call_operand.vmem [shape: f32[2,24], index: 24, kind: input, shape index: {}]   ;;  %s6861_s25 = inlined_call_operand.hbm [shape: f32[2,16], index: 25, kind: output, shape index: {}]  }
   0x1   :  { %6916 = sst [smem:[#allocation43_spill]] %s6836_s0 }
   0x2   :  { %6917 = sst [smem:[#allocation44_spill]] %s6837_s1 }
   0x3   :  { %6918 = sst [smem:[#allocation45_spill]] %s6838_s2 }
   0x4   :  { %6919 = sst [smem:[#allocation46_spill]] %s6839_s3 }
   0x5   :  { %6920 = sst [smem:[#allocation47_spill]] %s6840_s4 }
   0x6   :  { %6921 = sst [smem:[#allocation48_spill]] %s6841_s5 }
   0x7   :  { %6922 = sst [smem:[#allocation49_spill]] %s6842_s6 }
   0x8   :  { %6923 = sst [smem:[#allocation50_spill]] %s6843_s7 }
   0x9   :  { %6924 = sst [smem:[#allocation51_spill]] %s6844_s8 }
   0xa   :  { %6925 = sst [smem:[#allocation52_spill]] %s6845_s9 }
   0xb   :  { %6926 = sst [smem:[#allocation53_spill]] %s6846_s10 }
   0xc   :  { %6927 = sst [smem:[#allocation54_spill]] %s6847_s11 }
   0xd   :  { %6928 = sst [smem:[#allocation55_spill]] %s6848_s12 }
   0xe   :  { %6929 = sst [smem:[#allocation56_spill]] %s6849_s13 }
   0xf   :  { %6930 = sst [smem:[#allocation57_spill]] %s6850_s14 }
  0x10   :  { %6931 = sst [smem:[#allocation58_spill]] %s6851_s15 }
  0x11   :  { %6932 = sst [smem:[#allocation59_spill]] %s6853_s17 }
  0x12   :  { %6933 = sst [smem:[#allocation60_spill]] %s6854_s18 }
  0x13   :  { %6934 = sst [smem:[#allocation61_spill]] %s6855_s19 }
  0x14   :  { %6935 = sst [smem:[#allocation62_spill]] %s6856_s20 }
  0x15   :  { %6936 = sst [smem:[#allocation63_spill]] %s6858_s22 }
  0x16   :  { %6937 = sst [smem:[#allocation64_spill]] %s6859_s23 }
  0x17   :  { %6938 = sst [smem:[#allocation65_spill]] %s6860_s24 }
  0x18   :  { %6939 = sst [smem:[#allocation66_spill]] %s6861_s25 }
  0x19   :  { %30 = vsyncpa [#allocation4], 0 }
  0x1a   :  { %31 = vsyncpa [#allocation7], 0 }
  0x1b   :  { %32 = vsyncpa [#allocation10], 0 }
  0x1c   :  { %33 = vsyncpa [#allocation25], 0 }
  0x1d   :  { %34 = vsyncpa [#allocation5], 0  ;;  %s5637_s29 = smov 0   ;;  %s5639_s2 = smov 0  }
  0x1e   :  { %s5641_s6 = smov 0   ;;  %s5643_s30 = smov 0  }
  0x1f LB: > { %6940 = sst [smem:[#allocation36_spill]] %s5466_s2  ;;  %s5656_s7 = sadd.s32 4294967295, %s5474_s30   ;;  %s5474_s30 = sphi %s5643_s30, %s7023_s30   ;;  %s5470_s6 = sphi %s5641_s6, %s7026_s6   ;;  %s5466_s2 = sphi %s5639_s2, %s7025_s2   ;;  %s5462_s29 = sphi %s5637_s29, %s7024_s29  }
  0x20   : > { %6941 = sst [smem:[#allocation37_spill]] %s5470_s6  ;;  %p186_p0 = scmp.ne.s32.totalorder %s5466_s2, %s5462_s29 }
  0x21   : > { %6942 = sst [smem:[#allocation38_spill]] %s5656_s7  ;;  %p6879_p1 = scmp.eq.s32.totalorder %s5656_s7, 0 }
  0x22   : > { %p3895_p2 = scmp.ge.s32.totalorder %s5474_s30, 1  ;;  %p651_p3 = scmp.lt.s32.totalorder %s5474_s30, 5 }
  0x23   : > { %p5665_p5 = por %p6879_p1, %p186_p0  ;;  %s5476_s1 = smov [#allocation3]  }
  0x24   : > { %p5669_p6 = pnand %p3895_p2, %p651_p3  ;;  %s666_s8 = sshll.u32 %s5476_s1, 4  ;;  %s667_s8 = int_to_ptr.vmem [resolvable:$true] %s666_s8 }
  0x25   : > { %s6943_s3 = scalar_select %p5665_p5, 1, 0 }
  0x26   : > { %s6945_s26 = scalar_select %p5669_p6, 1, 0 }
  0x27   : > { %6944 = sst [smem:[#allocation39_spill]] %s6943_s3  ;;  %p4429_p7 = pneg %p5669_p6 }
  0x28   : > { %6946 = sst [smem:[#allocation40_spill]] %s6945_s26  ;;  %s5682_s4 = sadd.s32 1, %s5474_s30  }
  0x29   : > { %p5677_p8 = pnand %p4429_p7, %p6879_p1  ;;  %6948 = sst [smem:[#allocation41_spill]] %s5682_s4 }
  0x2a   : > { %s173_s28 = sadd.s32 1, %s5470_s6  ;;  %s170_s9 = ssub.s32 %s5474_s30, %s5682_s4 }
  0x2b   : > { %s6947_s27 = scalar_select %p5677_p8, 1, 0 }
  0x2c   : > { %s6949_s29 = sld [smem:[#allocation44_spill]]  ;;  %p5695_p10 = pneg %p5677_p8 }
  0x2e   : > { %s6951_s23 = scalar_select %p5695_p10, 1, 0 }
  0x32   : > { %s6950_s25 = smov %s6949_s29  ;;  %s4832_s20 = scalar_lea.hbm %s6949_s29, 128 }
  0x33   : > { %p4833_p9 = scmp.ne.s32.totalorder %s6950_s25, %s4832_s20  ;;  %p4839_p13 = scmp.lt.u32.totalorder %s4832_s20, %s6950_s25 }
  0x35   : > { %p4835_p11 = pnand %p5695_p10, %p4833_p9 }
  0x37   : > { %p4836_p12 = pneg %p4835_p11 }
  0x39   : > { %p4841_p0 = pnand %p4839_p13, %p4836_p12 }
  0x3b   : > { %4844 = shalt.err (!%p4841_p0)
}
  0x3c   : > { %s4845_s5 = scalar_lea.vmem %s667_s8, 128  ;;  %p4853_p4 = scmp.lt.s32.totalorder %s667_s8, %s667_s8 }
  0x3d   : > { %p4846_p2 = scmp.ne.s32.totalorder %s667_s8, %s4845_s5  ;;  %p4854_p1 = scmp.lt.s32.totalorder %s4845_s5, %s4845_s5 }
  0x3f   : > { %p4848_p3 = pnand %p4846_p2, %p5695_p10  ;;  %p4855_p5 = por %p4854_p1, %p4853_p4 }
  0x41   : > { %p4849_p7 = pneg %p4848_p3 }
  0x43   : > { %p4856_p6 = pnand %p4855_p5, %p4849_p7 }
  0x45   : > { %4859 = shalt.err (!%p4856_p6)
}
  0x46   : > { %s6885_s24 = smov 64   ;;  %s6886_s20 = smov 4  }
  0x47   : > { %4432 = dma.hbm_to_vmem [thread:$0]  (!%p5677_p8), %s6950_s25, 128, %s667_s8, [#allocation4], %s6885_s24, %s6885_s24, %s6886_s20  }
  0x48   : > { %p171_p1 = scmp.eq.s32.totalorder %s170_s9, 0  ;;  %p180_p4 = scmp.ne.s32.totalorder %s5470_s6, %s5466_s2 }
  0x49   : > { %p181_p5 = scmp.eq.s32.totalorder %s5474_s30, 0  ;;  %p4496_p6 = scmp.lt.s32.totalorder %s5474_s30, 4 }
  0x4a   : > { %s5719_s0 = scalar_select %p171_p1, %s5470_s6, %s173_s28  }
  0x4b   : > { %p182_p9 = por %p181_p5, %p180_p4  ;;  %s773_s29 = sand.u32 1, %s5474_s30  }
  0x4c   : > { %6952 = sst [smem:[#allocation42_spill]] %s5719_s0  ;;  %s5723_s1 = sand.u32 1, %s5470_s6  }
  0x4d   : > { %s4365_s5 = smul.u32 192, %s5723_s1  ;;  %p5726_p11 = pnand %p4496_p6, %p182_p9 }
  0x4e   : > { %s4366_s26 = smul.u32 3072, %s5474_s30  ;;  %s6954_s9 = sld [smem:[#allocation49_spill]] }
  0x4f   : > { %s6953_s4 = scalar_select %p5726_p11, 1, 0 }
  0x50   : > { %s777_s28 = scalar_lea.vmem [#allocation11], %s4365_s5  ;;  %s5738_s20 = scalar_lea.sflag [#allocation4], %s773_s29 }
  0x51   : > { %s784_s24 = sshll.u32 %s777_s28, 4  ;;  %p5744_p13 = pneg %p5726_p11  ;;  %s5736_s24 = int_to_ptr.vmem [resolvable:$true] %s784_s24 }
  0x53   : > { %s6955_s0 = scalar_select %p5744_p13, 1, 0 }
  0x54   : > { %s5734_s3 = scalar_lea.hbm %s6954_s9, %s4366_s26  ;;  %s4865_s5 = scalar_lea.hbm %s6954_s9, 12288 }
  0x55   : > { %s4860_s25 = scalar_lea.hbm %s5734_s3, 3072  ;;  %p4866_p3 = scmp.lt.u32.totalorder %s5734_s3, %s6954_s9 }
  0x56   : > { %p4861_p12 = scmp.ne.s32.totalorder %s5734_s3, %s4860_s25  ;;  %p4867_p7 = scmp.lt.u32.totalorder %s4865_s5, %s4860_s25 }
  0x57   : > { %p4869_p4 = scmp.lt.u32.totalorder %s4860_s25, %s5734_s3 }
  0x58   : > { %p4863_p0 = pnand %p5744_p13, %p4861_p12  ;;  %p4868_p1 = por %p4867_p7, %p4866_p3 }
  0x5a   : > { %p4864_p2 = pneg %p4863_p0  ;;  %p4870_p5 = por %p4869_p4, %p4868_p1 }
  0x5c   : > { %p4871_p6 = pnand %p4870_p5, %p4864_p2 }
  0x5e   : > { %4874 = shalt.err (!%p4871_p6)
}
  0x5f   : > { %s4875_s29 = scalar_lea.vmem %s5736_s24, 3072  ;;  %s5479_s26 = smov [#allocation11]  }
  0x60   : > { %p4876_p9 = scmp.ne.s32.totalorder %s5736_s24, %s4875_s29  ;;  %s4880_s7 = sshll.u32 %s5479_s26, 4  ;;  %s4881_s7 = int_to_ptr.vmem [resolvable:$false] %s4880_s7 }
  0x61   : > { %s4882_s8 = scalar_lea.vmem %s4881_s7, 6144  ;;  %p4883_p8 = scmp.lt.s32.totalorder %s5736_s24, %s4881_s7 }
  0x62   : > { %p4878_p12 = pnand %p4876_p9, %p5744_p13  ;;  %p4884_p10 = scmp.lt.s32.totalorder %s4882_s8, %s4875_s29 }
  0x64   : > { %p4879_p0 = pneg %p4878_p12  ;;  %p4885_p3 = por %p4884_p10, %p4883_p8 }
  0x66   : > { %p4886_p7 = pnand %p4885_p3, %p4879_p0 }
  0x68   : > { %4889 = shalt.err (!%p4886_p7)
}
  0x69   : > { %s5480_s25 = smov 192   ;;  %s5481_s5 = smov 12  }
  0x6a   : > { %4457 = dma.hbm_to_vmem [thread:$0]  (!%p5726_p11), %s5734_s3, 3072, %s5736_s24, %s5738_s20, %s5480_s25, %s5480_s25, %s5481_s5  }
  0x6b   : > { %s4367_s28 = smul.u32 3, %s5723_s1  ;;  %s5771_s7 = sshll.u32 %s5474_s30, 4 }
  0x6c   : > { %s4368_s26 = smul.u32 48, %s5474_s30  ;;  %s6956_s9 = sld [smem:[#allocation52_spill]] }
  0x6d   : > { %s6957_s17 = sld [smem:[#allocation50_spill]]  ;;  %s798_s24 = scalar_lea.vmem [#allocation12], %s4367_s28 }
  0x6e   : > { %s806_s3 = sshll.u32 %s798_s24, 4  ;;  %s824_s25 = scalar_lea.vmem [#allocation13], %s5723_s1  ;;  %s5784_s3 = int_to_ptr.vmem [resolvable:$true] %s806_s3 }
  0x6f   : > { %s831_s5 = sshll.u32 %s824_s25, 4  ;;  %s832_s5 = int_to_ptr.vmem [resolvable:$true] %s831_s5 }
  0x72   : > { %s5777_s6 = scalar_lea.hbm %s6956_s9, %s5771_s7 }
  0x73   : > { %s5782_s19 = scalar_lea.hbm %s6957_s17, %s4368_s26  ;;  %s4895_s22 = scalar_lea.hbm %s6957_s17, 192 }
  0x74   : > { %s4890_s18 = scalar_lea.hbm %s5782_s19, 48  ;;  %p4896_p1 = scmp.lt.u32.totalorder %s5782_s19, %s6957_s17 }
  0x75   : > { %p4891_p8 = scmp.ne.s32.totalorder %s5782_s19, %s4890_s18  ;;  %p4897_p4 = scmp.lt.u32.totalorder %s4895_s22, %s4890_s18 }
  0x76   : > { %p4899_p6 = scmp.lt.u32.totalorder %s4890_s18, %s5782_s19 }
  0x77   : > { %p4893_p10 = pnand %p4891_p8, %p5744_p13  ;;  %p4898_p5 = por %p4897_p4, %p4896_p1 }
  0x79   : > { %p4894_p2 = pneg %p4893_p10  ;;  %p4900_p9 = por %p4899_p6, %p4898_p5 }
  0x7b   : > { %p4901_p12 = pnand %p4900_p9, %p4894_p2 }
  0x7d   : > { %4904 = shalt.err (!%p4901_p12)
}
  0x7e   : > { %s4905_s28 = scalar_lea.vmem %s5784_s3, 48  ;;  %s5482_s24 = smov [#allocation12]  }
  0x7f   : > { %p4906_p0 = scmp.ne.s32.totalorder %s5784_s3, %s4905_s28  ;;  %s4910_s25 = sshll.u32 %s5482_s24, 4  ;;  %s4911_s25 = int_to_ptr.vmem [resolvable:$false] %s4910_s25 }
  0x80   : > { %s4912_s29 = scalar_lea.vmem %s4911_s25, 96  ;;  %p4913_p8 = scmp.lt.s32.totalorder %s5784_s3, %s4911_s25 }
  0x81   : > { %p4908_p3 = pnand %p4906_p0, %p5744_p13  ;;  %p4914_p10 = scmp.lt.s32.totalorder %s4912_s29, %s4905_s28 }
  0x83   : > { %p4909_p7 = pneg %p4908_p3  ;;  %p4915_p1 = por %p4914_p10, %p4913_p8 }
  0x85   : > { %p4916_p4 = pnand %p4915_p1, %p4909_p7 }
  0x87   : > { %4919 = shalt.err (!%p4916_p4)
}
  0x88   : > { %4460 = dma.hbm_to_vmem [thread:$0]  (!%p5726_p11), %s5782_s19, 48, %s5784_s3, %s5738_s20  }
  0x89   : > { %s4920_s18 = scalar_lea.hbm %s5777_s6, 16  ;;  %s4925_s2 = scalar_lea.hbm %s6956_s9, 64 }
  0x8a   : > { %p4921_p2 = scmp.ne.s32.totalorder %s5777_s6, %s4920_s18  ;;  %p4926_p9 = scmp.lt.u32.totalorder %s5777_s6, %s6956_s9 }
  0x8b   : > { %p4927_p12 = scmp.lt.u32.totalorder %s4925_s2, %s4920_s18  ;;  %p4929_p3 = scmp.lt.u32.totalorder %s4920_s18, %s5777_s6 }
  0x8c   : > { %p4923_p5 = pnand %p4921_p2, %p5744_p13 }
  0x8d   : > { %p4928_p0 = por %p4927_p12, %p4926_p9 }
  0x8e   : > { %p4924_p6 = pneg %p4923_p5 }
  0x8f   : > { %p4930_p7 = por %p4929_p3, %p4928_p0 }
  0x91   : > { %p4931_p8 = pnand %p4930_p7, %p4924_p6 }
  0x93   : > { %4934 = shalt.err (!%p4931_p8)
}
  0x94   : > { %s4935_s19 = scalar_lea.vmem %s832_s5, 16  ;;  %s5483_s3 = smov [#allocation13]  }
  0x95   : > { %p4936_p10 = scmp.ne.s32.totalorder %s832_s5, %s4935_s19  ;;  %s4940_s24 = sshll.u32 %s5483_s3, 4  ;;  %s4941_s24 = int_to_ptr.vmem [resolvable:$false] %s4940_s24 }
  0x96   : > { %s4942_s25 = scalar_lea.vmem %s4941_s24, 32  ;;  %p4943_p2 = scmp.lt.s32.totalorder %s832_s5, %s4941_s24 }
  0x97   : > { %p4938_p1 = pnand %p4936_p10, %p5744_p13  ;;  %p4944_p5 = scmp.lt.s32.totalorder %s4942_s25, %s4935_s19 }
  0x99   : > { %p4939_p4 = pneg %p4938_p1  ;;  %p4945_p11 = por %p4944_p5, %p4943_p2 }
  0x9b   : > { %p4946_p9 = pnand %p4945_p11, %p4939_p4 }
  0x9d   : > { %4949 = shalt.err (!%p4946_p9)
}
  0x9e   : > { %p6958_p12 = scmp.ne.s32.totalorder %s6953_s4, 0  ;;  %s6959_s10 = sld [smem:[#allocation53_spill]] }
  0x9f   : > { %s841_s22 = scalar_lea.vmem [#allocation14], %s5723_s1 }
  0xa0   : > { %4463 = dma.hbm_to_vmem [thread:$0]  (!%p6958_p12), %s5777_s6, 16, %s832_s5, %s5738_s20  }
  0xa1   : > { %s848_s2 = sshll.u32 %s841_s22, 4  ;;  %s849_s2 = int_to_ptr.vmem [resolvable:$true] %s848_s2 }
  0xa4   : > { %s5831_s8 = scalar_lea.hbm %s6959_s10, %s5771_s7  ;;  %s4955_s6 = scalar_lea.hbm %s6959_s10, 64 }
  0xa5   : > { %s4950_s26 = scalar_lea.hbm %s5831_s8, 16  ;;  %p4956_p3 = scmp.lt.u32.totalorder %s5831_s8, %s6959_s10 }
  0xa6   : > { %p4951_p11 = scmp.ne.s32.totalorder %s5831_s8, %s4950_s26  ;;  %p4957_p7 = scmp.lt.u32.totalorder %s4955_s6, %s4950_s26 }
  0xa7   : > { %p4959_p10 = scmp.lt.u32.totalorder %s4950_s26, %s5831_s8 }
  0xa8   : > { %p4953_p6 = pnand %p4951_p11, %p5744_p13  ;;  %p4958_p8 = por %p4957_p7, %p4956_p3 }
  0xaa   : > { %p4954_p0 = pneg %p4953_p6  ;;  %p4960_p1 = por %p4959_p10, %p4958_p8 }
  0xac   : > { %p4961_p4 = pnand %p4960_p1, %p4954_p0 }
  0xae   : > { %4964 = shalt.err (!%p4961_p4)
}
  0xaf   : > { %s4965_s24 = scalar_lea.vmem %s849_s2, 16  ;;  %s5484_s25 = smov [#allocation14]  }
  0xb0   : > { %p4966_p2 = scmp.ne.s32.totalorder %s849_s2, %s4965_s24  ;;  %s4970_s29 = sshll.u32 %s5484_s25, 4  ;;  %s4971_s29 = int_to_ptr.vmem [resolvable:$false] %s4970_s29 }
  0xb1   : > { %s4972_s18 = scalar_lea.vmem %s4971_s29, 32  ;;  %p4973_p11 = scmp.lt.s32.totalorder %s849_s2, %s4971_s29 }
  0xb2   : > { %p4968_p5 = pnand %p4966_p2, %p5744_p13  ;;  %p4974_p6 = scmp.lt.s32.totalorder %s4972_s18, %s4965_s24 }
  0xb4   : > { %p4969_p9 = pneg %p4968_p5  ;;  %p4975_p12 = por %p4974_p6, %p4973_p11 }
  0xb6   : > { %p4976_p3 = pnand %p4975_p12, %p4969_p9 }
  0xb8   : > { %4979 = shalt.err (!%p4976_p3)
}
  0xb9   : > { %p6960_p7 = scmp.ne.s32.totalorder %s6953_s4, 0  ;;  %s6961_s11 = sld [smem:[#allocation54_spill]] }
  0xba   : > { %s858_s19 = scalar_lea.vmem [#allocation15], %s5723_s1 }
  0xbb   : > { %4466 = dma.hbm_to_vmem [thread:$0]  (!%p6960_p7), %s5831_s8, 16, %s849_s2, %s5738_s20  }
  0xbc   : > { %s865_s6 = sshll.u32 %s858_s19, 4  ;;  %s866_s6 = int_to_ptr.vmem [resolvable:$true] %s865_s6 }
  0xbf   : > { %s5856_s28 = scalar_lea.hbm %s6961_s11, %s5771_s7  ;;  %s4985_s8 = scalar_lea.hbm %s6961_s11, 64 }
  0xc0   : > { %s4980_s5 = scalar_lea.hbm %s5856_s28, 16  ;;  %p4986_p10 = scmp.lt.u32.totalorder %s5856_s28, %s6961_s11 }
  0xc1   : > { %p4981_p12 = scmp.ne.s32.totalorder %s5856_s28, %s4980_s5  ;;  %p4987_p1 = scmp.lt.u32.totalorder %s4985_s8, %s4980_s5 }
  0xc2   : > { %p4989_p2 = scmp.lt.u32.totalorder %s4980_s5, %s5856_s28 }
  0xc3   : > { %p4983_p0 = pnand %p4981_p12, %p5744_p13  ;;  %p4988_p4 = por %p4987_p1, %p4986_p10 }
  0xc5   : > { %p4984_p8 = pneg %p4983_p0  ;;  %p4990_p5 = por %p4989_p2, %p4988_p4 }
  0xc7   : > { %p4991_p9 = pnand %p4990_p5, %p4984_p8 }
  0xc9   : > { %4994 = shalt.err (!%p4991_p9)
}
  0xca   : > { %s4995_s29 = scalar_lea.vmem %s866_s6, 16  ;;  %s5485_s18 = smov [#allocation15]  }
  0xcb   : > { %p4996_p11 = scmp.ne.s32.totalorder %s866_s6, %s4995_s29  ;;  %s5000_s22 = sshll.u32 %s5485_s18, 4  ;;  %s5001_s22 = int_to_ptr.vmem [resolvable:$false] %s5000_s22 }
  0xcc   : > { %s5002_s26 = scalar_lea.vmem %s5001_s22, 32  ;;  %p5003_p12 = scmp.lt.s32.totalorder %s866_s6, %s5001_s22 }
  0xcd   : > { %p4998_p6 = pnand %p4996_p11, %p5744_p13  ;;  %p5004_p0 = scmp.lt.s32.totalorder %s5002_s26, %s4995_s29 }
  0xcf   : > { %p4999_p3 = pneg %p4998_p6  ;;  %p5005_p7 = por %p5004_p0, %p5003_p12 }
  0xd1   : > { %p5006_p1 = pnand %p5005_p7, %p4999_p3 }
  0xd3   : > { %5009 = shalt.err (!%p5006_p1)
}
  0xd4   : > { %p6962_p10 = scmp.ne.s32.totalorder %s6953_s4, 0  ;;  %s6901_s19 = sshll.u32 %s5723_s1, 7 }
  0xd5   : > { %s4076_s5 = sshll.u32 %s5474_s30, 11  ;;  %s6963_s12 = sld [smem:[#allocation55_spill]] }
  0xd6   : > { %4469 = dma.hbm_to_vmem [thread:$0]  (!%p6962_p10), %s5856_s28, 16, %s866_s6, %s5738_s20  }
  0xd7   : > { %s876_s2 = scalar_lea.vmem [#allocation16], %s6901_s19  ;;  %s3913_s29 = sshll.u32 %s5723_s1, 1 }
  0xd8   : > { %s883_s25 = sshll.u32 %s876_s2, 4  ;;  %s5888_s25 = int_to_ptr.vmem [resolvable:$true] %s883_s25 }
  0xdb   : > { %s5884_s8 = scalar_lea.hbm %s6963_s12, %s4076_s5  ;;  %s5015_s22 = scalar_lea.hbm %s6963_s12, 8192 }
  0xdc   : > { %s5010_s18 = scalar_lea.hbm %s5884_s8, 2048  ;;  %p5016_p2 = scmp.lt.u32.totalorder %s5884_s8, %s6963_s12 }
  0xdd   : > { %p5011_p7 = scmp.ne.s32.totalorder %s5884_s8, %s5010_s18  ;;  %p5017_p5 = scmp.lt.u32.totalorder %s5015_s22, %s5010_s18 }
  0xde   : > { %p5019_p11 = scmp.lt.u32.totalorder %s5010_s18, %s5884_s8 }
  0xdf   : > { %p5013_p8 = pnand %p5011_p7, %p5744_p13  ;;  %p5018_p9 = por %p5017_p5, %p5016_p2 }
  0xe1   : > { %p5014_p4 = pneg %p5013_p8  ;;  %p5020_p6 = por %p5019_p11, %p5018_p9 }
  0xe3   : > { %p5021_p3 = pnand %p5020_p6, %p5014_p4 }
  0xe5   : > { %5024 = shalt.err (!%p5021_p3)
}
  0xe6   : > { %s5025_s24 = scalar_lea.vmem %s5888_s25, 2048  ;;  %s5486_s2 = smov [#allocation16]  }
  0xe7   : > { %p5026_p12 = scmp.ne.s32.totalorder %s5888_s25, %s5025_s24  ;;  %s5030_s28 = sshll.u32 %s5486_s2, 4  ;;  %s5031_s28 = int_to_ptr.vmem [resolvable:$false] %s5030_s28 }
  0xe8   : > { %s5032_s6 = scalar_lea.vmem %s5031_s28, 4096  ;;  %p5033_p7 = scmp.lt.s32.totalorder %s5888_s25, %s5031_s28 }
  0xe9   : > { %p5028_p0 = pnand %p5026_p12, %p5744_p13  ;;  %p5034_p8 = scmp.lt.s32.totalorder %s5032_s6, %s5025_s24 }
  0xeb   : > { %p5029_p1 = pneg %p5028_p0  ;;  %p5035_p2 = por %p5034_p8, %p5033_p7 }
  0xed   : > { %p5036_p5 = pnand %p5035_p2, %p5029_p1 }
  0xef   : > { %5039 = shalt.err (!%p5036_p5)
}
  0xf0   : > { %s6902_s18 = smov 128   ;;  %s6905_s22 = smov 8  }
  0xf1   : > { %4472 = dma.hbm_to_vmem [thread:$0]  (!%p6962_p10), %s5884_s8, 2048, %s5888_s25, %s5738_s20, %s6902_s18, %s6902_s18, %s6905_s22  }
  0xf2   : > { %s4077_s26 = sshll.u32 %s5474_s30, 5  ;;  %s6964_s13 = sld [smem:[#allocation56_spill]] }
  0xf3   : > { %s897_s28 = scalar_lea.vmem [#allocation17], %s3913_s29 }
  0xf4   : > { %s905_s6 = sshll.u32 %s897_s28, 4  ;;  %s906_s6 = int_to_ptr.vmem [resolvable:$true] %s905_s6 }
  0xf8   : > { %s5920_s2 = scalar_lea.hbm %s6964_s13, %s4077_s26  ;;  %s5045_s18 = scalar_lea.hbm %s6964_s13, 128 }
  0xf9   : > { %s5040_s19 = scalar_lea.hbm %s5920_s2, 32  ;;  %p5046_p6 = scmp.lt.u32.totalorder %s5920_s2, %s6964_s13 }
  0xfa   : > { %p5041_p4 = scmp.ne.s32.totalorder %s5920_s2, %s5040_s19  ;;  %p5047_p3 = scmp.lt.u32.totalorder %s5045_s18, %s5040_s19 }
  0xfb   : > { %p5049_p0 = scmp.lt.u32.totalorder %s5040_s19, %s5920_s2 }
  0xfc   : > { %p5043_p9 = pnand %p5041_p4, %p5744_p13  ;;  %p5048_p12 = por %p5047_p3, %p5046_p6 }
  0xfe   : > { %p5044_p11 = pneg %p5043_p9  ;;  %p5050_p1 = por %p5049_p0, %p5048_p12 }
 0x100   : > { %p5051_p7 = pnand %p5050_p1, %p5044_p11 }
 0x102   : > { %5054 = shalt.err (!%p5051_p7)
}
 0x103   : > { %s5055_s29 = scalar_lea.vmem %s906_s6, 32  ;;  %s5489_s24 = smov [#allocation17]  }
 0x104   : > { %p5056_p8 = scmp.ne.s32.totalorder %s906_s6, %s5055_s29  ;;  %s5060_s28 = sshll.u32 %s5489_s24, 4  ;;  %s5061_s28 = int_to_ptr.vmem [resolvable:$false] %s5060_s28 }
 0x105   : > { %s5062_s8 = scalar_lea.vmem %s5061_s28, 64  ;;  %p5063_p4 = scmp.lt.s32.totalorder %s906_s6, %s5061_s28 }
 0x106   : > { %p5058_p2 = pnand %p5056_p8, %p5744_p13  ;;  %p5064_p9 = scmp.lt.s32.totalorder %s5062_s8, %s5055_s29 }
 0x108   : > { %p5059_p5 = pneg %p5058_p2  ;;  %p5065_p10 = por %p5064_p9, %p5063_p4 }
 0x10a   : > { %p5066_p3 = pnand %p5065_p10, %p5059_p5 }
 0x10c   : > { %5069 = shalt.err (!%p5066_p3)
}
 0x10d   : > { %p6965_p6 = scmp.ne.s32.totalorder %s6953_s4, 0  ;;  %s6966_s14 = sld [smem:[#allocation57_spill]] }
 0x10e   : > { %s6967_s3 = sshll.u32 %s5723_s1, 7 }
 0x10f   : > { %4475 = dma.hbm_to_vmem [thread:$0]  (!%p6965_p6), %s5920_s2, 32, %s906_s6, %s5738_s20  }
 0x110   : > { %s916_s26 = scalar_lea.vmem [#allocation18], %s6967_s3 }
 0x111   : > { %s923_s29 = sshll.u32 %s916_s26, 4  ;;  %s5951_s29 = int_to_ptr.vmem [resolvable:$true] %s923_s29 }
 0x113   : > { %s5947_s25 = scalar_lea.hbm %s6966_s14, %s4076_s5  ;;  %s5075_s6 = scalar_lea.hbm %s6966_s14, 8192 }
 0x114   : > { %s5070_s24 = scalar_lea.hbm %s5947_s25, 2048  ;;  %p5076_p0 = scmp.lt.u32.totalorder %s5947_s25, %s6966_s14 }
 0x115   : > { %p5071_p10 = scmp.ne.s32.totalorder %s5947_s25, %s5070_s24  ;;  %p5077_p1 = scmp.lt.u32.totalorder %s5075_s6, %s5070_s24 }
 0x116   : > { %p5079_p8 = scmp.lt.u32.totalorder %s5070_s24, %s5947_s25 }
 0x117   : > { %p5073_p11 = pnand %p5071_p10, %p5744_p13  ;;  %p5078_p7 = por %p5077_p1, %p5076_p0 }
 0x119   : > { %p5074_p12 = pneg %p5073_p11  ;;  %p5080_p2 = por %p5079_p8, %p5078_p7 }
 0x11b   : > { %p5081_p5 = pnand %p5080_p2, %p5074_p12 }
 0x11d   : > { %5084 = shalt.err (!%p5081_p5)
}
 0x11e   : > { %s5085_s8 = scalar_lea.vmem %s5951_s29, 2048  ;;  %s5490_s19 = smov [#allocation18]  }
 0x11f   : > { %p5086_p4 = scmp.ne.s32.totalorder %s5951_s29, %s5085_s8  ;;  %s5090_s18 = sshll.u32 %s5490_s19, 4  ;;  %s5091_s18 = int_to_ptr.vmem [resolvable:$false] %s5090_s18 }
 0x120   : > { %s5092_s3 = scalar_lea.vmem %s5091_s18, 4096  ;;  %p5093_p10 = scmp.lt.s32.totalorder %s5951_s29, %s5091_s18 }
 0x121   : > { %p5088_p9 = pnand %p5086_p4, %p5744_p13  ;;  %p5094_p11 = scmp.lt.s32.totalorder %s5092_s3, %s5085_s8 }
 0x123   : > { %p5089_p3 = pneg %p5088_p9  ;;  %p5095_p0 = por %p5094_p11, %p5093_p10 }
 0x125   : > { %p5096_p1 = pnand %p5095_p0, %p5089_p3 }
 0x127   : > { %5099 = shalt.err (!%p5096_p1)
}
 0x128   : > { %s6968_s26 = smov 4   ;;  %s6969_s24 = smov 64  }
 0x129   : > { %4478 = dma.hbm_to_vmem [thread:$0]  (!%p6965_p6), %s5947_s25, 2048, %s5951_s29, %s5738_s20, %s6969_s24, %s6969_s24, %s6968_s26  }
 0x12a   : > { %s5491_s30 = smov [#allocation6]   ;;  %s6970_s15 = sld [smem:[#allocation58_spill]] }
 0x12b   : > { %s680_s2 = sshll.u32 %s5491_s30, 4  ;;  %s6971_s18 = sld [smem:[#allocation45_spill]]  ;;  %s681_s2 = int_to_ptr.vmem [resolvable:$true] %s680_s2 }
 0x12c   : > { %p6972_p7 = scmp.ne.s32.totalorder %s6951_s23, 0 }
 0x130   : > { %s5982_s28 = scalar_lea.hbm %s6970_s15, %s5771_s7 }
 0x131   : > { %s5100_s3 = scalar_lea.hbm %s6971_s18, 16 }
 0x132   : > { %p5101_p12 = scmp.ne.s32.totalorder %s6971_s18, %s5100_s3  ;;  %p5107_p5 = scmp.lt.u32.totalorder %s5100_s3, %s6971_s18 }
 0x134   : > { %p5103_p8 = pnand %p5101_p12, %p6972_p7 }
 0x136   : > { %p5104_p2 = pneg %p5103_p8 }
 0x138   : > { %p5109_p4 = pnand %p5107_p5, %p5104_p2 }
 0x13a   : > { %5112 = shalt.err (!%p5109_p4)
}
 0x13b   : > { %s5113_s26 = scalar_lea.vmem %s681_s2, 16  ;;  %s5120_s24 = scalar_lea.vmem %s681_s2, 32 }
 0x13c   : > { %p5114_p9 = scmp.ne.s32.totalorder %s681_s2, %s5113_s26  ;;  %p5121_p11 = scmp.lt.s32.totalorder %s681_s2, %s681_s2 }
 0x13d   : > { %p5122_p0 = scmp.lt.s32.totalorder %s5120_s24, %s5113_s26 }
 0x13e   : > { %p5116_p3 = pnand %p5114_p9, %p6972_p7 }
 0x13f   : > { %p5123_p1 = por %p5122_p0, %p5121_p11 }
 0x140   : > { %p5117_p10 = pneg %p5116_p3 }
 0x142   : > { %p5124_p6 = pnand %p5123_p1, %p5117_p10 }
 0x144   : > { %5127 = shalt.err (!%p5124_p6)
}
 0x145   : > { %p6973_p12 = scmp.ne.s32.totalorder %s6947_s27, 0  ;;  %s936_s30 = scalar_lea.vmem [#allocation19], %s5723_s1 }
 0x146   : > { %s943_s6 = sshll.u32 %s936_s30, 4  ;;  %s5492_s5 = smov [#allocation8]   ;;  %s6003_s6 = int_to_ptr.vmem [resolvable:$true] %s943_s6 }
 0x147   : > { %4435 = dma.hbm_to_vmem [thread:$0]  (!%p6973_p12), %s6971_s18, 16, %s681_s2, [#allocation7]  }
 0x148   : > { %s694_s8 = sshll.u32 %s5492_s5, 4  ;;  %s5128_s19 = scalar_lea.hbm %s5982_s28, 16  ;;  %s695_s8 = int_to_ptr.vmem [resolvable:$true] %s694_s8 }
 0x149   : > { %p5129_p6 = scmp.ne.s32.totalorder %s5982_s28, %s5128_s19  ;;  %s5133_s29 = scalar_lea.hbm %s6970_s15, 64 }
 0x14a   : > { %p5134_p5 = scmp.lt.u32.totalorder %s5982_s28, %s6970_s15  ;;  %p5135_p4 = scmp.lt.u32.totalorder %s5133_s29, %s5128_s19 }
 0x14b   : > { %p5131_p8 = pnand %p5129_p6, %p5744_p13  ;;  %p5137_p3 = scmp.lt.u32.totalorder %s5128_s19, %s5982_s28 }
 0x14c   : > { %p5136_p9 = por %p5135_p4, %p5134_p5 }
 0x14d   : > { %p5132_p2 = pneg %p5131_p8 }
 0x14e   : > { %p5138_p10 = por %p5137_p3, %p5136_p9 }
 0x150   : > { %p5139_p11 = pnand %p5138_p10, %p5132_p2 }
 0x152   : > { %5142 = shalt.err (!%p5139_p11)
}
 0x153   : > { %s5143_s2 = scalar_lea.vmem %s6003_s6, 16  ;;  %s5493_s9 = smov [#allocation19]  }
 0x154   : > { %p5144_p0 = scmp.ne.s32.totalorder %s6003_s6, %s5143_s2  ;;  %s5148_s22 = sshll.u32 %s5493_s9, 4  ;;  %s5149_s22 = int_to_ptr.vmem [resolvable:$false] %s5148_s22 }
 0x155   : > { %s5150_s30 = scalar_lea.vmem %s5149_s22, 32  ;;  %p5151_p8 = scmp.lt.s32.totalorder %s6003_s6, %s5149_s22 }
 0x156   : > { %p5146_p1 = pnand %p5144_p0, %p5744_p13  ;;  %p5152_p12 = scmp.lt.s32.totalorder %s5150_s30, %s5143_s2 }
 0x158   : > { %p5147_p6 = pneg %p5146_p1  ;;  %p5153_p5 = por %p5152_p12, %p5151_p8 }
 0x15a   : > { %p5154_p4 = pnand %p5153_p5, %p5147_p6 }
 0x15c   : > { %5157 = shalt.err (!%p5154_p4)
}
 0x15d   : > { %p6974_p2 = scmp.ne.s32.totalorder %s6953_s4, 0  ;;  %s6975_s3 = sld [smem:[#allocation47_spill]] }
 0x15f   : > { %4481 = dma.hbm_to_vmem [thread:$0]  (!%p6974_p2), %s5982_s28, 16, %s6003_s6, %s5738_s20  }
 0x163   : > { %s5158_s25 = scalar_lea.hbm %s6975_s3, 16 }
 0x164   : > { %p5159_p9 = scmp.ne.s32.totalorder %s6975_s3, %s5158_s25  ;;  %p5165_p10 = scmp.lt.u32.totalorder %s5158_s25, %s6975_s3 }
 0x166   : > { %p5161_p12 = pnand %p5159_p9, %p6972_p7 }
 0x168   : > { %p5162_p3 = pneg %p5161_p12 }
 0x16a   : > { %p5167_p11 = pnand %p5165_p10, %p5162_p3 }
 0x16c   : > { %5170 = shalt.err (!%p5167_p11)
}
 0x16d   : > { %s5171_s9 = scalar_lea.vmem %s695_s8, 16  ;;  %s5178_s28 = scalar_lea.vmem %s695_s8, 32 }
 0x16e   : > { %p5172_p0 = scmp.ne.s32.totalorder %s695_s8, %s5171_s9  ;;  %p5179_p8 = scmp.lt.s32.totalorder %s695_s8, %s695_s8 }
 0x16f   : > { %p5180_p5 = scmp.lt.s32.totalorder %s5178_s28, %s5171_s9 }
 0x170   : > { %p5174_p1 = pnand %p5172_p0, %p6972_p7 }
 0x171   : > { %p5181_p4 = por %p5180_p5, %p5179_p8 }
 0x172   : > { %p5175_p6 = pneg %p5174_p1 }
 0x174   : > { %p5182_p2 = pnand %p5181_p4, %p5175_p6 }
 0x176   : > { %5185 = shalt.err (!%p5182_p2)
}
 0x177   : > { %p6976_p9 = scmp.ne.s32.totalorder %s6947_s27, 0  ;;  %s5494_s30 = smov [#allocation9]  }
 0x178   : > { %s705_s5 = sshll.u32 %s5494_s30, 4  ;;  %s5495_s19 = smov [#allocation24]   ;;  %s706_s5 = int_to_ptr.vmem [resolvable:$true] %s705_s5 }
 0x179   : > { %4438 = dma.hbm_to_vmem [thread:$0]  (!%p6976_p9), %s6975_s3, 16, %s695_s8, [#allocation7]  }
 0x17a   : > { %s743_s25 = sshll.u32 %s5495_s19, 4  ;;  %s6977_s24 = sld [smem:[#allocation48_spill]]  ;;  %s744_s25 = int_to_ptr.vmem [resolvable:$true] %s743_s25 }
 0x180   : > { %s5186_s2 = scalar_lea.hbm %s6977_s24, 16 }
 0x181   : > { %p5187_p2 = scmp.ne.s32.totalorder %s6977_s24, %s5186_s2  ;;  %p5193_p10 = scmp.lt.u32.totalorder %s5186_s2, %s6977_s24 }
 0x183   : > { %p5189_p12 = pnand %p5187_p2, %p6972_p7 }
 0x185   : > { %p5190_p3 = pneg %p5189_p12 }
 0x187   : > { %p5195_p11 = pnand %p5193_p10, %p5190_p3 }
 0x189   : > { %5198 = shalt.err (!%p5195_p11)
}
 0x18a   : > { %s5199_s8 = scalar_lea.vmem %s706_s5, 16  ;;  %s5206_s22 = scalar_lea.vmem %s706_s5, 32 }
 0x18b   : > { %p5200_p0 = scmp.ne.s32.totalorder %s706_s5, %s5199_s8  ;;  %p5207_p8 = scmp.lt.s32.totalorder %s706_s5, %s706_s5 }
 0x18c   : > { %p5208_p5 = scmp.lt.s32.totalorder %s5206_s22, %s5199_s8 }
 0x18d   : > { %p5202_p1 = pnand %p5200_p0, %p6972_p7 }
 0x18e   : > { %p5209_p4 = por %p5208_p5, %p5207_p8 }
 0x18f   : > { %p5203_p6 = pneg %p5202_p1 }
 0x191   : > { %p5210_p13 = pnand %p5209_p4, %p5203_p6 }
 0x193   : > { %5213 = shalt.err (!%p5210_p13)
}
 0x194   : > { %4441 = dma.hbm_to_vmem [thread:$0]  (!%p6976_p9), %s6977_s24, 16, %s706_s5, [#allocation10]  }
 0x195   : > { %s5214_s26 = scalar_lea.hbm %s6857_s21, 16 }
 0x196   : > { %p5215_p2 = scmp.ne.s32.totalorder %s6857_s21, %s5214_s26  ;;  %p5221_p13 = scmp.lt.u32.totalorder %s5214_s26, %s6857_s21 }
 0x198   : > { %p5217_p12 = pnand %p5215_p2, %p6972_p7 }
 0x19a   : > { %p5218_p3 = pneg %p5217_p12 }
 0x19c   : > { %p5223_p10 = pnand %p5221_p13, %p5218_p3 }
 0x19e   : > { %5226 = shalt.err (!%p5223_p10)
}
 0x19f   : > { %s5227_s8 = scalar_lea.vmem %s744_s25, 16  ;;  %s5234_s5 = scalar_lea.vmem %s744_s25, 32 }
 0x1a0   : > { %p5228_p11 = scmp.ne.s32.totalorder %s744_s25, %s5227_s8  ;;  %p5235_p6 = scmp.lt.s32.totalorder %s744_s25, %s744_s25 }
 0x1a1   : > { %p5236_p8 = scmp.lt.s32.totalorder %s5234_s5, %s5227_s8 }
 0x1a2   : > { %p5230_p0 = pnand %p5228_p11, %p6972_p7 }
 0x1a3   : > { %p5237_p5 = por %p5236_p8, %p5235_p6 }
 0x1a4   : > { %p5231_p1 = pneg %p5230_p0 }
 0x1a6   : > { %p5238_p4 = pnand %p5237_p5, %p5231_p1 }
 0x1a8   : > { %5241 = shalt.err (!%p5238_p4)
}
 0x1a9   : > { %4450 = dma.hbm_to_vmem [thread:$0]  (!%p6976_p9), %s6857_s21, 16, %s744_s25, [#allocation25]  }
 0x1aa   : > { %s6085_s29 = scalar_lea.hbm %s6852_s16, %s5771_s7  ;;  %s953_s26 = scalar_lea.vmem [#allocation20], %s5723_s1 }
 0x1ab   : > { %s960_s2 = sshll.u32 %s953_s26, 4  ;;  %s5242_s9 = scalar_lea.hbm %s6085_s29, 16  ;;  %s961_s2 = int_to_ptr.vmem [resolvable:$true] %s960_s2 }
 0x1ac   : > { %p5243_p2 = scmp.ne.s32.totalorder %s6085_s29, %s5242_s9  ;;  %p6978_p12 = scmp.ne.s32.totalorder %s6955_s0, 0 }
 0x1ad   : > { %s5247_s25 = scalar_lea.hbm %s6852_s16, 64  ;;  %p5248_p10 = scmp.lt.u32.totalorder %s6085_s29, %s6852_s16 }
 0x1ae   : > { %p5245_p3 = pnand %p5243_p2, %p6978_p12  ;;  %p5249_p11 = scmp.lt.u32.totalorder %s5247_s25, %s5242_s9 }
 0x1af   : > { %p5251_p1 = scmp.lt.u32.totalorder %s5242_s9, %s6085_s29 }
 0x1b0   : > { %p5246_p13 = pneg %p5245_p3  ;;  %p5250_p0 = por %p5249_p11, %p5248_p10 }
 0x1b2   : > { %p5252_p6 = por %p5251_p1, %p5250_p0 }
 0x1b4   : > { %p5253_p8 = pnand %p5252_p6, %p5246_p13 }
 0x1b6   : > { %5256 = shalt.err (!%p5253_p8)
}
 0x1b7   : > { %s5257_s22 = scalar_lea.vmem %s961_s2, 16  ;;  %s5496_s30 = smov [#allocation20]  }
 0x1b8   : > { %p5258_p5 = scmp.ne.s32.totalorder %s961_s2, %s5257_s22  ;;  %s5262_s19 = sshll.u32 %s5496_s30, 4  ;;  %s5263_s19 = int_to_ptr.vmem [resolvable:$false] %s5262_s19 }
 0x1b9   : > { %s5264_s10 = scalar_lea.vmem %s5263_s19, 32  ;;  %p5265_p3 = scmp.lt.s32.totalorder %s961_s2, %s5263_s19 }
 0x1ba   : > { %p5260_p4 = pnand %p5258_p5, %p6978_p12  ;;  %p5266_p9 = scmp.lt.s32.totalorder %s5264_s10, %s5257_s22 }
 0x1bc   : > { %p5261_p2 = pneg %p5260_p4  ;;  %p5267_p7 = por %p5266_p9, %p5265_p3 }
 0x1be   : > { %p5268_p10 = pnand %p5267_p7, %p5261_p2 }
 0x1c0   : > { %5271 = shalt.err (!%p5268_p10)
}
 0x1c1   : > { %p6979_p11 = scmp.ne.s32.totalorder %s6953_s4, 0  ;;  %s5497_s26 = smov [#allocation22]  }
 0x1c2   : > { %s715_s9 = sshll.u32 %s5497_s26, 4  ;;  %s5498_s28 = smov [#allocation23]   ;;  %s716_s9 = int_to_ptr.vmem [resolvable:$true] %s715_s9 }
 0x1c3   : > { %4484 = dma.hbm_to_vmem [thread:$0]  (!%p6979_p11), %s6085_s29, 16, %s961_s2, %s5738_s20  }
 0x1c4   : > { %s729_s6 = sshll.u32 %s5498_s28, 4  ;;  %s6980_s5 = sld [smem:[#allocation60_spill]]  ;;  %s730_s6 = int_to_ptr.vmem [resolvable:$true] %s729_s6 }
 0x1c5   : > { %p6981_p9 = scmp.ne.s32.totalorder %s6951_s23, 0 }
 0x1ca   : > { %s5272_s30 = scalar_lea.hbm %s6980_s5, 2048 }
 0x1cb   : > { %p5273_p7 = scmp.ne.s32.totalorder %s6980_s5, %s5272_s30  ;;  %p5279_p1 = scmp.lt.u32.totalorder %s5272_s30, %s6980_s5 }
 0x1cd   : > { %p5275_p13 = pnand %p5273_p7, %p6981_p9 }
 0x1cf   : > { %p5276_p0 = pneg %p5275_p13 }
 0x1d1   : > { %p5281_p6 = pnand %p5279_p1, %p5276_p0 }
 0x1d3   : > { %5284 = shalt.err (!%p5281_p6)
}
 0x1d4   : > { %s5285_s29 = scalar_lea.vmem %s716_s9, 2048  ;;  %p5293_p2 = scmp.lt.s32.totalorder %s716_s9, %s716_s9 }
 0x1d5   : > { %p5286_p8 = scmp.ne.s32.totalorder %s716_s9, %s5285_s29  ;;  %p5294_p3 = scmp.lt.s32.totalorder %s5285_s29, %s5285_s29 }
 0x1d7   : > { %p5288_p5 = pnand %p5286_p8, %p6981_p9  ;;  %p5295_p10 = por %p5294_p3, %p5293_p2 }
 0x1d9   : > { %p5289_p4 = pneg %p5288_p5 }
 0x1db   : > { %p5296_p11 = pnand %p5295_p10, %p5289_p4 }
 0x1dd   : > { %5299 = shalt.err (!%p5296_p11)
}
 0x1de   : > { %p6982_p7 = scmp.ne.s32.totalorder %s6947_s27, 0  ;;  %s6983_s2 = smov 8  }
 0x1df   : > { %s6984_s26 = smov 128   ;;  %s6985_s30 = sld [smem:[#allocation61_spill]] }
 0x1e0   : > { %4444 = dma.hbm_to_vmem [thread:$0]  (!%p6982_p7), %s6980_s5, 2048, %s716_s9, [#allocation7], %s6984_s26, %s6984_s26, %s6983_s2  }
 0x1e5   : > { %s6986_s19 = smov %s6985_s30  ;;  %s5300_s22 = scalar_lea.hbm %s6985_s30, 32 }
 0x1e6   : > { %p5301_p13 = scmp.ne.s32.totalorder %s6986_s19, %s5300_s22  ;;  %p5307_p1 = scmp.lt.u32.totalorder %s5300_s22, %s6986_s19 }
 0x1e8   : > { %p5303_p11 = pnand %p5301_p13, %p6981_p9 }
 0x1ea   : > { %p5304_p0 = pneg %p5303_p11 }
 0x1ec   : > { %p5309_p6 = pnand %p5307_p1, %p5304_p0 }
 0x1ee   : > { %5312 = shalt.err (!%p5309_p6)
}
 0x1ef   : > { %s5313_s3 = scalar_lea.vmem %s730_s6, 32  ;;  %p5321_p2 = scmp.lt.s32.totalorder %s730_s6, %s730_s6 }
 0x1f0   : > { %p5314_p8 = scmp.ne.s32.totalorder %s730_s6, %s5313_s3  ;;  %p5322_p3 = scmp.lt.s32.totalorder %s5313_s3, %s5313_s3 }
 0x1f2   : > { %p5316_p5 = pnand %p5314_p8, %p6981_p9  ;;  %p5323_p10 = por %p5322_p3, %p5321_p2 }
 0x1f4   : > { %p5317_p4 = pneg %p5316_p5 }
 0x1f6   : > { %p5324_p12 = pnand %p5323_p10, %p5317_p4 }
 0x1f8   : > { %5327 = shalt.err (!%p5324_p12)
}
 0x1f9   : > { %4447 = dma.hbm_to_vmem [thread:$0]  (!%p6982_p7), %s6986_s19, 32, %s730_s6, [#allocation10]  }
 0x1fa   : > { %s5499_s11 = smov [#allocation26]   ;;  %s6987_s30 = sld [smem:[#allocation59_spill]] }
 0x1fb   : > { %s753_s12 = sshll.u32 %s5499_s11, 4  ;;  %s6989_s5 = sld [smem:[#allocation63_spill]]  ;;  %s754_s12 = int_to_ptr.vmem [resolvable:$true] %s753_s12 }
 0x200   : > { %s6988_s22 = smov %s6987_s30  ;;  %s6149_s10 = scalar_lea.hbm %s6987_s30, %s5771_s7 }
 0x201   : > { %s5328_s13 = scalar_lea.hbm %s6989_s5, 3072 }
 0x202   : > { %p5329_p12 = scmp.ne.s32.totalorder %s6989_s5, %s5328_s13  ;;  %p5335_p0 = scmp.lt.u32.totalorder %s5328_s13, %s6989_s5 }
 0x204   : > { %p5331_p13 = pnand %p5329_p12, %p6981_p9 }
 0x206   : > { %p5332_p11 = pneg %p5331_p13 }
 0x208   : > { %p5337_p1 = pnand %p5335_p0, %p5332_p11 }
 0x20a   : > { %5340 = shalt.err (!%p5337_p1)
}
 0x20b   : > { %s5341_s28 = scalar_lea.vmem %s754_s12, 3072  ;;  %p5349_p4 = scmp.lt.s32.totalorder %s754_s12, %s754_s12 }
 0x20c   : > { %p5342_p6 = scmp.ne.s32.totalorder %s754_s12, %s5341_s28  ;;  %p5350_p2 = scmp.lt.s32.totalorder %s5341_s28, %s5341_s28 }
 0x20e   : > { %p5344_p8 = pnand %p5342_p6, %p6981_p9  ;;  %p5351_p3 = por %p5350_p2, %p5349_p4 }
 0x210   : > { %p5345_p5 = pneg %p5344_p8 }
 0x212   : > { %p5352_p10 = pnand %p5351_p3, %p5345_p5 }
 0x214   : > { %5355 = shalt.err (!%p5352_p10)
}
 0x215   : > { %4453 = dma.hbm_to_vmem [thread:$0]  (!%p6982_p7), %s6989_s5, 3072, %s754_s12, [#allocation25], %s6984_s26, %s6984_s26, %s6983_s2  }
 0x216   : > { %s970_s15 = scalar_lea.vmem [#allocation21], %s5723_s1  ;;  %s5356_s7 = scalar_lea.hbm %s6149_s10, 16 }
 0x217   : > { %s977_s23 = sshll.u32 %s970_s15, 4  ;;  %p5357_p9 = scmp.ne.s32.totalorder %s6149_s10, %s5356_s7  ;;  %s978_s23 = int_to_ptr.vmem [resolvable:$true] %s977_s23 }
 0x218   : > { %p6990_p12 = scmp.ne.s32.totalorder %s6955_s0, 0  ;;  %s5361_s25 = scalar_lea.hbm %s6988_s22, 64 }
 0x219   : > { %p5362_p0 = scmp.lt.u32.totalorder %s6149_s10, %s6988_s22  ;;  %p5363_p1 = scmp.lt.u32.totalorder %s5361_s25, %s5356_s7 }
 0x21a   : > { %p5359_p13 = pnand %p5357_p9, %p6990_p12  ;;  %p5365_p8 = scmp.lt.u32.totalorder %s5356_s7, %s6149_s10 }
 0x21b   : > { %p5364_p6 = por %p5363_p1, %p5362_p0 }
 0x21c   : > { %p5360_p11 = pneg %p5359_p13 }
 0x21d   : > { %p5366_p7 = por %p5365_p8, %p5364_p6 }
 0x21f   : > { %p5367_p5 = pnand %p5366_p7, %p5360_p11 }
 0x221   : > { %5370 = shalt.err (!%p5367_p5)
}
 0x222   : > { %s5371_s1 = scalar_lea.vmem %s978_s23, 16  ;;  %s5500_s2 = smov [#allocation21]  }
 0x223   : > { %p5372_p4 = scmp.ne.s32.totalorder %s978_s23, %s5371_s1  ;;  %s5376_s26 = sshll.u32 %s5500_s2, 4  ;;  %s5377_s26 = int_to_ptr.vmem [resolvable:$false] %s5376_s26 }
 0x224   : > { %s5378_s12 = scalar_lea.vmem %s5377_s26, 32  ;;  %p5379_p10 = scmp.lt.s32.totalorder %s978_s23, %s5377_s26 }
 0x225   : > { %p5374_p2 = pnand %p5372_p4, %p6990_p12  ;;  %p5380_p9 = scmp.lt.s32.totalorder %s5378_s12, %s5371_s1 }
 0x227   : > { %p5375_p3 = pneg %p5374_p2  ;;  %p5381_p13 = por %p5380_p9, %p5379_p10 }
 0x229   : > { %p5382_p0 = pnand %p5381_p13, %p5375_p3 }
 0x22b   : > { %5385 = shalt.err (!%p5382_p0)
}
 0x22c   : > { %p6991_p1 = scmp.ne.s32.totalorder %s6953_s4, 0  ;;  %s6992_s29 = sld [smem:[#allocation40_spill]] }
 0x22e   : > { %4487 = dma.hbm_to_vmem [thread:$0]  (!%p6991_p1), %s6149_s10, 16, %s978_s23, %s5738_s20  }
 0x232   : > { %p6993_p11 = scmp.ne.s32.totalorder %s6992_s29, 0 }
 0x233   : > { %s6994_s0 = sld [smem:[#allocation38_spill]] (!%p6993_p11) }
 0x234   : > { %986 = sbr.rel (%p6993_p11) target bundleno = 4218 (0x107a), region = 120 }
 0x239   : > { %p6995_p12 = scmp.eq.s32.totalorder (!%p6993_p11), %s6994_s0, 0 }
 0x23b   : > { %5429 = dma.done.wait (%p6995_p12), [#allocation4], 128   ;;  %p6996_p6 = pmov %p6995_p12 }
 0x23d   : > { %5431 = vsyncadd (%p6996_p6), [#allocation4], 4294967168  ;;  %p6997_p8 = pmov %p6996_p6 }
 0x23e   : > { %p6998_p7 = pmov %p6996_p6 }
 0x23f   : > { %5433 = dma.done.wait (%p6997_p8), [#allocation7], 32  }
 0x240   : > { %5435 = vsyncadd (%p6998_p7), [#allocation7], 4294967264  ;;  %p6999_p5 = pmov %p6996_p6 }
 0x242   : > { %5437 = dma.done.wait (%p6999_p5), [#allocation10], 16   ;;  %p7000_p4 = pmov %p6999_p5 }
 0x243   : > { %s7001_s4 = sld [smem:[#allocation36_spill]]  ;;  %s7002_s20 = sld [smem:[#allocation39_spill]] }
 0x244   : > { %5439 = vsyncadd (%p7000_p4), [#allocation10], 4294967280  ;;  %s1004_s10 = sand.u32 1, %s6994_s0  }
 0x245   : > { %s1005_s9 = scalar_lea.sflag [#allocation4], %s1004_s10 }
 0x249   : > { %s6207_s3 = sand.u32 1, %s7001_s4   ;;  %p7003_p2 = scmp.ne.s32.totalorder %s7002_s20, 0 }
 0x24a   : > { %s4369_s6 = smul.u32 192, %s6207_s3 }
 0x24c   : > { %s6210_s28 = scalar_lea.vmem [#allocation11], %s4369_s6 }
 0x24d   : > { %5441 = dma.done.wait (%p7003_p2), %s1005_s9, 7344  }
 0x24e   : > { %5443 = vsyncadd (%p7003_p2), %s1005_s9, 4294959952  ;;  %s4370_s14 = smul.u32 3, %s6207_s3  ;;  %s3927_s13 = sshll.u32 %s6207_s3, 7 }
 0x24f   : > { %s3928_s15 = sshll.u32 %s6207_s3, 1  ;;  %s1025_s7 = scalar_lea.vmem [#allocation13], %s6207_s3 }
 0x250   : > { %s6219_s23 = scalar_lea.vmem [#allocation12], %s4370_s14  ;;  %s1033_s27 = scalar_lea.vmem [#allocation14], %s6207_s3 }
 0x251   : > { %s1041_s11 = scalar_lea.vmem [#allocation15], %s6207_s3  ;;  %s6224_s25 = scalar_lea.vmem [#allocation16], %s3927_s13 }
 0x252   : > { %s6226_s8 = scalar_lea.vmem [#allocation17], %s3928_s15  ;;  %s6228_s30 = scalar_lea.vmem [#allocation18], %s3927_s13 }
 0x253   : > { %s1076_s1 = scalar_lea.vmem [#allocation19], %s6207_s3  ;;  %p7004_p3 = pmov %p7000_p4 }
 0x255   : > { %5445 = dma.done.wait (%p7004_p3), [#allocation7], 2048   ;;  %p7005_p10 = pmov %p7004_p3 }
 0x256   : > { %p7006_p9 = pmov %p7004_p3 }
 0x257   : > { %5447 = vsyncadd (%p7005_p10), [#allocation7], 4294965248 }
 0x258   : > { %5449 = dma.done.wait (%p7006_p9), [#allocation10], 32   ;;  %p7007_p13 = pmov %p7004_p3 }
 0x259   : > { %p7008_p0 = pmov %p7004_p3 }
 0x25a   : > { %5451 = vsyncadd (%p7007_p13), [#allocation10], 4294967264 }
 0x25b   : > { %5453 = dma.done.wait (%p7008_p0), [#allocation25], 3088   ;;  %p7009_p1 = pmov %p7008_p0 }
 0x25c   : > { %p1219_p11 = scmp.lt.s32.totalorder %s6994_s0, 3  ;;  %s7010_s10 = sld [smem:[#allocation51_spill]] }
 0x25d   : > { %5455 = vsyncadd (%p7009_p1), [#allocation25], 4294964208  ;;  %p7011_p12 = scmp.ne.s32.totalorder %s6994_s0, 0 }
 0x25e   : > { %s1220_s12 = scalar_select %p1219_p11, %s6994_s0, 3 }
 0x25f   : > { %1228 = sbr.rel (%p7011_p12) target bundleno = 1151 (0x47f), region = 200  ;;  %v4559_v0 = vld [vmem:[#allocation3] sm:$0xff] (!%p7011_p12)   ;;  %s7012_s13 = sld [smem:[#allocation43_spill]] (!%p7011_p12)  ;;  %vm1249_vm0 = vcmask (!%p7011_p12), 130048   ;;  %v3937_v6 = vld [vmem:[#allocation6] ss:$0 sm:$0xff] (!%p7011_p12) }
 0x260   : > { %s4079_s29 = sshll.u32 %s1220_s12, 6  ;;  %4211 = vmatprep.subr.bf16.mxu0 (!%p7011_p12), %v4559_v0  ;;  %s7013_s4 = sld [smem:[#allocation46_spill]] (!%p7011_p12)  ;;  %v3941_v42 = vld [vmem:[#allocation8] ss:$0 sm:$0xff] (!%p7011_p12)  ;;  %v3942_v44 = vld [vmem:[#allocation9] ss:$0 sm:$0xff] (!%p7011_p12) }
 0x261   : > { %4212 = vmatpush3.bf16.msra.mxu0 (!%p7011_p12), %v4559_v0 }
 0x262   : > { %s6250_s6 = scalar_lea.vmem %s7010_s10, %s4079_s29 }
 0x265   : > { %v1229_v1 = vld [vmem:[%s7012_s13] sm:$0xff] (!%p7011_p12)  ;;  %v1230_v2 = vld [vmem:[%s7012_s13 + $0x8] sm:$0xff] (!%p7011_p12)  ;;  %v1231_v3 = vld [vmem:[%s7012_s13 + $0x10] sm:$0xff] (!%p7011_p12) }
 0x266   : > { %v1235_v4 = vpack.c.bf16 %v1230_v2, %v1229_v1  ;;  %v1236_v5 = vpack.c.bf16 %v1231_v3, %v1231_v3  ;;  %v1306_v8 = vld [vmem:[%s7013_s4 + $0x10] sm:$0xff]  ;;  %v1304_v11 = vld [vmem:[%s7013_s4] sm:$0xff]  ;;  %v1305_v18 = vld [vmem:[%s7013_s4 + $0x8] sm:$0xff] }
 0x268   : > { %4213 = vmatprep.mubr.msk.bf16.mxu0 %vm1249_vm0, %v1235_v4 }
 0x269   : > { %4214 = vmatmul.mubr.msk.bf16.vlgmr.msra.gmra.mrb[0].mxu0 %vm1249_vm0, %v1236_v5 }
 0x33c   : > { %v4215_v7 = vpop.f32.mrb[0].mxu0 }
 0x33d   : > { %v1299_v9 = vadd.f32 %v4215_v7, %v3937_v6  ;;  %v1290_v10 = vpop.f32.mrb[1].mxu0 }
 0x33e   : > { %v1291_v12 = vadd.f32 %v3937_v6, %v1290_v10  ;;  %v4216_v13 = vpop.f32.mrb[2].mxu0 }
 0x33f   : > { %v1293_v14 = vpop.f32.mrb[3].mxu0  ;;  %v1309_v15 = vadd.f32 %v1306_v8, %v1299_v9 }
 0x340   : > { %v1294_v16 = vadd.f32 %v3937_v6, %v1293_v14  ;;  %v1307_v17 = vadd.f32 %v1304_v11, %v1291_v12 }
 0x341   : > { %1316 = vadd.xlane.f32.xlu1 %v1309_v15 }
 0x342   : > { %1312 = vadd.xlane.f32.xlu0 %v1307_v17  ;;  %v1308_v19 = vadd.f32 %v1305_v18, %v1294_v16 }
 0x346   : > { %1314 = vadd.xlane.f32.xlu0 %v1308_v19 }
 0x3ce   : > { %v1317_v20 = vpop.xlane.xlu1 %1316 }
 0x3cf   : > { %v1313_v21 = vpop.xlane.xlu0 %1312  ;;  %v1321_v22 = vmul.f32 0.0078125, %v1317_v20 }
 0x3d0   : > { %v1319_v23 = vmul.f32 0.0078125, %v1313_v21 }
 0x3d1   : > { %v1324_v26 = vsub.f32 %v1309_v15, %v1321_v22 }
 0x3d2   : > { %v1322_v24 = vsub.f32 %v1307_v17, %v1319_v23 }
 0x3d3   : > { %v1315_v25 = vpop.xlane.xlu0 %1314  ;;  %v1327_v30 = vmul.f32 %v1324_v26, %v1324_v26 }
 0x3d4   : > { %v1320_v27 = vmul.f32 0.0078125, %v1315_v25  ;;  %v1325_v28 = vmul.f32 %v1322_v24, %v1322_v24 }
 0x3d6   : > { %v1323_v29 = vsub.f32 %v1308_v19, %v1320_v27  ;;  %1328 = vadd.xlane.f32.xlu1 %v1325_v28 }
 0x3d8   : > { %v1326_v31 = vmul.f32 %v1323_v29, %v1323_v29 }
 0x3da   : > { %1332 = vadd.xlane.f32.xlu1 %v1327_v30  ;;  %1330 = vadd.xlane.f32.xlu0 %v1326_v31 }
 0x463   : > { %v1329_v32 = vpop.xlane.xlu1 %1328 }
 0x464   : > { %v1334_v33 = vmul.f32 0.0078125, %v1329_v32 }
 0x466   : > { %v1337_v34 = vadd.f32 1e-12, %v1334_v33 }
 0x467   : > { %v1333_v35 = vpop.xlane.xlu1 %1332  ;;  %v1331_v36 = vpop.xlane.xlu0 %1330 }
 0x468   : > { %4560 = vrsqrt.f32 %v1337_v34  ;;  %v1336_v37 = vmul.f32 0.0078125, %v1333_v35  ;;  %v1335_v38 = vmul.f32 0.0078125, %v1331_v36 }
 0x46a   : > { %v1339_v39 = vadd.f32 1e-12, %v1336_v37  ;;  %v1338_v40 = vadd.f32 1e-12, %v1335_v38 }
 0x46c   : > { %4562 = vrsqrt.f32 %v1339_v39 }
 0x46d   : > { %4564 = vrsqrt.f32 %v1338_v40 }
 0x472   : > { %v4561_v41 = vpop.eup %4560 }
 0x473   : > { %v1343_v43 = vmul.f32 %v4561_v41, %v1322_v24 }
 0x475   : > { %v1352_v45 = vmul.f32 %v3941_v42, %v1343_v43 }
 0x476   : > { %v4563_v46 = vpop.eup %4562 }
 0x477   : > { %v4565_v47 = vpop.eup %4564  ;;  %v1361_v48 = vadd.f32 %v3942_v44, %v1352_v45  ;;  %v1345_v49 = vmul.f32 %v4563_v46, %v1324_v26 }
 0x478   : > { %v1344_v50 = vmul.f32 %v4565_v47, %v1323_v29 }
 0x479   : > { %1364 = vst [vmem:[#allocation2] sm:$0xff] %v1361_v48  ;;  %v1354_v51 = vmul.f32 %v3941_v42, %v1345_v49 }
 0x47a   : > { %v1353_v52 = vmul.f32 %v3941_v42, %v1344_v50 }
 0x47b   : > { %v1363_v53 = vadd.f32 %v3942_v44, %v1354_v51 }
 0x47c   : > { %v1362_v54 = vadd.f32 %v3942_v44, %v1353_v52 }
 0x47d   : > { %1366 = vst [vmem:[#allocation2 + $0x10] sm:$0xff] %v1363_v53 }
 0x47e   : > { %1365 = vst [vmem:[#allocation2 + $0x8] sm:$0xff] %v1362_v54 }
 0x47f PF: > { %v4566_v55 = vld [vmem:[%s6210_s28 + $0x4] ss:$12 sps:$4 sm:$0xff]   ;;  %v4568_v56 = vld [vmem:[%s6210_s28] ss:$12 sps:$4 sm:$0xff]   ;;  %v5501_v57 = vmov 0   ;;  %v1406_v21 = vlaneseq  ;;  %s7014_s9 = sld [smem:[#allocation64_spill]] }
 0x480   : > { %1581 = vmatprep.mubr.bf16.mxu0 %v5501_v57  ;;  %1549 = vmatprep.subr.bf16.mxu0 %v4566_v55  ;;  %v4569_v58 = vld [vmem:[%s6210_s28 + $0x1c] ss:$12 sps:$4 sm:$0xff]   ;;  %v4571_v59 = vld [vmem:[%s6210_s28 + $0x18] ss:$12 sps:$4 sm:$0xff]   ;;  %v4572_v60 = vld [vmem:[%s6210_s28 + $0x34] ss:$12 sps:$4 sm:$0xff]  }
 0x481   : > { %1550 = vmatpush1.bf16.msra.mxu0 %v4568_v56  ;;  %v4574_v61 = vld [vmem:[%s6210_s28 + $0x30] ss:$12 sps:$4 sm:$0xff]   ;;  %v4575_v62 = vld [vmem:[%s6210_s28 + $0x4c] ss:$12 sps:$4 sm:$0xff]   ;;  %v4577_v63 = vld [vmem:[%s6210_s28 + $0x48] ss:$12 sps:$4 sm:$0xff]  }
 0x482   : > { %1551 = vmatprep.subr.bf16.mxu0 %v4569_v58  ;;  %v1367_v0 = vld [vmem:[#allocation2] sm:$0xff]  ;;  %v4578_v1 = vld [vmem:[%s6210_s28 + $0x64] ss:$12 sps:$4 sm:$0xff]   ;;  %v4590_v4 = vld [vmem:[%s6210_s28 + $0x8] ss:$12 sps:$4 sm:$0xff]   ;;  %v1407_v22 = vshrl.u32 %v1406_v21, 7 }
 0x483   : > { %v4591_v5 = vld [vmem:[%s6210_s28 + $0x20] ss:$12 sps:$4 sm:$0xff]   ;;  %4217 = vmatprep.subr.bf16.mxu1 %v4590_v4  ;;  %v4581_v7 = vld [vmem:[%s6210_s28 + $0x7c] ss:$12 sps:$4 sm:$0xff]   ;;  %v4592_v8 = vld [vmem:[%s6210_s28 + $0x38] ss:$12 sps:$4 sm:$0xff]  }
 0x484   : > { %v4580_v6 = vld [vmem:[%s6210_s28 + $0x60] ss:$12 sps:$4 sm:$0xff]   ;;  %4218 = vmatpush3.bf16.msra.mxu1 %v4590_v4  ;;  %v4583_v9 = vld [vmem:[%s6210_s28 + $0x78] ss:$12 sps:$4 sm:$0xff]   ;;  %v4593_v11 = vld [vmem:[%s6210_s28 + $0x50] ss:$12 sps:$4 sm:$0xff]  }
 0x485   : > { %1552 = vmatpush1.bf16.msra.mxu0 %v4571_v59  ;;  %v1368_v2 = vld [vmem:[#allocation2 + $0x8] sm:$0xff]  ;;  %4219 = vmatprep.subr.bf16.mxu1 %v4591_v5  ;;  %v4586_v12 = vld [vmem:[%s6210_s28 + $0x90] ss:$12 sps:$4 sm:$0xff]   ;;  %v4587_v13 = vld [vmem:[%s6210_s28 + $0xac] ss:$12 sps:$4 sm:$0xff]   ;;  %v6298_v23 = vsub.s32 0, %v1407_v22 }
 0x486   : > { %1553 = vmatprep.subr.bf16.mxu0 %v4572_v60  ;;  %v1403_v3 = vpack.c.bf16 %v1368_v2, %v1367_v0  ;;  %v4584_v10 = vld [vmem:[%s6210_s28 + $0x94] ss:$12 sps:$4 sm:$0xff]   ;;  %v4596_v17 = vld [vmem:[%s6210_s28 + $0x98] ss:$12 sps:$4 sm:$0xff]   ;;  %v1369_v18 = vld [vmem:[#allocation2 + $0x10] sm:$0xff]  ;;  %v6301_v25 = vsub.s32 1, %v1407_v22 }
 0x487   : > { %v4594_v14 = vld [vmem:[%s6210_s28 + $0x68] ss:$12 sps:$4 sm:$0xff]   ;;  %v4595_v16 = vld [vmem:[%s6210_s28 + $0x80] ss:$12 sps:$4 sm:$0xff]   ;;  %v4597_v19 = vld [vmem:[%s6210_s28 + $0xb0] ss:$12 sps:$4 sm:$0xff]   ;;  %v1404_v20 = vpack.c.bf16 %v1369_v18, %v1369_v18 }
 0x488   : > { %4233 = vmatprep.mubr.bf16.mxu1 %v1403_v3  ;;  %4220 = vmatpush3.bf16.msra.mxu1 %v4591_v5  ;;  %v4589_v15 = vld [vmem:[%s6210_s28 + $0xa8] ss:$12 sps:$4 sm:$0xff]   ;;  %v1402_v24 = vld [vmem:[%s6219_s23] sm:$0x7]  ;;  %v1416_v38 = vsub.s32 2, %v1407_v22  ;;  %vm1953_vm1 = vcmask 195584  }
 0x489   : > { %1554 = vmatpush1.bf16.msra.mxu0 %v4574_v61  ;;  %4221 = vmatprep.subr.bf16.mxu1 %v4592_v8  ;;  %v1409_v26 = vrot.slane %v1402_v24, %v6298_v23  ;;  %v1413_v28 = vrot.slane %v1402_v24, %v6301_v25  ;;  %v1648_v29 = vld [vmem:[#allocation26] sm:$0xff]  ;;  %v1649_v53 = vld [vmem:[#allocation26 + $0x8] sm:$0xff]  ;;  %v1650_v56 = vld [vmem:[#allocation26 + $0x10] sm:$0xff] }
 0x48a   : > { %1555 = vmatprep.subr.bf16.mxu0 %v4575_v62  ;;  %v1656_v40 = vld [vmem:[#allocation26 + $0x40] sm:$0xff]  ;;  %v1417_v45 = vrot.slane %v1402_v24, %v1416_v38  ;;  %v1657_v54 = vld [vmem:[#allocation26 + $0x48] sm:$0xff]  ;;  %v1658_v58 = vld [vmem:[#allocation26 + $0x50] sm:$0xff] }
 0x48b   : > { %v1659_v2 = vld [vmem:[#allocation26 + $0x58] sm:$0xff]  ;;  %v1660_v4 = vld [vmem:[#allocation26 + $0x60] sm:$0xff] }
 0x48c   : > { %4222 = vmatpush3.bf16.msra.mxu1 %v4592_v8  ;;  %v6325_v18 = vld [vmem:[#allocation26 + $0x38] sm:$0xff] }
 0x48d   : > { %1556 = vmatpush1.bf16.msra.mxu0 %v4577_v63  ;;  %4223 = vmatprep.subr.bf16.mxu1 %v4593_v11 }
 0x48e   : > { %1557 = vmatprep.subr.bf16.mxu0 %v4578_v1  ;;  %v1651_v1 = vld [vmem:[#allocation26 + $0x18] sm:$0xff] }
 0x490   : > { %4224 = vmatpush3.bf16.msra.mxu1 %v4593_v11  ;;  %v1661_v11 = vld [vmem:[#allocation26 + $0x68] sm:$0xff] }
 0x491   : > { %1558 = vmatpush1.bf16.msra.mxu0 %v4580_v6  ;;  %4225 = vmatprep.subr.bf16.mxu1 %v4594_v14 }
 0x492   : > { %1559 = vmatprep.subr.bf16.mxu0 %v4581_v7 }
 0x494   : > { %4226 = vmatpush3.bf16.msra.mxu1 %v4594_v14 }
 0x495   : > { %1560 = vmatpush1.bf16.msra.mxu0 %v4583_v9  ;;  %4227 = vmatprep.subr.bf16.mxu1 %v4595_v16 }
 0x496   : > { %1561 = vmatprep.subr.bf16.mxu0 %v4584_v10  ;;  %v1653_v10 = vld [vmem:[#allocation26 + $0x28] sm:$0xff] }
 0x498   : > { %4228 = vmatpush3.bf16.msra.mxu1 %v4595_v16 }
 0x499   : > { %1562 = vmatpush1.bf16.msra.mxu0 %v4586_v12  ;;  %4229 = vmatprep.subr.bf16.mxu1 %v4596_v17  ;;  %v1654_v12 = vld [vmem:[#allocation26 + $0x30] sm:$0xff] }
 0x49a   : > { %1563 = vmatprep.subr.bf16.mxu0 %v4587_v13  ;;  %v1662_v13 = vld [vmem:[#allocation26 + $0x70] sm:$0xff] }
 0x49c   : > { %4230 = vmatpush3.bf16.msra.mxu1 %v4596_v17 }
 0x49d   : > { %1564 = vmatpush1.bf16.msra.mxu0 %v4589_v15  ;;  %4231 = vmatprep.subr.bf16.mxu1 %v4597_v19 }
 0x4a0   : > { %1582 = vmatmul.mubr.bf16.vlgmr.msra.gmra.mrb[0].mxu0 %v1403_v3  ;;  %4232 = vmatpush3.bf16.msra.mxu1 %v4597_v19  ;;  %v1652_v3 = vld [vmem:[#allocation26 + $0x20] sm:$0xff]  ;;  %v1663_v19 = vld [vmem:[#allocation26 + $0x78] sm:$0xff] }
 0x4a1   : > { %1591 = vmatprep.mubr.bf16.mxu0 %v5501_v57 }
 0x4a3   : > { %4234 = vmatmul.mubr.bf16.vlgmr.msra.gmra.mrb[0].mxu1 %v1404_v20 }
 0x4a8   : > { %1592 = vmatmul.mubr.bf16.gmra.mrb[4].mxu0 %v1404_v20  ;;  %v1664_v20 = vld [vmem:[#allocation26 + $0x80] sm:$0xff] }
 0x573   : > { %v1583_v27 = vpop.f32.mrb[0].mxu0 }
 0x574   : > { %v6305_v30 = vadd.f32 %v1583_v27, %v1409_v26  ;;  %v1585_v31 = vpop.f32.mrb[1].mxu0  ;;  %v1666_v27 = vld [vmem:[#allocation26 + $0x90] sm:$0xff] }
 0x575   : > { %v1587_v32 = vpop.f32.mrb[2].mxu0  ;;  %v1586_v35 = vadd.f32 %v1585_v31, %v1413_v28  ;;  %v1667_v31 = vld [vmem:[#allocation26 + $0x98] sm:$0xff] }
 0x576   : > { %v1589_v33 = vpop.f32.mrb[3].mxu0  ;;  %v1672_v34 = vmul.f32 %v1648_v29, %v6305_v30  ;;  %v4235_v48 = vpop.f32.mrb[0].mxu1  ;;  %v6311_v50 = vadd.f32 %v1587_v32, %v1409_v26  ;;  %v1681_v61 = vmul.f32 %v1657_v54, %v6305_v30  ;;  %v1675_v5 = vmul.f32 %v1651_v1, %v6305_v30  ;;  %v1668_v32 = vld [vmem:[#allocation26 + $0xa0] sm:$0xff]  ;;  %v1907_v54 = vld [vmem:[%s7014_s9 + $0x10] sm:$0xff] }
 0x577   : > { %v1590_v36 = vadd.f32 %v1589_v33, %v1413_v28  ;;  %v1634_v49 = vpop.f32.mrb[1].mxu1  ;;  %v1643_v7 = vadd.f32 %v4235_v48, %v1417_v45  ;;  %v1684_v9 = vmul.f32 %v1660_v4, %v6305_v30  ;;  %v1678_v16 = vmul.f32 %v1654_v12, %v6305_v30 }
 0x578   : > { %4243 = vmatprep.mubr.f32.mxu0 %v1672_v34  ;;  %v1635_v51 = vadd.f32 %v1634_v49, %v1417_v45  ;;  %v4236_v52 = vpop.f32.mrb[2].mxu1  ;;  %v1673_v60 = vmul.f32 %v1649_v53, %v6311_v50  ;;  %v1682_v0 = vmul.f32 %v1658_v58, %v6311_v50  ;;  %v1676_v8 = vmul.f32 %v1652_v3, %v6311_v50 }
 0x579   : > { %v4350_v37 = vpack.c.bf16 %v1590_v36, %v1586_v35  ;;  %v1637_v55 = vpop.f32.mrb[3].mxu1  ;;  %v1685_v15 = vmul.f32 %v1661_v11, %v6311_v50  ;;  %v1679_v21 = vmul.f32 %v6325_v18, %v6311_v50  ;;  %v1687_v22 = vmul.f32 %v1663_v19, %v6305_v30  ;;  %v1669_v35 = vld [vmem:[#allocation26 + $0xa8] sm:$0xff]  ;;  %v1670_v36 = vld [vmem:[#allocation26 + $0xb0] sm:$0xff] }
 0x57a   : > { %v1638_v59 = vadd.f32 %v1637_v55, %v1417_v45  ;;  %v1688_v24 = vmul.f32 %v1664_v20, %v6311_v50  ;;  %v1690_v29 = vmul.f32 %v1666_v27, %v6305_v30  ;;  %v1691_v33 = vmul.f32 %v1667_v31, %v6311_v50 }
 0x57b   : > { %4351 = vmatprep.subr.bf16.mxu0 %v4350_v37  ;;  %4361 = vmatprep.subr.bf16.mxu1 %v4350_v37  ;;  %v1593_v39 = vpop.f32.mrb[4].mxu0  ;;  %v1694_v38 = vmul.f32 %v1670_v36, %v6311_v50  ;;  %v1915_v36 = vld [vmem:[%s7014_s9 + $0x50] sm:$0xff] }
 0x57c   : > { %v6308_v41 = vadd.f32 %v1593_v39, %v1409_v26  ;;  %4353 = vmatpush3.bf16.xpose.msra.mxu0 %v4350_v37  ;;  %4363 = vmatpush3.bf16.xpose.msra.mxu1 %v4350_v37  ;;  %v1595_v42 = vpop.f32.mrb[5].mxu0  ;;  %v4354_v62 = vpack.c.bf16 %v1638_v59, %v1635_v51  ;;  %v1665_v26 = vld [vmem:[#allocation26 + $0x88] sm:$0xff]  ;;  %v1693_v37 = vmul.f32 %v1669_v35, %v6305_v30  ;;  %v1671_v39 = vld [vmem:[#allocation26 + $0xb8] sm:$0xff] }
 0x57d   : > { %v1596_v43 = vadd.f32 %v1595_v42, %v1413_v28  ;;  %v1597_v44 = vpop.f32.mrb[6].mxu0  ;;  %v1906_v30 = vld [vmem:[%s7014_s9 + $0x8] sm:$0xff]  ;;  %v1908_v59 = vld [vmem:[%s7014_s9 + $0x18] sm:$0xff] }
 0x57e   : > { %v1598_v46 = vpop.f32.mrb[7].mxu0  ;;  %v1680_v47 = vmul.f32 %v1656_v40, %v6308_v41  ;;  %v1674_v63 = vmul.f32 %v1650_v56, %v6308_v41  ;;  %v1683_v6 = vmul.f32 %v1659_v2, %v6308_v41  ;;  %v1677_v14 = vmul.f32 %v1653_v10, %v6308_v41  ;;  %v1909_v2 = vld [vmem:[%s7014_s9 + $0x20] sm:$0xff]  ;;  %v1914_v35 = vld [vmem:[%s7014_s9 + $0x48] sm:$0xff] }
 0x57f   : > { %4241 = vmatprep.subr.mxu0 %v1596_v43  ;;  %4362 = vmatprep.subr.mxu1 %v1596_v43  ;;  %v1686_v17 = vmul.f32 %v1662_v13, %v6308_v41  ;;  %v1689_v28 = vmul.f32 %v1665_v26, %v6308_v41  ;;  %v1692_v34 = vmul.f32 %v1668_v32, %v6308_v41  ;;  %v1905_v46 = vld [vmem:[%s7014_s9] sm:$0xff] }
 0x580   : > { %4255 = vmatprep.mubr.f32.mxu1 %v1680_v47  ;;  %v1695_v40 = vmul.f32 %v1671_v39, %v6308_v41 }
 0x584   : > { %4242 = vmatpush3.xpose.msra.mxu0 %v1596_v43  ;;  %4364 = vmatpush3.xpose.msra.mxu1 %v1596_v43 }
 0x585   : > { %4355 = vmatprep.subr.bf16.mxu0 %v4354_v62 }
 0x587   : > { %4244 = vmatmul.mubr.f32.vlgmr.msra.gmra.mrb[8].mxu0 %v1673_v60  ;;  %4256 = vmatmul.mubr.f32.vlgmr.msra.gmra.mrb[4].mxu1 %v1681_v61 }
 0x588   : > { %4246 = vmatprep.mubr.f32.mxu0 %v1674_v63  ;;  %4258 = vmatprep.mubr.f32.mxu1 %v1682_v0 }
 0x589   : > { %4357 = vmatpush3.bf16.msra.mxu0 %v4354_v62 }
 0x58a   : > { %4283 = vmatprep.subr.mxu0 %v1643_v7 }
 0x58b   : > { %4247 = vmatmul.mubr.f32.gmra.mrb[10].mxu0 %v1675_v5  ;;  %4259 = vmatmul.mubr.f32.gmra.mrb[6].mxu1 %v1683_v6 }
 0x58c   : > { %4249 = vmatprep.mubr.f32.mxu0 %v1676_v8  ;;  %4261 = vmatprep.mubr.f32.mxu1 %v1684_v9 }
 0x58d   : > { %4284 = vmatpush3.msra.mxu0 %v1643_v7  ;;  %v1910_v7 = vld [vmem:[%s7014_s9 + $0x28] sm:$0xff] }
 0x58f   : > { %4250 = vmatmul.mubr.f32.gmra.mrb[12].mxu0 %v1677_v14  ;;  %4262 = vmatmul.mubr.f32.gmra.mrb[8].mxu1 %v1685_v15  ;;  %v1911_v15 = vld [vmem:[%s7014_s9 + $0x30] sm:$0xff] }
 0x590   : > { %4252 = vmatprep.mubr.f32.mxu0 %v1678_v16  ;;  %4264 = vmatprep.mubr.f32.mxu1 %v1686_v17 }
 0x593   : > { %4253 = vmatmul.mubr.f32.gmra.mrb[14].mxu0 %v1679_v21  ;;  %4265 = vmatmul.mubr.f32.gmra.mrb[10].mxu1 %v1687_v22  ;;  %v1913_v21 = vld [vmem:[%s7014_s9 + $0x40] sm:$0xff]  ;;  %v1912_v22 = vld [vmem:[%s7014_s9 + $0x38] sm:$0xff] }
 0x594   : > { %4267 = vmatprep.mubr.f32.mxu1 %v1688_v24 }
 0x597   : > { %4268 = vmatmul.mubr.f32.gmra.mrb[12].mxu1 %v1689_v28 }
 0x598   : > { %4270 = vmatprep.mubr.f32.mxu1 %v1690_v29 }
 0x59b   : > { %4271 = vmatmul.mubr.f32.gmra.mrb[14].mxu1 %v1691_v33 }
 0x59c   : > { %4273 = vmatprep.mubr.f32.mxu1 %v1692_v34 }
 0x59f   : > { %4274 = vmatmul.mubr.f32.gmra.mrb[16].mxu1 %v1693_v37 }
 0x5a0   : > { %4276 = vmatprep.mubr.f32.mxu1 %v1694_v38 }
 0x5a3   : > { %4277 = vmatmul.mubr.f32.gmra.mrb[18].mxu1 %v1695_v40 }
 0x65a   : > { %v4245_v42 = vpop.f32.mrb[8].mxu0  ;;  %v4257_v43 = vpop.f32.mrb[4].mxu1 }
 0x65b   : > { %v1762_v44 = vpop.f32.mrb[9].mxu0  ;;  %v1802_v45 = vpop.f32.mrb[5].mxu1  ;;  %v1882_v47 = vmul.f32 0.25, %v4245_v42  ;;  %v1890_v27 = vmul.f32 0.25, %v4257_v43 }
 0x65c   : > { %v1881_v48 = vmul.f32 0.25, %v1762_v44  ;;  %v1889_v11 = vmul.f32 0.25, %v1802_v45 }
 0x65d   : > { %v6351_v58 = vadd.f32 %v1906_v30, %v1882_v47  ;;  %v6403_v40 = vadd.f32 %v1914_v35, %v1890_v27  ;;  %v1917_v47 = vld [vmem:[%s7014_s9 + $0x60] sm:$0xff]  ;;  %v1924_v27 = vld [vmem:[%s7014_s9 + $0x98] sm:$0xff] }
 0x65e   : > { %v4248_v49 = vpop.f32.mrb[10].mxu0  ;;  %v4260_v50 = vpop.f32.mrb[6].mxu1  ;;  %v6344_v51 = vadd.f32 %v1905_v46, %v1881_v48  ;;  %v6389_v29 = vadd.f32 %v1913_v21, %v1889_v11  ;;  %v1916_v46 = vld [vmem:[%s7014_s9 + $0x58] sm:$0xff] }
 0x65f   : > { %v1884_v41 = vmul.f32 0.25, %v4248_v49  ;;  %v1772_v52 = vpop.f32.mrb[11].mxu0  ;;  %v1812_v53 = vpop.f32.mrb[7].mxu1  ;;  %v1957_v5 = vsel %vm1953_vm1, %v6351_v58, -inf  ;;  %v1892_v38 = vmul.f32 0.25, %v4260_v50 }
 0x660   : > { %v1883_v55 = vmul.f32 0.25, %v1772_v52  ;;  %v1954_v56 = vsel %vm1953_vm1, %v6344_v51, -inf  ;;  %v1891_v31 = vmul.f32 0.25, %v1812_v53  ;;  %v1978_v44 = vsel %vm1953_vm1, %v6389_v29, -inf }
 0x661   : > { %1955 = vmax.xlane.f32.xlu0 %v1954_v56  ;;  %v6358_v1 = vadd.f32 %v1908_v59, %v1884_v41  ;;  %v6417_v50 = vadd.f32 %v1916_v46, %v1892_v38  ;;  %v1981_v52 = vsel %vm1953_vm1, %v6403_v40, -inf  ;;  %v1919_v56 = vld [vmem:[%s7014_s9 + $0x70] sm:$0xff]  ;;  %v1926_v38 = vld [vmem:[%s7014_s9 + $0xa8] sm:$0xff] }
 0x662   : > { %v4251_v60 = vpop.f32.mrb[12].mxu0  ;;  %v4263_v61 = vpop.f32.mrb[8].mxu1  ;;  %v6356_v62 = vadd.f32 %v1907_v54, %v1883_v55  ;;  %v6409_v45 = vadd.f32 %v1915_v36, %v1891_v31  ;;  %v1918_v55 = vld [vmem:[%s7014_s9 + $0x68] sm:$0xff] }
 0x663   : > { %v1782_v63 = vpop.f32.mrb[13].mxu0  ;;  %v1822_v0 = vpop.f32.mrb[9].mxu1  ;;  %v1886_v3 = vmul.f32 0.25, %v4251_v60  ;;  %v1963_v14 = vsel %vm1953_vm1, %v6358_v1, -inf  ;;  %v1894_v30 = vmul.f32 0.25, %v4263_v61  ;;  %v1987_v61 = vsel %vm1953_vm1, %v6417_v50, -inf }
 0x664   : > { %v1885_v4 = vmul.f32 0.25, %v1782_v63  ;;  %v1960_v6 = vsel %vm1953_vm1, %v6356_v62, -inf  ;;  %v1893_v42 = vmul.f32 0.25, %v1822_v0  ;;  %v1984_v53 = vsel %vm1953_vm1, %v6409_v45, -inf }
 0x665   : > { %1958 = vmax.xlane.f32.xlu0 %v1957_v5  ;;  %1961 = vmax.xlane.f32.xlu1 %v1960_v6  ;;  %v6379_v20 = vadd.f32 %v1910_v7, %v1886_v3  ;;  %v6433_v63 = vadd.f32 %v1918_v55, %v1894_v30  ;;  %v1920_v5 = vld [vmem:[%s7014_s9 + $0x78] sm:$0xff]  ;;  %v1921_v6 = vld [vmem:[%s7014_s9 + $0x80] sm:$0xff] }
 0x666   : > { %v4254_v8 = vpop.f32.mrb[14].mxu0  ;;  %v4266_v9 = vpop.f32.mrb[10].mxu1  ;;  %v6370_v10 = vadd.f32 %v1909_v2, %v1885_v4  ;;  %v6423_v54 = vadd.f32 %v1917_v47, %v1893_v42 }
 0x667   : > { %v1792_v12 = vpop.f32.mrb[15].mxu0  ;;  %v1832_v13 = vpop.f32.mrb[11].mxu1  ;;  %v1888_v16 = vmul.f32 0.25, %v4254_v8  ;;  %v1969_v32 = vsel %vm1953_vm1, %v6379_v20, -inf  ;;  %v1896_v0 = vmul.f32 0.25, %v4266_v9  ;;  %v1993_v8 = vsel %vm1953_vm1, %v6433_v63, -inf }
 0x668   : > { %v1887_v17 = vmul.f32 0.25, %v1792_v12  ;;  %v1966_v19 = vsel %vm1953_vm1, %v6370_v10, -inf  ;;  %v1895_v41 = vmul.f32 0.25, %v1832_v13  ;;  %v1990_v3 = vsel %vm1953_vm1, %v6423_v54, -inf }
 0x669   : > { %1964 = vmax.xlane.f32.xlu1 %v1963_v14  ;;  %1967 = vmax.xlane.f32.xlu0 %v1966_v19  ;;  %v6395_v34 = vadd.f32 %v1912_v22, %v1888_v16  ;;  %v6449_v12 = vadd.f32 %v1920_v5, %v1896_v0  ;;  %v1922_v14 = vld [vmem:[%s7014_s9 + $0x88] sm:$0xff] }
 0x66a   : > { %v4269_v24 = vpop.f32.mrb[12].mxu1  ;;  %v6387_v26 = vadd.f32 %v1911_v15, %v1887_v17  ;;  %v6437_v4 = vadd.f32 %v1919_v56, %v1895_v41  ;;  %v1923_v15 = vld [vmem:[%s7014_s9 + $0x90] sm:$0xff] }
 0x66b   : > { %v1842_v28 = vpop.f32.mrb[13].mxu1  ;;  %v1975_v43 = vsel %vm1953_vm1, %v6395_v34, -inf  ;;  %v1898_v7 = vmul.f32 0.25, %v4269_v24  ;;  %v1999_v21 = vsel %vm1953_vm1, %v6449_v12, -inf }
 0x66c   : > { %v1972_v33 = vsel %vm1953_vm1, %v6387_v26, -inf  ;;  %v1897_v2 = vmul.f32 0.25, %v1842_v28  ;;  %v1996_v11 = vsel %vm1953_vm1, %v6437_v4, -inf  ;;  %v1925_v28 = vld [vmem:[%s7014_s9 + $0xa0] sm:$0xff] }
 0x66d   : > { %1970 = vmax.xlane.f32.xlu1 %v1969_v32  ;;  %1973 = vmax.xlane.f32.xlu0 %v1972_v33  ;;  %v6459_v17 = vadd.f32 %v1922_v14, %v1898_v7 }
 0x66e   : > { %v4272_v37 = vpop.f32.mrb[14].mxu1  ;;  %v6451_v13 = vadd.f32 %v1921_v6, %v1897_v2 }
 0x66f   : > { %v1852_v39 = vpop.f32.mrb[15].mxu1  ;;  %v1900_v16 = vmul.f32 0.25, %v4272_v37  ;;  %v2005_v31 = vsel %vm1953_vm1, %v6459_v17, -inf }
 0x670   : > { %v1899_v9 = vmul.f32 0.25, %v1852_v39  ;;  %v2002_v22 = vsel %vm1953_vm1, %v6451_v13, -inf  ;;  %v1927_v39 = vld [vmem:[%s7014_s9 + $0xb0] sm:$0xff] }
 0x671   : > { %1976 = vmax.xlane.f32.xlu1 %v1975_v43  ;;  %1979 = vmax.xlane.f32.xlu0 %v1978_v44  ;;  %v6475_v32 = vadd.f32 %v1924_v27, %v1900_v16 }
 0x672   : > { %v4275_v48 = vpop.f32.mrb[16].mxu1  ;;  %v6465_v24 = vadd.f32 %v1923_v15, %v1899_v9 }
 0x673   : > { %v1862_v49 = vpop.f32.mrb[17].mxu1  ;;  %v1902_v33 = vmul.f32 0.25, %v4275_v48  ;;  %v2011_v42 = vsel %vm1953_vm1, %v6475_v32, -inf  ;;  %v1928_v48 = vld [vmem:[%s7014_s9 + $0xb8] sm:$0xff] }
 0x674   : > { %v1901_v19 = vmul.f32 0.25, %v1862_v49  ;;  %v2008_v36 = vsel %vm1953_vm1, %v6465_v24, -inf }
 0x675   : > { %1982 = vmax.xlane.f32.xlu1 %v1981_v52  ;;  %1985 = vmax.xlane.f32.xlu0 %v1984_v53  ;;  %v6491_v46 = vadd.f32 %v1926_v38, %v1902_v33 }
 0x676   : > { %v4278_v59 = vpop.f32.mrb[18].mxu1  ;;  %v6479_v37 = vadd.f32 %v1925_v28, %v1901_v19 }
 0x677   : > { %v1872_v60 = vpop.f32.mrb[19].mxu1  ;;  %v1904_v43 = vmul.f32 0.25, %v4278_v59  ;;  %v2017_v30 = vsel %vm1953_vm1, %v6491_v46, -inf }
 0x678   : > { %v1903_v35 = vmul.f32 0.25, %v1872_v60  ;;  %v2014_v44 = vsel %vm1953_vm1, %v6479_v37, -inf }
 0x679   : > { %1988 = vmax.xlane.f32.xlu1 %v1987_v61  ;;  %1991 = vmax.xlane.f32.xlu0 %v1990_v3  ;;  %v6502_v41 = vadd.f32 %v1928_v48, %v1904_v43 }
 0x67a   : > { %v6493_v47 = vadd.f32 %v1927_v39, %v1903_v35 }
 0x67b   : > { %v2023_v52 = vsel %vm1953_vm1, %v6502_v41, -inf }
 0x67c   : > { %v2020_v49 = vsel %vm1953_vm1, %v6493_v47, -inf }
 0x67d   : > { %1994 = vmax.xlane.f32.xlu1 %v1993_v8  ;;  %1997 = vmax.xlane.f32.xlu0 %v1996_v11 }
 0x681   : > { %2000 = vmax.xlane.f32.xlu1 %v1999_v21  ;;  %2003 = vmax.xlane.f32.xlu0 %v2002_v22 }
 0x685   : > { %2006 = vmax.xlane.f32.xlu1 %v2005_v31  ;;  %2009 = vmax.xlane.f32.xlu0 %v2008_v36 }
 0x689   : > { %2012 = vmax.xlane.f32.xlu1 %v2011_v42  ;;  %2015 = vmax.xlane.f32.xlu0 %v2014_v44 }
 0x68d   : > { %2018 = vmax.xlane.f32.xlu1 %v2017_v30  ;;  %2021 = vmax.xlane.f32.xlu0 %v2020_v49 }
 0x691   : > { %2024 = vmax.xlane.f32.xlu1 %v2023_v52 }
 0x6ee   : > { %v1956_v53 = vpop.xlane.xlu0 %1955 }
 0x6ef   : > { %v2026_v55 = vsub.f32 %v6344_v51, %v1956_v53 }
 0x6f1   : > { %v2050_v56 = vmul.f32 1.442695, %v2026_v55 }
 0x6f2   : > { %v1959_v59 = vpop.xlane.xlu0 %1958  ;;  %v1962_v60 = vpop.xlane.xlu1 %1961 }
 0x6f3   : > { %4646 = vpow2.f32 %v2050_v56  ;;  %v2027_v61 = vsub.f32 %v6351_v58, %v1959_v59  ;;  %v2028_v0 = vsub.f32 %v6356_v62, %v1962_v60 }
 0x6f5   : > { %v2052_v2 = vmul.f32 1.442695, %v2027_v61  ;;  %v2054_v3 = vmul.f32 1.442695, %v2028_v0 }
 0x6f6   : > { %v1965_v5 = vpop.xlane.xlu1 %1964  ;;  %v1968_v6 = vpop.xlane.xlu0 %1967 }
 0x6f7   : > { %4648 = vpow2.f32 %v2052_v2  ;;  %v2029_v7 = vsub.f32 %v6358_v1, %v1965_v5  ;;  %v2030_v8 = vsub.f32 %v6370_v10, %v1968_v6 }
 0x6f8   : > { %4650 = vpow2.f32 %v2054_v3 }
 0x6f9   : > { %v2056_v9 = vmul.f32 1.442695, %v2029_v7  ;;  %v2058_v51 = vmul.f32 1.442695, %v2030_v8 }
 0x6fa   : > { %v1971_v11 = vpop.xlane.xlu1 %1970  ;;  %v1974_v14 = vpop.xlane.xlu0 %1973 }
 0x6fb   : > { %4652 = vpow2.f32 %v2056_v9  ;;  %v2031_v15 = vsub.f32 %v6379_v20, %v1971_v11  ;;  %v2032_v58 = vsub.f32 %v6387_v26, %v1974_v14 }
 0x6fc   : > { %4654 = vpow2.f32 %v2058_v51 }
 0x6fd   : > { %v6513_v62 = vpop.eup %4646  ;;  %v2060_v16 = vmul.f32 1.442695, %v2031_v15  ;;  %v2062_v19 = vmul.f32 1.442695, %v2032_v58 }
 0x6fe   : > { %v1977_v21 = vpop.xlane.xlu1 %1976  ;;  %v1980_v22 = vpop.xlane.xlu0 %1979  ;;  %v2098_v1 = vsel %vm1953_vm1, %v6513_v62, 0.0 }
 0x6ff   : > { %4656 = vpow2.f32 %v2060_v16  ;;  %v2033_v10 = vsub.f32 %v6395_v34, %v1977_v21  ;;  %v2034_v27 = vsub.f32 %v6389_v29, %v1980_v22  ;;  %2099 = vadd.xlane.f32.xlu0 %v2098_v1 }
 0x700   : > { %4658 = vpow2.f32 %v2062_v19 }
 0x701   : > { %v6519_v20 = vpop.eup %4648  ;;  %v2064_v26 = vmul.f32 1.442695, %v2033_v10  ;;  %v2066_v28 = vmul.f32 1.442695, %v2034_v27 }
 0x702   : > { %v6521_v31 = vpop.eup %4650  ;;  %v1983_v33 = vpop.xlane.xlu1 %1982  ;;  %v2101_v36 = vsel %vm1953_vm1, %v6519_v20, 0.0 }
 0x703   : > { %v1986_v35 = vpop.xlane.xlu0 %1985  ;;  %4660 = vpow2.f32 %v2064_v26  ;;  %v2035_v38 = vsub.f32 %v6403_v40, %v1983_v33  ;;  %2102 = vadd.xlane.f32.xlu1 %v2101_v36  ;;  %v2104_v29 = vsel %vm1953_vm1, %v6521_v31, 0.0 }
 0x704   : > { %v2036_v34 = vsub.f32 %v6409_v45, %v1986_v35  ;;  %4662 = vpow2.f32 %v2066_v28  ;;  %2105 = vadd.xlane.f32.xlu0 %v2104_v29 }
 0x705   : > { %v6529_v39 = vpop.eup %4652  ;;  %v2068_v42 = vmul.f32 1.442695, %v2035_v38 }
 0x706   : > { %v2070_v43 = vmul.f32 1.442695, %v2036_v34  ;;  %v6531_v44 = vpop.eup %4654  ;;  %v1989_v48 = vpop.xlane.xlu1 %1988  ;;  %v2107_v49 = vsel %vm1953_vm1, %v6529_v39, 0.0 }
 0x707   : > { %v1992_v30 = vpop.xlane.xlu0 %1991  ;;  %4664 = vpow2.f32 %v2068_v42  ;;  %v2037_v40 = vsub.f32 %v6417_v50, %v1989_v48  ;;  %2108 = vadd.xlane.f32.xlu1 %v2107_v49  ;;  %v2110_v52 = vsel %vm1953_vm1, %v6531_v44, 0.0 }
 0x708   : > { %v2038_v45 = vsub.f32 %v6423_v54, %v1992_v30  ;;  %4666 = vpow2.f32 %v2070_v43  ;;  %2111 = vadd.xlane.f32.xlu0 %v2110_v52 }
 0x709   : > { %v6539_v53 = vpop.eup %4656  ;;  %v2072_v55 = vmul.f32 1.442695, %v2037_v40 }
 0x70a   : > { %v2074_v56 = vmul.f32 1.442695, %v2038_v45  ;;  %v6541_v59 = vpop.eup %4658  ;;  %v1995_v60 = vpop.xlane.xlu1 %1994  ;;  %v2113_v0 = vsel %vm1953_vm1, %v6539_v53, 0.0 }
 0x70b   : > { %v1998_v61 = vpop.xlane.xlu0 %1997  ;;  %4668 = vpow2.f32 %v2072_v55  ;;  %v2039_v50 = vsub.f32 %v6433_v63, %v1995_v60  ;;  %2114 = vadd.xlane.f32.xlu1 %v2113_v0  ;;  %v2116_v2 = vsel %vm1953_vm1, %v6541_v59, 0.0 }
 0x70c   : > { %v2040_v54 = vsub.f32 %v6437_v4, %v1998_v61  ;;  %4670 = vpow2.f32 %v2074_v56  ;;  %2117 = vadd.xlane.f32.xlu0 %v2116_v2 }
 0x70d   : > { %v6549_v3 = vpop.eup %4660  ;;  %v2076_v5 = vmul.f32 1.442695, %v2039_v50 }
 0x70e   : > { %v2078_v6 = vmul.f32 1.442695, %v2040_v54  ;;  %v6551_v7 = vpop.eup %4662  ;;  %v2001_v8 = vpop.xlane.xlu1 %2000  ;;  %v2119_v51 = vsel %vm1953_vm1, %v6549_v3, 0.0 }
 0x70f   : > { %v2004_v9 = vpop.xlane.xlu0 %2003  ;;  %4672 = vpow2.f32 %v2076_v5  ;;  %v2041_v63 = vsub.f32 %v6449_v12, %v2001_v8  ;;  %2120 = vadd.xlane.f32.xlu1 %v2119_v51  ;;  %v2122_v11 = vsel %vm1953_vm1, %v6551_v7, 0.0 }
 0x710   : > { %v2042_v4 = vsub.f32 %v6451_v13, %v2004_v9  ;;  %4674 = vpow2.f32 %v2078_v6  ;;  %2123 = vadd.xlane.f32.xlu0 %v2122_v11 }
 0x711   : > { %v6559_v14 = vpop.eup %4664  ;;  %v2080_v15 = vmul.f32 1.442695, %v2041_v63 }
 0x712   : > { %v2082_v58 = vmul.f32 1.442695, %v2042_v4  ;;  %v6561_v16 = vpop.eup %4666  ;;  %v2007_v19 = vpop.xlane.xlu1 %2006  ;;  %v2125_v22 = vsel %vm1953_vm1, %v6559_v14, 0.0 }
 0x713   : > { %v2010_v21 = vpop.xlane.xlu0 %2009  ;;  %4676 = vpow2.f32 %v2080_v15  ;;  %v2043_v12 = vsub.f32 %v6459_v17, %v2007_v19  ;;  %2126 = vadd.xlane.f32.xlu1 %v2125_v22  ;;  %v2128_v1 = vsel %vm1953_vm1, %v6561_v16, 0.0 }
 0x714   : > { %v2044_v13 = vsub.f32 %v6465_v24, %v2010_v21  ;;  %4678 = vpow2.f32 %v2082_v58  ;;  %2129 = vadd.xlane.f32.xlu0 %v2128_v1 }
 0x715   : > { %v6569_v10 = vpop.eup %4668  ;;  %v2084_v27 = vmul.f32 1.442695, %v2043_v12 }
 0x716   : > { %v2086_v26 = vmul.f32 1.442695, %v2044_v13  ;;  %v6571_v28 = vpop.eup %4670  ;;  %v2013_v33 = vpop.xlane.xlu1 %2012  ;;  %v2131_v36 = vsel %vm1953_vm1, %v6569_v10, 0.0 }
 0x717   : > { %v2016_v35 = vpop.xlane.xlu0 %2015  ;;  %4680 = vpow2.f32 %v2084_v27  ;;  %v2045_v17 = vsub.f32 %v6475_v32, %v2013_v33  ;;  %2132 = vadd.xlane.f32.xlu1 %v2131_v36  ;;  %v2134_v38 = vsel %vm1953_vm1, %v6571_v28, 0.0 }
 0x718   : > { %v2046_v24 = vsub.f32 %v6479_v37, %v2016_v35  ;;  %4682 = vpow2.f32 %v2086_v26  ;;  %2135 = vadd.xlane.f32.xlu0 %v2134_v38 }
 0x719   : > { %v6579_v34 = vpop.eup %4672  ;;  %v2088_v29 = vmul.f32 1.442695, %v2045_v17 }
 0x71a   : > { %v2090_v42 = vmul.f32 1.442695, %v2046_v24  ;;  %v6581_v43 = vpop.eup %4674  ;;  %v2019_v48 = vpop.xlane.xlu1 %2018  ;;  %v2137_v49 = vsel %vm1953_vm1, %v6579_v34, 0.0 }
 0x71b   : > { %v2022_v30 = vpop.xlane.xlu0 %2021  ;;  %4684 = vpow2.f32 %v2088_v29  ;;  %v2047_v32 = vsub.f32 %v6491_v46, %v2019_v48  ;;  %2138 = vadd.xlane.f32.xlu1 %v2137_v49  ;;  %v2140_v40 = vsel %vm1953_vm1, %v6581_v43, 0.0 }
 0x71c   : > { %v2048_v37 = vsub.f32 %v6493_v47, %v2022_v30  ;;  %4686 = vpow2.f32 %v2090_v42  ;;  %2141 = vadd.xlane.f32.xlu0 %v2140_v40 }
 0x71d   : > { %v6589_v45 = vpop.eup %4676  ;;  %v2092_v52 = vmul.f32 1.442695, %v2047_v32 }
 0x71e   : > { %v2094_v55 = vmul.f32 1.442695, %v2048_v37  ;;  %v6591_v56 = vpop.eup %4678  ;;  %v2025_v60 = vpop.xlane.xlu1 %2024  ;;  %v2143_v61 = vsel %vm1953_vm1, %v6589_v45, 0.0 }
 0x71f   : > { %4688 = vpow2.f32 %v2092_v52  ;;  %v2049_v46 = vsub.f32 %v6502_v41, %v2025_v60  ;;  %2144 = vadd.xlane.f32.xlu1 %v2143_v61  ;;  %v2146_v47 = vsel %vm1953_vm1, %v6591_v56, 0.0 }
 0x720   : > { %4690 = vpow2.f32 %v2094_v55  ;;  %2147 = vadd.xlane.f32.xlu0 %v2146_v47 }
 0x721   : > { %v6598_v0 = vpop.eup %4680  ;;  %v2096_v50 = vmul.f32 1.442695, %v2049_v46 }
 0x722   : > { %v6600_v54 = vpop.eup %4682  ;;  %v2149_v2 = vsel %vm1953_vm1, %v6598_v0, 0.0 }
 0x723   : > { %4692 = vpow2.f32 %v2096_v50  ;;  %2150 = vadd.xlane.f32.xlu1 %v2149_v2  ;;  %v2152_v5 = vsel %vm1953_vm1, %v6600_v54, 0.0 }
 0x724   : > { %2153 = vadd.xlane.f32.xlu0 %v2152_v5 }
 0x725   : > { %v6606_v41 = vpop.eup %4684 }
 0x726   : > { %v6608_v6 = vpop.eup %4686  ;;  %v2155_v8 = vsel %vm1953_vm1, %v6606_v41, 0.0 }
 0x727   : > { %2156 = vadd.xlane.f32.xlu1 %v2155_v8  ;;  %v2158_v9 = vsel %vm1953_vm1, %v6608_v6, 0.0 }
 0x728   : > { %2159 = vadd.xlane.f32.xlu0 %v2158_v9 }
 0x729   : > { %v6614_v51 = vpop.eup %4688 }
 0x72a   : > { %v6616_v63 = vpop.eup %4690  ;;  %v2161_v4 = vsel %vm1953_vm1, %v6614_v51, 0.0 }
 0x72b   : > { %2162 = vadd.xlane.f32.xlu1 %v2161_v4  ;;  %v2164_v11 = vsel %vm1953_vm1, %v6616_v63, 0.0 }
 0x72c   : > { %2165 = vadd.xlane.f32.xlu0 %v2164_v11 }
 0x72d   : > { %v6622_v15 = vpop.eup %4692 }
 0x72e   : > { %v2167_v58 = vsel %vm1953_vm1, %v6622_v15, 0.0 }
 0x72f   : > { %2168 = vadd.xlane.f32.xlu1 %v2167_v58 }
 0x78c   : > { %v2100_v19 = vpop.xlane.xlu0 %2099 }
 0x78d   : > { %4694 = vrcp.f32 %v2100_v19 }
 0x790   : > { %v2103_v21 = vpop.xlane.xlu1 %2102 }
 0x791   : > { %4696 = vrcp.f32 %v2103_v21  ;;  %v2106_v22 = vpop.xlane.xlu0 %2105 }
 0x792   : > { %4698 = vrcp.f32 %v2106_v22 }
 0x794   : > { %v2109_v12 = vpop.xlane.xlu1 %2108 }
 0x795   : > { %4700 = vrcp.f32 %v2109_v12  ;;  %v2112_v13 = vpop.xlane.xlu0 %2111 }
 0x796   : > { %4702 = vrcp.f32 %v2112_v13 }
 0x797   : > { %v4695_v1 = vpop.eup %4694 }
 0x798   : > { %v2115_v27 = vpop.xlane.xlu1 %2114  ;;  %v2194_v26 = vmul.f32 %v4695_v1, %v6513_v62 }
 0x799   : > { %4704 = vrcp.f32 %v2115_v27  ;;  %v2118_v33 = vpop.xlane.xlu0 %2117 }
 0x79a   : > { %4706 = vrcp.f32 %v2118_v33  ;;  %4285 = vmatprep.mubr.msk.f32.mxu0 %vm1953_vm1, %v2194_v26 }
 0x79b   : > { %v4697_v35 = vpop.eup %4696 }
 0x79c   : > { %v4699_v36 = vpop.eup %4698  ;;  %v2195_v17 = vmul.f32 %v4697_v35, %v6519_v20  ;;  %v2121_v24 = vpop.xlane.xlu1 %2120 }
 0x79d   : > { %4708 = vrcp.f32 %v2121_v24  ;;  %v2124_v38 = vpop.xlane.xlu0 %2123  ;;  %v2196_v29 = vmul.f32 %v4699_v36, %v6521_v31 }
 0x79e   : > { %4710 = vrcp.f32 %v2124_v38  ;;  %4286 = vmatmul.mubr.msk.f32.vlgmr.msra.gmra.mrb[16].mxu0 %vm1953_vm1, %v2195_v17 }
 0x79f   : > { %v4701_v42 = vpop.eup %4700  ;;  %4288 = vmatprep.mubr.msk.f32.mxu0 %vm1953_vm1, %v2196_v29 }
 0x7a0   : > { %v4703_v62 = vpop.eup %4702  ;;  %v2127_v48 = vpop.xlane.xlu1 %2126  ;;  %v2197_v30 = vmul.f32 %v4701_v42, %v6529_v39 }
 0x7a1   : > { %4712 = vrcp.f32 %v2127_v48  ;;  %v2130_v49 = vpop.xlane.xlu0 %2129  ;;  %v2198_v32 = vmul.f32 %v4703_v62, %v6531_v44  ;;  %v4601_v62 = vld [vmem:[%s6250_s6 + $0x18] sm:$0xff]   ;;  %v4603_v48 = vld [vmem:[%s6250_s6 + $0x28] sm:$0xff]  }
 0x7a2   : > { %4714 = vrcp.f32 %v2130_v49  ;;  %4289 = vmatmul.mubr.msk.f32.gmra.mrb[18].mxu0 %vm1953_vm1, %v2197_v30  ;;  %v4604_v30 = vld [vmem:[%s6250_s6 + $0x30] sm:$0xff]   ;;  %v4605_v49 = vld [vmem:[%s6250_s6 + $0x38] sm:$0xff]  }
 0x7a3   : > { %v4705_v20 = vpop.eup %4704  ;;  %4291 = vmatprep.mubr.msk.f32.mxu0 %vm1953_vm1, %v2198_v32 }
 0x7a4   : > { %v4707_v31 = vpop.eup %4706  ;;  %v2133_v37 = vpop.xlane.xlu1 %2132  ;;  %v2199_v40 = vmul.f32 %v4705_v20, %v6539_v53 }
 0x7a5   : > { %4716 = vrcp.f32 %v2133_v37  ;;  %v2136_v52 = vpop.xlane.xlu0 %2135  ;;  %v2200_v55 = vmul.f32 %v4707_v31, %v6541_v59  ;;  %v4766_v37 = vld [vmem:[#allocation26] sm:$0xff] }
 0x7a6   : > { %4718 = vrcp.f32 %v2136_v52  ;;  %4292 = vmatmul.mubr.msk.f32.gmra.mrb[20].mxu0 %vm1953_vm1, %v2199_v40  ;;  %v4767_v52 = vld [vmem:[#allocation26 + $0x18] sm:$0xff] }
 0x7a7   : > { %v4709_v39 = vpop.eup %4708  ;;  %4294 = vmatprep.mubr.msk.f32.mxu0 %vm1953_vm1, %v2200_v55 }
 0x7a8   : > { %v4711_v44 = vpop.eup %4710  ;;  %v2139_v60 = vpop.xlane.xlu1 %2138  ;;  %v2201_v61 = vmul.f32 %v4709_v39, %v6549_v3 }
 0x7a9   : > { %4720 = vrcp.f32 %v2139_v60  ;;  %v2142_v46 = vpop.xlane.xlu0 %2141  ;;  %v2202_v47 = vmul.f32 %v4711_v44, %v6551_v7 }
 0x7aa   : > { %4722 = vrcp.f32 %v2142_v46  ;;  %4295 = vmatmul.mubr.msk.f32.gmra.mrb[22].mxu0 %vm1953_vm1, %v2201_v61  ;;  %v4768_v61 = vld [vmem:[#allocation26 + $0x10] sm:$0xff] }
 0x7ab   : > { %v4713_v53 = vpop.eup %4712  ;;  %4297 = vmatprep.mubr.msk.f32.mxu0 %vm1953_vm1, %v2202_v47  ;;  %v4769_v47 = vld [vmem:[#allocation26 + $0x28] sm:$0xff] }
 0x7ac   : > { %v4715_v59 = vpop.eup %4714  ;;  %v2145_v50 = vpop.xlane.xlu1 %2144  ;;  %v2203_v2 = vmul.f32 %v4713_v53, %v6559_v14 }
 0x7ad   : > { %4724 = vrcp.f32 %v2145_v50  ;;  %v2148_v5 = vpop.xlane.xlu0 %2147  ;;  %v2204_v8 = vmul.f32 %v4715_v59, %v6561_v16  ;;  %v4770_v50 = vld [vmem:[#allocation26 + $0x8] sm:$0xff] }
 0x7ae   : > { %4726 = vrcp.f32 %v2148_v5  ;;  %4298 = vmatmul.mubr.msk.f32.gmra.mrb[24].mxu0 %vm1953_vm1, %v2203_v2  ;;  %v4771_v5 = vld [vmem:[#allocation26 + $0x20] sm:$0xff] }
 0x7af   : > { %v4717_v3 = vpop.eup %4716  ;;  %4300 = vmatprep.mubr.msk.f32.mxu0 %vm1953_vm1, %v2204_v8 }
 0x7b0   : > { %v4719_v7 = vpop.eup %4718  ;;  %v2151_v9 = vpop.xlane.xlu1 %2150  ;;  %v2205_v4 = vmul.f32 %v4717_v3, %v6569_v10 }
 0x7b1   : > { %4728 = vrcp.f32 %v2151_v9  ;;  %v2154_v11 = vpop.xlane.xlu0 %2153  ;;  %v2206_v58 = vmul.f32 %v4719_v7, %v6571_v28 }
 0x7b2   : > { %4730 = vrcp.f32 %v2154_v11  ;;  %4301 = vmatmul.mubr.msk.f32.gmra.mrb[26].mxu0 %vm1953_vm1, %v2205_v4 }
 0x7b3   : > { %v4721_v14 = vpop.eup %4720  ;;  %4303 = vmatprep.mubr.msk.f32.mxu0 %vm1953_vm1, %v2206_v58  ;;  %v4772_v58 = vld [vmem:[#allocation26 + $0x30] sm:$0xff] }
 0x7b4   : > { %v4723_v16 = vpop.eup %4722  ;;  %v2157_v19 = vpop.xlane.xlu1 %2156  ;;  %v2207_v21 = vmul.f32 %v4721_v14, %v6579_v34 }
 0x7b5   : > { %4732 = vrcp.f32 %v2157_v19  ;;  %v2160_v22 = vpop.xlane.xlu0 %2159  ;;  %v2208_v12 = vmul.f32 %v4723_v16, %v6581_v43 }
 0x7b6   : > { %4734 = vrcp.f32 %v2160_v22  ;;  %4304 = vmatmul.mubr.msk.f32.gmra.mrb[28].mxu0 %vm1953_vm1, %v2207_v21  ;;  %v4773_v22 = vld [vmem:[#allocation26 + $0x48] sm:$0xff] }
 0x7b7   : > { %v4725_v10 = vpop.eup %4724  ;;  %4306 = vmatprep.mubr.msk.f32.mxu0 %vm1953_vm1, %v2208_v12 }
 0x7b8   : > { %v4727_v28 = vpop.eup %4726  ;;  %v2163_v13 = vpop.xlane.xlu1 %2162  ;;  %v2209_v1 = vmul.f32 %v4725_v10, %v6589_v45 }
 0x7b9   : > { %4736 = vrcp.f32 %v2163_v13  ;;  %v2166_v27 = vpop.xlane.xlu0 %2165  ;;  %v2210_v26 = vmul.f32 %v4727_v28, %v6591_v56  ;;  %v4774_v28 = vld [vmem:[#allocation26 + $0x40] sm:$0xff] }
 0x7ba   : > { %4738 = vrcp.f32 %v2166_v27  ;;  %4307 = vmatmul.mubr.msk.f32.gmra.mrb[30].mxu0 %vm1953_vm1, %v2209_v1 }
 0x7bb   : > { %v4729_v34 = vpop.eup %4728  ;;  %4309 = vmatprep.mubr.msk.f32.mxu0 %vm1953_vm1, %v2210_v26 }
 0x7bc   : > { %v4731_v43 = vpop.eup %4730  ;;  %v2169_v33 = vpop.xlane.xlu1 %2168  ;;  %v2211_v35 = vmul.f32 %v4729_v34, %v6598_v0  ;;  %v4775_v34 = vld [vmem:[#allocation26 + $0x58] sm:$0xff] }
 0x7bd   : > { %4740 = vrcp.f32 %v2169_v33  ;;  %v2212_v36 = vmul.f32 %v4731_v43, %v6600_v54 }
 0x7be   : > { %4310 = vmatmul.mubr.msk.f32.gmra.mrb[32].mxu0 %vm1953_vm1, %v2211_v35  ;;  %v4776_v35 = vld [vmem:[#allocation26 + $0x50] sm:$0xff] }
 0x7bf   : > { %v4733_v45 = vpop.eup %4732  ;;  %4312 = vmatprep.mubr.msk.f32.mxu0 %vm1953_vm1, %v2212_v36 }
 0x7c0   : > { %v4735_v56 = vpop.eup %4734  ;;  %v2213_v17 = vmul.f32 %v4733_v45, %v6606_v41 }
 0x7c1   : > { %v2214_v24 = vmul.f32 %v4735_v56, %v6608_v6  ;;  %v4598_v6 = vld [vmem:[%s6250_s6] sm:$0xff]  }
 0x7c2   : > { %4313 = vmatmul.mubr.msk.f32.gmra.mrb[34].mxu0 %vm1953_vm1, %v2213_v17  ;;  %4321 = vmatprep.subr.bf16.mxu1 %v4598_v6  ;;  %v4777_v17 = vld [vmem:[#allocation26 + $0x68] sm:$0xff] }
 0x7c3   : > { %v4737_v38 = vpop.eup %4736  ;;  %4315 = vmatprep.mubr.msk.f32.mxu0 %vm1953_vm1, %v2214_v24  ;;  %4322 = vmatpush3.bf16.msra.mxu1 %v4598_v6  ;;  %v4779_v6 = vld [vmem:[#allocation26 + $0x78] sm:$0xff] }
 0x7c4   : > { %v4739_v0 = vpop.eup %4738  ;;  %v2215_v54 = vmul.f32 %v4737_v38, %v6614_v51  ;;  %v4599_v51 = vld [vmem:[%s6250_s6 + $0x8] sm:$0xff]  }
 0x7c5   : > { %v2216_v29 = vmul.f32 %v4739_v0, %v6616_v63  ;;  %4323 = vmatprep.subr.bf16.mxu1 %v4599_v51  ;;  %v4600_v63 = vld [vmem:[%s6250_s6 + $0x10] sm:$0xff]   ;;  %v4778_v0 = vld [vmem:[#allocation26 + $0x60] sm:$0xff] }
 0x7c6   : > { %4316 = vmatmul.mubr.msk.f32.gmra.mrb[36].mxu0 %vm1953_vm1, %v2215_v54 }
 0x7c7   : > { %v4741_v42 = vpop.eup %4740  ;;  %4318 = vmatprep.mubr.msk.f32.mxu0 %vm1953_vm1, %v2216_v29  ;;  %4324 = vmatpush3.bf16.msra.mxu1 %v4599_v51 }
 0x7c8   : > { %v2217_v41 = vmul.f32 %v4741_v42, %v6622_v15  ;;  %4325 = vmatprep.subr.bf16.mxu1 %v4600_v63  ;;  %v4602_v15 = vld [vmem:[%s6250_s6 + $0x20] sm:$0xff]  }
 0x7ca   : > { %4319 = vmatmul.mubr.msk.f32.gmra.mrb[38].mxu0 %vm1953_vm1, %v2217_v41 }
 0x7cb   : > { %2840 = vmatprep.mubr.bf16.mxu0 %v5501_v57  ;;  %4326 = vmatpush3.bf16.msra.mxu1 %v4600_v63 }
 0x7cc   : > { %4327 = vmatprep.subr.bf16.mxu1 %v4601_v62 }
 0x7cf   : > { %4328 = vmatpush3.bf16.msra.mxu1 %v4601_v62  ;;  %v4780_v62 = vld [vmem:[#allocation26 + $0x70] sm:$0xff] }
 0x7d0   : > { %4329 = vmatprep.subr.bf16.mxu1 %v4602_v15 }
 0x7d3   : > { %4330 = vmatpush3.bf16.msra.mxu1 %v4602_v15 }
 0x7d4   : > { %4331 = vmatprep.subr.bf16.mxu1 %v4603_v48 }
 0x7d7   : > { %4332 = vmatpush3.bf16.msra.mxu1 %v4603_v48 }
 0x7d8   : > { %4333 = vmatprep.subr.bf16.mxu1 %v4604_v30 }
 0x7db   : > { %4334 = vmatpush3.bf16.msra.mxu1 %v4604_v30 }
 0x7dc   : > { %4335 = vmatprep.subr.bf16.mxu1 %v4605_v49 }
 0x7df   : > { %4336 = vmatpush3.bf16.msra.mxu1 %v4605_v49 }
 0x871   : > { %v4287_v32 = vpop.f32.mrb[16].mxu0 }
 0x872   : > { %v2356_v20 = vpop.f32.mrb[17].mxu0  ;;  %v2476_v2 = vmul.f32 %v4770_v50, %v4287_v32  ;;  %v4781_v32 = vld [vmem:[#allocation26 + $0x88] sm:$0xff] }
 0x873   : > { %v2475_v40 = vmul.f32 %v4766_v37, %v2356_v20  ;;  %v4782_v37 = vld [vmem:[#allocation26 + $0x80] sm:$0xff] }
 0x875   : > { %v4290_v31 = vpop.f32.mrb[18].mxu0 }
 0x876   : > { %v2478_v55 = vmul.f32 %v4767_v52, %v4290_v31  ;;  %v2366_v39 = vpop.f32.mrb[19].mxu0 }
 0x877   : > { %v2477_v46 = vmul.f32 %v4768_v61, %v2366_v39 }
 0x878   : > { %v2499_v44 = vadd.f32 %v2478_v55, %v2475_v40 }
 0x879   : > { %v4293_v60 = vpop.f32.mrb[20].mxu0 }
 0x87a   : > { %v2480_v53 = vmul.f32 %v4769_v47, %v4293_v60  ;;  %v2376_v59 = vpop.f32.mrb[21].mxu0 }
 0x87b   : > { %v2479_v8 = vmul.f32 %v4771_v5, %v2376_v59 }
 0x87c   : > { %v2501_v3 = vadd.f32 %v2480_v53, %v2477_v46  ;;  %v4784_v46 = vld [vmem:[#allocation26 + $0x90] sm:$0xff] }
 0x87d   : > { %v2500_v7 = vadd.f32 %v2479_v8, %v2476_v2  ;;  %v4296_v9 = vpop.f32.mrb[22].mxu0  ;;  %v4785_v2 = vld [vmem:[#allocation26 + $0xa8] sm:$0xff] }
 0x87e   : > { %v2482_v4 = vmul.f32 %v4296_v9, %v6325_v18  ;;  %v2386_v11 = vpop.f32.mrb[23].mxu0 }
 0x87f   : > { %v2481_v14 = vmul.f32 %v4772_v58, %v2386_v11  ;;  %v4787_v58 = vld [vmem:[#allocation26 + $0xb8] sm:$0xff] }
 0x880   : > { %v2503_v16 = vadd.f32 %v2500_v7, %v2482_v4 }
 0x881   : > { %v2502_v19 = vadd.f32 %v2499_v44, %v2481_v14  ;;  %v4299_v21 = vpop.f32.mrb[24].mxu0  ;;  %v4783_v44 = vld [vmem:[#allocation26 + $0x98] sm:$0xff] }
 0x882   : > { %v2484_v12 = vmul.f32 %v4773_v22, %v4299_v21  ;;  %v2396_v10 = vpop.f32.mrb[25].mxu0 }
 0x883   : > { %v2483_v13 = vmul.f32 %v4774_v28, %v2396_v10 }
 0x884   : > { %v2505_v1 = vadd.f32 %v2502_v19, %v2484_v12  ;;  %v4788_v19 = vld [vmem:[#allocation26 + $0xb0] sm:$0xff] }
 0x885   : > { %v2504_v27 = vadd.f32 %v2501_v3, %v2483_v13  ;;  %v4302_v26 = vpop.f32.mrb[26].mxu0  ;;  %v4786_v3 = vld [vmem:[#allocation26 + $0xa0] sm:$0xff] }
 0x886   : > { %v2486_v43 = vmul.f32 %v4775_v34, %v4302_v26  ;;  %v2406_v33 = vpop.f32.mrb[27].mxu0  ;;  %v3991_v13 = vld [vmem:[%s1025_s7] ss:$0 sm:$0xff]  ;;  %s7015_s7 = scalar_lea.vmem [#allocation20], %s6207_s3 }
 0x887   : > { %v2485_v36 = vmul.f32 %v4776_v35, %v2406_v33 }
 0x888   : > { %v2507_v18 = vadd.f32 %v2504_v27, %v2486_v43 }
 0x889   : > { %v2506_v45 = vadd.f32 %v2503_v16, %v2485_v36  ;;  %v4305_v56 = vpop.f32.mrb[28].mxu0  ;;  %v4789_v36 = vld [vmem:[#allocation2] sm:$0xff] }
 0x88a   : > { %v2488_v24 = vmul.f32 %v4777_v17, %v4305_v56  ;;  %v2416_v38 = vpop.f32.mrb[29].mxu0  ;;  %v4791_v17 = vld [vmem:[#allocation2 + $0x10] sm:$0xff] }
 0x88b   : > { %v2487_v54 = vmul.f32 %v4778_v0, %v2416_v38  ;;  %v4606_v38 = vld [vmem:[%s6224_s25] ss:$8 sps:$4 sm:$0xff]   ;;  %v4608_v0 = vld [vmem:[%s6224_s25 + $0x4] ss:$8 sps:$4 sm:$0xff]  }
 0x88c   : > { %v2509_v29 = vadd.f32 %v2506_v45, %v2488_v24  ;;  %v4790_v45 = vld [vmem:[#allocation2 + $0x8] sm:$0xff]  ;;  %2808 = vmatprep.subr.bf16.mxu0 %v4608_v0  ;;  %v4640_v0 = vld [vmem:[%s6228_s30 + $0x68] sm:$0xff]  }
 0x88d   : > { %v2508_v42 = vadd.f32 %v2505_v1, %v2487_v54  ;;  %v4308_v41 = vpop.f32.mrb[30].mxu0  ;;  %v4611_v54 = vld [vmem:[%s6224_s25 + $0x14] ss:$8 sps:$4 sm:$0xff]   ;;  %2809 = vmatpush1.bf16.msra.mxu0 %v4606_v38  ;;  %v4639_v38 = vld [vmem:[%s6228_s30 + $0x20] sm:$0xff]  }
 0x88e   : > { %v2490_v51 = vmul.f32 %v4779_v6, %v4308_v41  ;;  %v2426_v63 = vpop.f32.mrb[31].mxu0  ;;  %2810 = vmatprep.subr.bf16.mxu0 %v4611_v54  ;;  %v4612_v41 = vld [vmem:[%s6224_s25 + $0x20] ss:$8 sps:$4 sm:$0xff]   ;;  %v4617_v6 = vld [vmem:[%s6224_s25 + $0x34] ss:$8 sps:$4 sm:$0xff]   ;;  %v4641_v54 = vld [vmem:[%s6228_s30 + $0x28] sm:$0xff]  }
 0x88f   : > { %v2489_v15 = vmul.f32 %v4780_v62, %v2426_v63 }
 0x890   : > { %v2511_v48 = vadd.f32 %v2508_v42, %v2490_v51  ;;  %v4614_v42 = vld [vmem:[%s6224_s25 + $0x24] ss:$8 sps:$4 sm:$0xff]   ;;  %v4615_v51 = vld [vmem:[%s6224_s25 + $0x30] ss:$8 sps:$4 sm:$0xff]  }
 0x891   : > { %v2510_v30 = vadd.f32 %v2507_v18, %v2489_v15  ;;  %v4311_v49 = vpop.f32.mrb[32].mxu0 }
 0x892   : > { %v2492_v20 = vmul.f32 %v4781_v32, %v4311_v49  ;;  %v2436_v31 = vpop.f32.mrb[33].mxu0 }
 0x893   : > { %v2491_v40 = vmul.f32 %v4782_v37, %v2436_v31 }
 0x894   : > { %v2513_v52 = vadd.f32 %v2510_v30, %v2492_v20 }
 0x895   : > { %v2512_v55 = vadd.f32 %v2509_v29, %v2491_v40  ;;  %v4314_v39 = vpop.f32.mrb[34].mxu0  ;;  %v4609_v29 = vld [vmem:[%s6224_s25 + $0x10] ss:$8 sps:$4 sm:$0xff]  }
 0x896   : > { %v2494_v60 = vmul.f32 %v4783_v44, %v4314_v39  ;;  %v2446_v61 = vpop.f32.mrb[35].mxu0  ;;  %2811 = vmatpush1.bf16.msra.mxu0 %v4609_v29  ;;  %v4618_v39 = vld [vmem:[%s6224_s25 + $0x40] ss:$8 sps:$4 sm:$0xff]   ;;  %v4623_v44 = vld [vmem:[%s6224_s25 + $0x54] ss:$8 sps:$4 sm:$0xff]  }
 0x897   : > { %v2493_v47 = vmul.f32 %v4784_v46, %v2446_v61  ;;  %2812 = vmatprep.subr.bf16.mxu0 %v4614_v42  ;;  %v4624_v61 = vld [vmem:[%s6224_s25 + $0x60] ss:$8 sps:$4 sm:$0xff]   ;;  %v4626_v46 = vld [vmem:[%s6224_s25 + $0x64] ss:$8 sps:$4 sm:$0xff]   ;;  %v4642_v29 = vld [vmem:[%s6228_s30 + $0x70] sm:$0xff]  }
 0x898   : > { %v2515_v53 = vadd.f32 %v2512_v55, %v2494_v60  ;;  %v4620_v55 = vld [vmem:[%s6224_s25 + $0x44] ss:$8 sps:$4 sm:$0xff]   ;;  %v4621_v60 = vld [vmem:[%s6224_s25 + $0x50] ss:$8 sps:$4 sm:$0xff]  }
 0x899   : > { %v2514_v59 = vadd.f32 %v2511_v48, %v2493_v47  ;;  %v4317_v50 = vpop.f32.mrb[36].mxu0  ;;  %v4629_v47 = vld [vmem:[%s6224_s25 + $0x74] ss:$8 sps:$4 sm:$0xff]  }
 0x89a   : > { %v2496_v5 = vmul.f32 %v4785_v2, %v4317_v50  ;;  %v2456_v8 = vpop.f32.mrb[37].mxu0  ;;  %2813 = vmatpush1.bf16.msra.mxu0 %v4612_v41  ;;  %v4643_v42 = vld [vmem:[%s6228_s30 + $0x30] sm:$0xff]   ;;  %v4644_v41 = vld [vmem:[%s6228_s30 + $0x78] sm:$0xff]  }
 0x89b   : > { %v2495_v7 = vmul.f32 %v4786_v3, %v2456_v8  ;;  %2814 = vmatprep.subr.bf16.mxu0 %v4617_v6  ;;  %v4645_v6 = vld [vmem:[%s6228_s30 + $0x38] sm:$0xff]  }
 0x89c   : > { %v2517_v9 = vadd.f32 %v2514_v59, %v2496_v5 }
 0x89d   : > { %v2516_v4 = vadd.f32 %v2513_v52, %v2495_v7  ;;  %v4320_v11 = vpop.f32.mrb[38].mxu0 }
 0x89e   : > { %v2498_v14 = vmul.f32 %v4787_v58, %v4320_v11  ;;  %v2466_v16 = vpop.f32.mrb[39].mxu0  ;;  %2815 = vmatpush1.bf16.msra.mxu0 %v4615_v51  ;;  %v4000_v58 = vld [vmem:[%s1033_s27] ss:$0 sm:$0xff]  ;;  %v2714_v51 = vld [vmem:[%s6226_s8] sm:$0x3]  ;;  %s7016_s27 = scalar_lea.vmem [#allocation21], %s6207_s3 }
 0x89f   : > { %v2497_v21 = vmul.f32 %v4788_v19, %v2466_v16  ;;  %2816 = vmatprep.subr.bf16.mxu0 %v4620_v55 }
 0x8a0   : > { %v2519_v22 = vadd.f32 %v2516_v4, %v2498_v14 }
 0x8a1   : > { %v2518_v12 = vadd.f32 %v2515_v53, %v2497_v21  ;;  %v4627_v53 = vld [vmem:[%s6224_s25 + $0x70] ss:$8 sps:$4 sm:$0xff]  }
 0x8a2   : > { %v2538_v28 = vpack.c.bf16 %v2519_v22, %v2519_v22  ;;  %2817 = vmatpush1.bf16.msra.mxu0 %v4618_v39 }
 0x8a3   : > { %v2537_v10 = vpack.c.bf16 %v2518_v12, %v2517_v9  ;;  %2818 = vmatprep.subr.bf16.mxu0 %v4623_v44  ;;  %v4001_v12 = vld [vmem:[%s1041_s11] ss:$0 sm:$0xff]  ;;  %s7017_s11 = sld [smem:[#allocation38_spill]] }
 0x8a5   : > { %4337 = vmatprep.mubr.bf16.mxu1 %v2537_v10 }
 0x8a6   : > { %4338 = vmatmul.mubr.bf16.vlgmr.msra.gmra.mrb[20].mxu1 %v2538_v28  ;;  %2819 = vmatpush1.bf16.msra.mxu0 %v4621_v60 }
 0x8a7   : > { %2820 = vmatprep.subr.bf16.mxu0 %v4626_v46 }
 0x8a9   : > { %p4037_p6 = scmp.ne.s32.totalorder %s7017_s11, 3 }
 0x8aa   : > { %2821 = vmatpush1.bf16.msra.mxu0 %v4624_v61  ;;  %vm5503_vm2 = vmmov (!%p4037_p6), 0   ;;  %s7018_s8 = sld [smem:[#allocation65_spill]] (!%p4037_p6)  ;;  %s7019_s6 = sld [smem:[#allocation62_spill]] (!%p4037_p6)  ;;  %vm3566_vm3 = vcmask (!%p4037_p6), 123904  }
 0x8ab   : > { %2822 = vmatprep.subr.bf16.mxu0 %v4629_v47 }
 0x8ae   : > { %2823 = vmatpush1.bf16.msra.mxu0 %v4627_v53 }
 0x8b0   : > { %s7020_s12 = smov (!%p4037_p6), %s7019_s6 }
 0x979   : > { %v4339_v1 = vpop.f32.mrb[20].mxu1 }
 0x97a   : > { %v2627_v27 = vpop.f32.mrb[21].mxu1  ;;  %v2636_v33 = vadd.f32 %v4339_v1, %v3991_v13 }
 0x97b   : > { %v2628_v26 = vadd.f32 %v3991_v13, %v2627_v27  ;;  %v4340_v34 = vpop.f32.mrb[22].mxu1 }
 0x97c   : > { %v2630_v43 = vpop.f32.mrb[23].mxu1  ;;  %v2643_v24 = vadd.f32 %v4791_v17, %v2636_v33  ;;  %v4630_v33 = vld [vmem:[%s6228_s30 + $0x40] sm:$0xff]   ;;  %v4637_v17 = vld [vmem:[%s6228_s30 + $0x18] sm:$0xff]  }
 0x97d   : > { %v2631_v35 = vadd.f32 %v3991_v13, %v2630_v43  ;;  %v2641_v18 = vadd.f32 %v4789_v36, %v2628_v26  ;;  %4157 = vmatprep.subr.bf16.mxu1 %v4630_v33  ;;  %v4632_v36 = vld [vmem:[%s6228_s30 + $0x48] sm:$0xff]  }
 0x97f   : > { %2646 = vadd.xlane.f32.xlu0 %v2641_v18  ;;  %v2642_v56 = vadd.f32 %v4790_v45, %v2631_v35  ;;  %v4631_v35 = vld [vmem:[%s6228_s30] sm:$0xff]   ;;  %v4635_v45 = vld [vmem:[%s6228_s30 + $0x10] sm:$0xff]  }
 0x980   : > { %4158 = vmatpush3.bf16.msra.mxu1 %v4631_v35 }
 0x981   : > { %2648 = vadd.xlane.f32.xlu1 %v2642_v56  ;;  %4159 = vmatprep.subr.bf16.mxu1 %v4632_v36 }
 0x983   : > { %2650 = vadd.xlane.f32.xlu0 %v2643_v24 }
 0xa0c   : > { %v2647_v63 = vpop.xlane.xlu0 %2646 }
 0xa0d   : > { %v2653_v62 = vmul.f32 0.0078125, %v2647_v63  ;;  %v2721_v63 = vrot.slane %v2714_v51, %v6298_v23 }
 0xa0e   : > { %v2649_v15 = vpop.xlane.xlu1 %2648 }
 0xa0f   : > { %v2656_v48 = vsub.f32 %v2641_v18, %v2653_v62  ;;  %v2654_v30 = vmul.f32 0.0078125, %v2649_v15  ;;  %v4633_v18 = vld [vmem:[%s6228_s30 + $0x8] sm:$0xff]   ;;  %v2725_v62 = vrot.slane %v2714_v51, %v6301_v25 }
 0xa10   : > { %v2651_v49 = vpop.xlane.xlu0 %2650  ;;  %4160 = vmatpush3.bf16.msra.mxu1 %v4633_v18 }
 0xa11   : > { %v2657_v32 = vsub.f32 %v2642_v56, %v2654_v30  ;;  %v2655_v20 = vmul.f32 0.0078125, %v2651_v49  ;;  %v2659_v31 = vmul.f32 %v2656_v48, %v2656_v48  ;;  %v4636_v56 = vld [vmem:[%s6228_s30 + $0x58] sm:$0xff]  }
 0xa13   : > { %v2658_v37 = vsub.f32 %v2643_v24, %v2655_v20  ;;  %2662 = vadd.xlane.f32.xlu1 %v2659_v31  ;;  %v2660_v40 = vmul.f32 %v2657_v32, %v2657_v32  ;;  %v4638_v24 = vld [vmem:[%s6228_s30 + $0x60] sm:$0xff]  }
 0xa15   : > { %2664 = vadd.xlane.f32.xlu0 %v2660_v40  ;;  %v2661_v52 = vmul.f32 %v2658_v37, %v2658_v37 }
 0xa17   : > { %2666 = vadd.xlane.f32.xlu1 %v2661_v52 }
 0xaa0   : > { %v2663_v59 = vpop.xlane.xlu1 %2662 }
 0xaa1   : > { %v2668_v50 = vmul.f32 0.0078125, %v2663_v59 }
 0xaa2   : > { %v2665_v2 = vpop.xlane.xlu0 %2664 }
 0xaa3   : > { %v2671_v5 = vadd.f32 1e-12, %v2668_v50  ;;  %v2669_v8 = vmul.f32 0.0078125, %v2665_v2 }
 0xaa4   : > { %v2667_v3 = vpop.xlane.xlu1 %2666 }
 0xaa5   : > { %4742 = vrsqrt.f32 %v2671_v5  ;;  %v2672_v7 = vadd.f32 1e-12, %v2669_v8  ;;  %v2670_v9 = vmul.f32 0.0078125, %v2667_v3 }
 0xaa7   : > { %4744 = vrsqrt.f32 %v2672_v7  ;;  %v2673_v4 = vadd.f32 1e-12, %v2670_v9 }
 0xaa9   : > { %4746 = vrsqrt.f32 %v2673_v4 }
 0xaaf   : > { %v4743_v11 = vpop.eup %4742 }
 0xab0   : > { %v2677_v14 = vmul.f32 %v4743_v11, %v2656_v48 }
 0xab1   : > { %v4745_v16 = vpop.eup %4744 }
 0xab2   : > { %v2686_v19 = vmul.f32 %v4000_v58, %v2677_v14  ;;  %v2678_v21 = vmul.f32 %v4745_v16, %v2657_v32 }
 0xab3   : > { %v4747_v22 = vpop.eup %4746 }
 0xab4   : > { %v2687_v10 = vmul.f32 %v4000_v58, %v2678_v21  ;;  %v2679_v28 = vmul.f32 %v4747_v22, %v2658_v37  ;;  %v6706_v13 = vadd.f32 %v4001_v12, %v2686_v19 }
 0xab6   : > { %v6708_v1 = vadd.f32 %v4001_v12, %v2687_v10  ;;  %v2688_v26 = vmul.f32 %v4000_v58, %v2679_v28 }
 0xab8   : > { %v2715_v27 = vpack.c.bf16 %v6708_v1, %v6706_v13  ;;  %v6713_v34 = vadd.f32 %v4001_v12, %v2688_v26 }
 0xaba   : > { %2841 = vmatmul.mubr.bf16.vlgmr.msra.gmra.mrb[40].mxu0 %v2715_v27  ;;  %v2716_v43 = vpack.c.bf16 %v6713_v34, %v6713_v34 }
 0xabb   : > { %2850 = vmatprep.mubr.bf16.mxu0 %v5501_v57  ;;  %v4634_v57 = vld [vmem:[%s6228_s30 + $0x50] sm:$0xff]  }
 0xabc   : > { %4161 = vmatprep.subr.bf16.mxu1 %v4634_v57 }
 0xabd   : > { %4162 = vmatpush3.bf16.msra.mxu1 %v4635_v45 }
 0xabe   : > { %4163 = vmatprep.subr.bf16.mxu1 %v4636_v56 }
 0xac1   : > { %4164 = vmatpush3.bf16.msra.mxu1 %v4637_v17 }
 0xac2   : > { %2851 = vmatmul.mubr.bf16.gmra.mrb[44].mxu0 %v2716_v43  ;;  %4165 = vmatprep.subr.bf16.mxu1 %v4638_v24 }
 0xac5   : > { %4166 = vmatpush3.bf16.msra.mxu1 %v4639_v38 }
 0xac6   : > { %4167 = vmatprep.subr.bf16.mxu1 %v4640_v0 }
 0xac9   : > { %4168 = vmatpush3.bf16.msra.mxu1 %v4641_v54 }
 0xaca   : > { %4169 = vmatprep.subr.bf16.mxu1 %v4642_v29 }
 0xacd   : > { %4170 = vmatpush3.bf16.msra.mxu1 %v4643_v42 }
 0xace   : > { %4171 = vmatprep.subr.bf16.mxu1 %v4644_v41 }
 0xad1   : > { %4172 = vmatpush3.bf16.msra.mxu1 %v4645_v6 }
 0xb8d   : > { %v2842_v15 = vpop.f32.mrb[40].mxu0 }
 0xb8e   : > { %v2843_v48 = vadd.f32 %v2842_v15, %v2721_v63  ;;  %v2844_v30 = vpop.f32.mrb[41].mxu0 }
 0xb8f   : > { %v2845_v49 = vadd.f32 %v2844_v30, %v2725_v62  ;;  %v2846_v32 = vpop.f32.mrb[42].mxu0 }
 0xb90   : > { %v2859_v20 = vmul.f32 %v2843_v48, %v2843_v48  ;;  %v2847_v31 = vadd.f32 %v2846_v32, %v2721_v63  ;;  %v2848_v37 = vpop.f32.mrb[43].mxu0 }
 0xb91   : > { %v2860_v40 = vmul.f32 %v2845_v49, %v2845_v49  ;;  %v2849_v52 = vadd.f32 %v2848_v37, %v2725_v62 }
 0xb92   : > { %v2865_v55 = vmul.f32 %v2859_v20, %v2843_v48  ;;  %v2861_v39 = vmul.f32 %v2847_v31, %v2847_v31 }
 0xb93   : > { %v2866_v44 = vmul.f32 %v2860_v40, %v2845_v49  ;;  %v2862_v60 = vmul.f32 %v2849_v52, %v2849_v52 }
 0xb94   : > { %v2871_v61 = vmul.f32 0.044715, %v2865_v55  ;;  %v2867_v46 = vmul.f32 %v2861_v39, %v2847_v31 }
 0xb95   : > { %v2872_v47 = vmul.f32 0.044715, %v2866_v44  ;;  %v2868_v53 = vmul.f32 %v2862_v60, %v2849_v52  ;;  %v2852_v59 = vpop.f32.mrb[44].mxu0 }
 0xb96   : > { %v2877_v50 = vadd.f32 %v2871_v61, %v2843_v48  ;;  %v2873_v2 = vmul.f32 0.044715, %v2867_v46  ;;  %v2853_v5 = vadd.f32 %v2852_v59, %v2721_v63  ;;  %v2854_v8 = vpop.f32.mrb[45].mxu0 }
 0xb97   : > { %v2878_v3 = vadd.f32 %v2872_v47, %v2845_v49  ;;  %v2874_v7 = vmul.f32 0.044715, %v2868_v53  ;;  %v2855_v9 = vadd.f32 %v2854_v8, %v2725_v62  ;;  %v2856_v4 = vpop.f32.mrb[46].mxu0 }
 0xb98   : > { %v2883_v11 = vmul.f32 0.7978846, %v2877_v50  ;;  %v2879_v58 = vadd.f32 %v2873_v2, %v2847_v31  ;;  %v2863_v14 = vmul.f32 %v2853_v5, %v2853_v5  ;;  %v2857_v16 = vpop.f32.mrb[47].mxu0 }
 0xb99   : > { %v2884_v19 = vmul.f32 0.7978846, %v2878_v3  ;;  %v2880_v21 = vadd.f32 %v2874_v7, %v2849_v52  ;;  %v2864_v22 = vmul.f32 %v2855_v9, %v2855_v9 }
 0xb9a   : > { %4748 = vtanh.f32 %v2883_v11  ;;  %v2885_v12 = vmul.f32 0.7978846, %v2879_v58  ;;  %v2869_v10 = vmul.f32 %v2863_v14, %v2853_v5 }
 0xb9b   : > { %4750 = vtanh.f32 %v2884_v19  ;;  %v2886_v28 = vmul.f32 0.7978846, %v2880_v21  ;;  %v2870_v27 = vmul.f32 %v2864_v22, %v2855_v9 }
 0xb9c   : > { %4752 = vtanh.f32 %v2885_v12  ;;  %v2875_v26 = vmul.f32 0.044715, %v2869_v10 }
 0xb9d   : > { %4754 = vtanh.f32 %v2886_v28  ;;  %v2876_v43 = vmul.f32 0.044715, %v2870_v27 }
 0xb9e   : > { %v2881_v33 = vadd.f32 %v2875_v26, %v2853_v5 }
 0xb9f   : > { %v2882_v35 = vadd.f32 %v2876_v43, %v2855_v9 }
 0xba0   : > { %v2887_v36 = vmul.f32 0.7978846, %v2881_v33 }
 0xba1   : > { %v2888_v18 = vmul.f32 0.7978846, %v2882_v35 }
 0xba2   : > { %4756 = vtanh.f32 %v2887_v36 }
 0xba3   : > { %4758 = vtanh.f32 %v2888_v18 }
 0xba4   : > { %v4749_v57 = vpop.eup %4748 }
 0xba5   : > { %v4751_v45 = vpop.eup %4750  ;;  %v2895_v56 = vadd.f32 1.0, %v4749_v57 }
 0xba6   : > { %v4753_v17 = vpop.eup %4752  ;;  %v2896_v24 = vadd.f32 1.0, %v4751_v45 }
 0xba7   : > { %v4755_v38 = vpop.eup %4754  ;;  %v2901_v0 = vmul.f32 0.5, %v2895_v56  ;;  %v2897_v54 = vadd.f32 1.0, %v4753_v17 }
 0xba8   : > { %v2898_v29 = vadd.f32 1.0, %v4755_v38  ;;  %v2902_v42 = vmul.f32 0.5, %v2896_v24 }
 0xba9   : > { %v2903_v41 = vmul.f32 0.5, %v2897_v54  ;;  %v2907_v51 = vmul.f32 %v2901_v0, %v2843_v48  ;;  %v4035_v0 = vld [vmem:[%s7015_s7] ss:$0 sm:$0xff] }
 0xbaa   : > { %v2904_v6 = vmul.f32 0.5, %v2898_v29  ;;  %v2908_v15 = vmul.f32 %v2902_v42, %v2845_v49  ;;  %v4018_v49 = vld [vmem:[%s1076_s1] ss:$0 sm:$0xff] }
 0xbab   : > { %v2909_v63 = vmul.f32 %v2903_v41, %v2847_v31  ;;  %v4036_v42 = vld [vmem:[%s7016_s27] ss:$0 sm:$0xff] }
 0xbac   : > { %v4757_v62 = vpop.eup %4756  ;;  %v2910_v30 = vmul.f32 %v2904_v6, %v2849_v52 }
 0xbad   : > { %v4759_v32 = vpop.eup %4758  ;;  %v2946_v20 = vpack.c.bf16 %v2909_v63, %v2907_v51  ;;  %v2899_v37 = vadd.f32 1.0, %v4757_v62 }
 0xbae   : > { %v2947_v40 = vpack.c.bf16 %v2910_v30, %v2908_v15  ;;  %v2900_v55 = vadd.f32 1.0, %v4759_v32 }
 0xbaf   : > { %v2905_v39 = vmul.f32 0.5, %v2899_v37 }
 0xbb0   : > { %3084 = vmatprep.mubr.bf16.mxu1 %v2947_v40  ;;  %v2906_v44 = vmul.f32 0.5, %v2900_v55  ;;  %v5502_v40 = vmov (!%p4037_p6), 0.0|0.0   ;;  %v5504_v55 = vmov (!%p4037_p6), 0.0  }
 0xbb1   : > { %3085 = vmatmul.mubr.bf16.vlgmr.msra.gmra.mrb[24].mxu1 %v2946_v20  ;;  %v2911_v61 = vmul.f32 %v2905_v39, %v2853_v5  ;;  %4358 = vmatprep.subr.bf16.mxu0 (!%p4037_p6), %v5502_v40  ;;  %v4792_v39 = vld [vmem:[#allocation22 + $0x4] ss:$8 sps:$4 sm:$0xff] (!%p4037_p6)  }
 0xbb2   : > { %v2912_v60 = vmul.f32 %v2906_v44, %v2855_v9  ;;  %4347 = vmatprep.mubr.msk.f32.mxu0 (!%p4037_p6), %vm5503_vm2, %v5504_v55  ;;  %v4794_v44 = vld [vmem:[#allocation22] ss:$8 sps:$4 sm:$0xff] (!%p4037_p6)   ;;  %3346 = vmatprep.subr.bf16.mxu1 (!%p4037_p6), %v4792_v39 }
 0xbb3   : > { %v2948_v47 = vpack.c.bf16 %v2911_v61, %v2911_v61  ;;  %v3163_v61 = vld [vmem:[%s7018_s8] sm:$0x3] (!%p4037_p6)  ;;  %3347 = vmatpush1.bf16.msra.mxu1 (!%p4037_p6), %v4794_v44 }
 0xbb4   : > { %v2949_v46 = vpack.c.bf16 %v2912_v60, %v2912_v60  ;;  %v4795_v60 = vld [vmem:[#allocation22 + $0x14] ss:$8 sps:$4 sm:$0xff] (!%p4037_p6)  }
 0xbb5   : > { %3348 = vmatprep.subr.bf16.mxu1 (!%p4037_p6), %v4795_v60 }
 0xbb6   : > { %3092 = vmatprep.mubr.bf16.mxu1 %v2949_v46  ;;  %v4797_v46 = vld [vmem:[#allocation22 + $0x10] ss:$8 sps:$4 sm:$0xff] (!%p4037_p6)  }
 0xbb7   : > { %3349 = vmatpush1.bf16.msra.mxu1 (!%p4037_p6), %v4797_v46 }
 0xbb9   : > { %3093 = vmatmul.mubr.bf16.gmra.mrb[28].mxu1 %v2948_v47  ;;  %v4798_v47 = vld [vmem:[#allocation22 + $0x24] ss:$8 sps:$4 sm:$0xff] (!%p4037_p6)  }
 0xbba   : > { %3350 = vmatprep.subr.bf16.mxu1 (!%p4037_p6), %v4798_v47 }
 0xc84   : > { %v4173_v48 = vpop.f32.mrb[24].mxu1 }
 0xc85   : > { %v4174_v31 = vpop.f32.mrb[25].mxu1 }
 0xc86   : > { %v4175_v52 = vadd.f32 %v4174_v31, %v4173_v48  ;;  %v4176_v53 = vpop.f32.mrb[26].mxu1  ;;  %v4800_v48 = vld [vmem:[#allocation22 + $0x20] ss:$8 sps:$4 sm:$0xff] (!%p4037_p6)   ;;  %v4803_v31 = vld [vmem:[#allocation22 + $0x30] ss:$8 sps:$4 sm:$0xff] (!%p4037_p6)  }
 0xc87   : > { %v4177_v59 = vpop.f32.mrb[27].mxu1  ;;  %3351 = vmatpush1.bf16.msra.mxu1 (!%p4037_p6), %v4800_v48 }
 0xc88   : > { %v3087_v50 = vadd.f32 %v4175_v52, %v4018_v49  ;;  %v4178_v2 = vadd.f32 %v4177_v59, %v4176_v53  ;;  %v4804_v52 = vld [vmem:[#allocation22 + $0x44] ss:$8 sps:$4 sm:$0xff] (!%p4037_p6)   ;;  %v4806_v53 = vld [vmem:[#allocation22 + $0x40] ss:$8 sps:$4 sm:$0xff] (!%p4037_p6)   ;;  %v4807_v59 = vld [vmem:[#allocation22 + $0x54] ss:$8 sps:$4 sm:$0xff] (!%p4037_p6)  }
 0xc8a   : > { %v3090_v8 = vadd.f32 %v4178_v2, %v4018_v49  ;;  %v3100_v3 = vadd.f32 %v3087_v50, %v6706_v13  ;;  %v4809_v50 = vld [vmem:[#allocation22 + $0x50] ss:$8 sps:$4 sm:$0xff] (!%p4037_p6)   ;;  %v4810_v2 = vld [vmem:[#allocation22 + $0x64] ss:$8 sps:$4 sm:$0xff] (!%p4037_p6)  }
 0xc8c   : > { %v4179_v7 = vpop.f32.mrb[28].mxu1  ;;  %3105 = vadd.xlane.f32.xlu0 %v3100_v3  ;;  %v3101_v5 = vadd.f32 %v3090_v8, %v6708_v1  ;;  %v4812_v8 = vld [vmem:[#allocation22 + $0x60] ss:$8 sps:$4 sm:$0xff] (!%p4037_p6)  }
 0xc8d   : > { %v4180_v9 = vpop.f32.mrb[29].mxu1 }
 0xc8e   : > { %v4181_v4 = vadd.f32 %v4180_v9, %v4179_v7  ;;  %v4182_v11 = vpop.f32.mrb[30].mxu1  ;;  %3107 = vadd.xlane.f32.xlu1 %v3101_v5  ;;  %v4815_v7 = vld [vmem:[#allocation22 + $0x70] ss:$8 sps:$4 sm:$0xff] (!%p4037_p6)   ;;  %v4816_v9 = vld [vmem:[%s7019_s6 + $0x40] sm:$0xff] (!%p4037_p6)  }
 0xc8f   : > { %v4183_v58 = vpop.f32.mrb[31].mxu1  ;;  %v4818_v11 = vld [vmem:[%s7020_s12 + $0x48] sm:$0xff] (!%p4037_p6)  }
 0xc90   : > { %v3095_v14 = vadd.f32 %v4181_v4, %v4018_v49  ;;  %v4801_v49 = vld [vmem:[#allocation22 + $0x34] ss:$8 sps:$4 sm:$0xff] (!%p4037_p6)   ;;  %v4817_v4 = vld [vmem:[%s7020_s12] sm:$0xff] (!%p4037_p6)   ;;  %v4819_v58 = vld [vmem:[%s7020_s12 + $0x8] sm:$0xff] (!%p4037_p6)  }
 0xc91   : > { %3352 = vmatprep.subr.bf16.mxu1 (!%p4037_p6), %v4801_v49 }
 0xc92   : > { %v3102_v16 = vadd.f32 %v3095_v14, %v6713_v34  ;;  %3353 = vmatpush1.bf16.msra.mxu1 (!%p4037_p6), %v4803_v31  ;;  %v4820_v14 = vld [vmem:[%s7020_s12 + $0x50] sm:$0xff] (!%p4037_p6)  }
 0xc93   : > { %3354 = vmatprep.subr.bf16.mxu1 (!%p4037_p6), %v4804_v52 }
 0xc94   : > { %3109 = vadd.xlane.f32.xlu0 %v3102_v16 }
 0xc96   : > { %3355 = vmatpush1.bf16.msra.mxu1 (!%p4037_p6), %v4806_v53 }
 0xc97   : > { %3356 = vmatprep.subr.bf16.mxu1 (!%p4037_p6), %v4807_v59 }
 0xc9a   : > { %3357 = vmatpush1.bf16.msra.mxu1 (!%p4037_p6), %v4809_v50 }
 0xc9b   : > { %3358 = vmatprep.subr.bf16.mxu1 (!%p4037_p6), %v4810_v2 }
 0xc9e   : > { %3359 = vmatpush1.bf16.msra.mxu1 (!%p4037_p6), %v4812_v8 }
 0xd19   : > { %v3106_v19 = vpop.xlane.xlu0 %3105 }
 0xd1a   : > { %v3111_v21 = vmul.f32 0.0078125, %v3106_v19  ;;  %v4822_v19 = vld [vmem:[%s7020_s12 + $0x58] sm:$0xff] (!%p4037_p6)  }
 0xd1b   : > { %v3108_v22 = vpop.xlane.xlu1 %3107 }
 0xd1c   : > { %v3114_v12 = vsub.f32 %v3100_v3, %v3111_v21  ;;  %v3112_v10 = vmul.f32 0.0078125, %v3108_v22  ;;  %v4813_v3 = vld [vmem:[#allocation22 + $0x74] ss:$8 sps:$4 sm:$0xff] (!%p4037_p6)   ;;  %v4824_v22 = vld [vmem:[%s7020_s12 + $0x60] sm:$0xff] (!%p4037_p6)  }
 0xd1d   : > { %3360 = vmatprep.subr.bf16.mxu1 (!%p4037_p6), %v4813_v3  ;;  %v4823_v21 = vld [vmem:[%s7020_s12 + $0x18] sm:$0xff] (!%p4037_p6)  }
 0xd1e   : > { %v3115_v28 = vsub.f32 %v3101_v5, %v3112_v10  ;;  %v3117_v13 = vmul.f32 %v3114_v12, %v3114_v12  ;;  %3361 = vmatpush1.bf16.msra.mxu1 (!%p4037_p6), %v4815_v7  ;;  %v5505_v5 = vmov (!%p4037_p6), 0   ;;  %v4826_v10 = vld [vmem:[%s7020_s12 + $0x68] sm:$0xff] (!%p4037_p6)  }
 0xd1f   : > { %3378 = vmatprep.mubr.bf16.mxu1 (!%p4037_p6), %v5505_v5 }
 0xd20   : > { %3120 = vadd.xlane.f32.xlu1 %v3117_v13  ;;  %v3118_v27 = vmul.f32 %v3115_v28, %v3115_v28 }
 0xd21   : > { %v3110_v26 = vpop.xlane.xlu0 %3109 }
 0xd22   : > { %v3113_v1 = vmul.f32 0.0078125, %v3110_v26  ;;  %3122 = vadd.xlane.f32.xlu0 %v3118_v27 }
 0xd24   : > { %v3116_v43 = vsub.f32 %v3102_v16, %v3113_v1  ;;  %v4821_v16 = vld [vmem:[%s7020_s12 + $0x10] sm:$0xff] (!%p4037_p6)  }
 0xd25   : > { %v4828_v1 = vld [vmem:[%s7020_s12 + $0x70] sm:$0xff] (!%p4037_p6)  }
 0xd26   : > { %v3119_v33 = vmul.f32 %v3116_v43, %v3116_v43 }
 0xd28   : > { %3124 = vadd.xlane.f32.xlu1 %v3119_v33  ;;  %v4830_v33 = vld [vmem:[%s7020_s12 + $0x78] sm:$0xff] (!%p4037_p6)  }
 0xdad   : > { %v3121_v35 = vpop.xlane.xlu1 %3120 }
 0xdae   : > { %v3126_v34 = vmul.f32 0.0078125, %v3121_v35  ;;  %v4831_v35 = vld [vmem:[%s7020_s12 + $0x38] sm:$0xff] (!%p4037_p6)  }
 0xdaf   : > { %v3123_v36 = vpop.xlane.xlu0 %3122 }
 0xdb0   : > { %v3129_v18 = vadd.f32 1e-12, %v3126_v34  ;;  %v3127_v57 = vmul.f32 0.0078125, %v3123_v36  ;;  %v3253_v34 = vld [vmem:[#allocation23] sm:$0x3] (!%p4037_p6) }
 0xdb1   : > { %v3259_v36 = vrot.slane (!%p4037_p6), %v3253_v34, %v6298_v23 }
 0xdb2   : > { %4760 = vrsqrt.f32 %v3129_v18  ;;  %v3130_v45 = vadd.f32 1e-12, %v3127_v57  ;;  %v3263_v18 = vrot.slane (!%p4037_p6), %v3253_v34, %v6301_v25 }
 0xdb4   : > { %4762 = vrsqrt.f32 %v3130_v45 }
 0xdb5   : > { %v3125_v56 = vpop.xlane.xlu1 %3124 }
 0xdb6   : > { %v3128_v17 = vmul.f32 0.0078125, %v3125_v56 }
 0xdb8   : > { %v3131_v24 = vadd.f32 1e-12, %v3128_v17 }
 0xdba   : > { %4764 = vrsqrt.f32 %v3131_v24 }
 0xdbc   : > { %v4761_v38 = vpop.eup %4760 }
 0xdbd   : > { %v3135_v54 = vmul.f32 %v4761_v38, %v3114_v12  ;;  %v4825_v12 = vld [vmem:[%s7020_s12 + $0x20] sm:$0xff] (!%p4037_p6)  }
 0xdbe   : > { %v4763_v29 = vpop.eup %4762 }
 0xdbf   : > { %v3144_v41 = vmul.f32 %v4035_v0, %v3135_v54  ;;  %v3136_v6 = vmul.f32 %v4763_v29, %v3115_v28  ;;  %v4827_v28 = vld [vmem:[%s7020_s12 + $0x28] sm:$0xff] (!%p4037_p6)  }
 0xdc1   : > { %v3153_v51 = vadd.f32 %v4036_v42, %v3144_v41  ;;  %v3145_v63 = vmul.f32 %v4035_v0, %v3136_v6  ;;  %v4055_v6 = vld [vmem:[#allocation24] ss:$0 sm:$0xff] (!%p4037_p6) }
 0xdc3   : > { %3156 = vst [vmem:[#allocation2] sm:$0xff] %v3153_v51  ;;  %v3154_v62 = vadd.f32 %v4036_v42, %v3145_v63 }
 0xdc4   : > { %v4765_v15 = vpop.eup %4764 }
 0xdc5   : > { %3157 = vst [vmem:[#allocation2 + $0x8] sm:$0xff] %v3154_v62  ;;  %v3137_v30 = vmul.f32 %v4765_v15, %v3116_v43  ;;  %3162 = sbr.rel (%p4037_p6) target bundleno = 4184 (0x1058), region = 204  ;;  %v4359_v37 = vpack.c.bf16 (!%p4037_p6), %v3154_v62, %v3153_v51  ;;  %v4829_v43 = vld [vmem:[%s7020_s12 + $0x30] sm:$0xff] (!%p4037_p6)  }
 0xdc7   : > { %v3146_v32 = vmul.f32 %v4035_v0, %v3137_v30  ;;  %4360 = vmatpush3.bf16.msra.mxu0 (!%p4037_p6), %v4359_v37 }
 0xdc8   : > { %4345 = vmatprep.subr.mxu0 (!%p4037_p6), %v5504_v55 }
 0xdc9   : > { %v3155_v20 = vadd.f32 %v4036_v42, %v3146_v32 }
 0xdcb   : > { %3158 = vst [vmem:[#allocation2 + $0x10] sm:$0xff] %v3155_v20  ;;  %4346 = vmatpush3.msra.mxu0 (!%p4037_p6), %v3155_v20 }
 0xdcc   : > { %4348 = vmatmul.mubr.msk.f32.vlgmr.msra.gmra.mrb[0].mxu0 %vm1953_vm1, %v3163_v61  ;;  %4189 = vmatprep.subr.bf16.mxu0 %v4816_v9 }
 0xdcd   : > { %4190 = vmatpush3.bf16.msra.mxu0 %v4817_v4 }
 0xdce   : > { %4191 = vmatprep.subr.bf16.mxu0 %v4818_v11 }
 0xdd1   : > { %4192 = vmatpush3.bf16.msra.mxu0 %v4819_v58 }
 0xdd2   : > { %4193 = vmatprep.subr.bf16.mxu0 %v4820_v14 }
 0xdd5   : > { %4194 = vmatpush3.bf16.msra.mxu0 %v4821_v16 }
 0xdd6   : > { %4195 = vmatprep.subr.bf16.mxu0 %v4822_v19 }
 0xdd9   : > { %4196 = vmatpush3.bf16.msra.mxu0 %v4823_v21 }
 0xdda   : > { %4197 = vmatprep.subr.bf16.mxu0 %v4824_v22 }
 0xddd   : > { %4198 = vmatpush3.bf16.msra.mxu0 %v4825_v12 }
 0xdde   : > { %4199 = vmatprep.subr.bf16.mxu0 %v4826_v10 }
 0xde1   : > { %4200 = vmatpush3.bf16.msra.mxu0 %v4827_v28 }
 0xde2   : > { %4201 = vmatprep.subr.bf16.mxu0 %v4828_v1 }
 0xde5   : > { %4202 = vmatpush3.bf16.msra.mxu0 %v4829_v43 }
 0xde6   : > { %4203 = vmatprep.subr.bf16.mxu0 %v4830_v33 }
 0xde9   : > { %4204 = vmatpush3.bf16.msra.mxu0 %v4831_v35 }
 0xe9f   : > { %v3233_v13 = vpop.f32.mrb[0].mxu0 }
 0xea0   : > { %v3254_v27 = vpack.c.bf16 %v3233_v13, %v3233_v13  ;;  %v4349_v26 = vpop.f32.mrb[1].mxu0 }
 0xea2   : > { %3379 = vmatmul.mubr.bf16.vlgmr.msra.gmra.mrb[0].mxu1 %v3254_v27 }
 0xf75   : > { %v3380_v57 = vpop.f32.mrb[0].mxu1 }
 0xf76   : > { %v3381_v45 = vadd.f32 %v3380_v57, %v3259_v36  ;;  %v3382_v56 = vpop.f32.mrb[1].mxu1 }
 0xf77   : > { %v3383_v17 = vadd.f32 %v3382_v56, %v3263_v18  ;;  %v3384_v24 = vpop.f32.mrb[2].mxu1 }
 0xf78   : > { %v3387_v38 = vmax.f32 %v3381_v45, 0.0  ;;  %v3385_v0 = vpop.f32.mrb[3].mxu1 }
 0xf79   : > { %v3388_v54 = vmax.f32 %v3383_v17, 0.0 }
 0xf7a   : > { %v3422_v42 = vpack.c.bf16 %v3387_v38, %v3387_v38 }
 0xf7b   : > { %v3423_v29 = vpack.c.bf16 %v3388_v54, %v3388_v54 }
 0xf7d   : > { %3558 = vmatprep.mubr.bf16.mxu0 %v3423_v29 }
 0xf7e   : > { %3559 = vmatmul.mubr.bf16.vlgmr.msra.gmra.mrb[4].mxu0 %v3422_v42 }
0x1051   : > { %v4205_v41 = vpop.f32.mrb[4].mxu0 }
0x1052   : > { %v4206_v51 = vpop.f32.mrb[5].mxu0 }
0x1053   : > { %v4207_v63 = vadd.f32 %v4206_v51, %v4205_v41  ;;  %v4208_v62 = vpop.f32.mrb[6].mxu0 }
0x1054   : > { %v4209_v23 = vpop.f32.mrb[7].mxu0 }
0x1055   : > { %v3561_v25 = vadd.f32 %v4207_v63, %v4055_v6 }
0x1057   : > { %3567 = vst.msk [vmem:[#allocation27] sm:$0x3] %vm3566_vm3, %v3561_v25 }
0x1058 PF: > { %s7021_s27 = sld [smem:[#allocation38_spill]]  ;;  %s5506_s11 = smov [#allocation27]  }
0x1059   : > { %s3575_s3 = sshll.u32 %s5506_s11, 4  ;;  %s3576_s3 = int_to_ptr.vmem [resolvable:$true] %s3575_s3 }
0x105a   : > { %s5386_s25 = scalar_lea.vmem %s3576_s3, 32  ;;  %p5393_p2 = scmp.lt.s32.totalorder %s3576_s3, %s3576_s3 }
0x105b   : > { %p5387_p7 = scmp.ne.s32.totalorder %s3576_s3, %s5386_s25  ;;  %p5394_p3 = scmp.lt.s32.totalorder %s5386_s25, %s5386_s25 }
0x105d   : > { %p5395_p10 = por %p5394_p3, %p5393_p2 }
0x105e   : > { %p4505_p8 = scmp.eq.s32.totalorder %s7021_s27, 3 }
0x1060   : > { %p5388_p5 = pnand %p5387_p7, %p4505_p8 }
0x1062   : > { %p5389_p4 = pneg %p5388_p5 }
0x1064   : > { %p5396_p9 = pnand %p5395_p10, %p5389_p4 }
0x1066   : > { %5399 = shalt.err (!%p5396_p9)
}
0x1067   : > { %s7022_s1 = sld [smem:[#allocation66_spill]] }
0x106d   : > { %s5400_s6 = scalar_lea.hbm %s7022_s1, 32 }
0x106e   : > { %p5401_p13 = scmp.ne.s32.totalorder %s7022_s1, %s5400_s6  ;;  %p5406_p11 = scmp.lt.u32.totalorder %s5400_s6, %s7022_s1 }
0x1070   : > { %p5402_p0 = pnand %p5401_p13, %p4505_p8 }
0x1072   : > { %p5403_p1 = pneg %p5402_p0 }
0x1074   : > { %p5408_p12 = pnand %p5406_p11, %p5403_p1 }
0x1076   : > { %5411 = shalt.err (!%p5408_p12)
}
0x1077   : > { %4426 = dma.vmem_to_hbm [thread:$0]  (%p4505_p8), %s3576_s3, 32, %s7022_s1, [#allocation5]  }
0x1078   : > { %5457 = dma.done.wait (%p4505_p8), [#allocation5], 32  }
0x1079   : > { %5459 = vsyncadd (%p4505_p8), [#allocation5], 4294967264 }
0x107a PF: > { %s7023_s30 = sld [smem:[#allocation41_spill]]  ;;  %s7024_s29 = sld [smem:[#allocation36_spill]] }
0x107b   : > { %s7025_s2 = sld [smem:[#allocation37_spill]]  ;;  %s7026_s6 = sld [smem:[#allocation42_spill]] }
0x1080   : > { %p37_p6 = scmp.ge.s32.totalorder %s7023_s30, 6  }
0x1082   :  { %39 = sbr.rel (!%p37_p6) target bundleno = 31 (0x1f), region = 309 }
0x1089   :  { %3588 = vsyncpa [#allocation4], 1 }
0x108a   :  { %3590 = vsyncpa [#allocation4 + $0x1], 1 }
0x108b   :  { %3591 = vsyncpa [#allocation7], 1 }
0x108c   :  { %3592 = vsyncpa [#allocation10], 1 }
0x108d   :  { %3593 = vsyncpa [#allocation25], 1 }
0x108e   :  { %3594 = vsyncpa [#allocation5], 1 }
0x108f   :  { %3596 = vsyncpa [#allocation5 + $0x1], 1 }

</bundles_post_ra>
